<compile_context>
chip_gen: v7x
topology: tpu7x:2x2x1
jax: 0.10.0
libtpu: 0.0.40
codegen_flags: <defaults>
</compile_context>

<pallas_src>
import functools

import numpy as np
import jax
import jax.numpy as jnp
from jax.experimental import pallas as pl
from jax.experimental.pallas import tpu as pltpu


_COMPUTE_DTYPE = jnp.bfloat16          # activations & matmul weights (f32 accum)


def _tpu_budget():
    """Generation-aware (vmem_limit_bytes, row_tile)."""
    try:
        vmem = int(pltpu.get_tpu_info().vmem_capacity_bytes)
        if vmem >= 100 * 1024 * 1024:   # v5e / v6e: 128 MiB physical VMEM
            return 96 * 1024 * 1024, 512
        return 48 * 1024 * 1024, 256    # v7x: 64 MiB physical VMEM
    except Exception:
        return 48 * 1024 * 1024, 256


_VMEM_LIMIT_BYTES, _ROW_BLOCK = _tpu_budget()


def _row_block(n):
    return n if n <= _ROW_BLOCK else _ROW_BLOCK


def _cparams(n_parallel):
    return pltpu.CompilerParams(
        dimension_semantics=("parallel",) * n_parallel,
        vmem_limit_bytes=_VMEM_LIMIT_BYTES)


# ----------------------------------------------------------------------------
# Pallas kernels
# ----------------------------------------------------------------------------

def _ln_linear_kernel(x_ref, g_ref, b_ref, w_ref, wb_ref, o_ref, *, eps):
    x = x_ref[...].astype(jnp.float32)
    mu = jnp.mean(x, axis=-1, keepdims=True)
    var = jnp.mean(jnp.square(x - mu), axis=-1, keepdims=True)
    h = (x - mu) * jax.lax.rsqrt(var + eps)
    h = (h * g_ref[...] + b_ref[...]).astype(w_ref.dtype)
    y = jnp.dot(h, w_ref[...], preferred_element_type=jnp.float32) + wb_ref[...]
    o_ref[...] = y.astype(o_ref.dtype)


def pallas_ln_linear(x, g, b, w, wb, eps=1e-5, out_dtype=None):
    """Fused LayerNorm(x) @ w + wb (LN1+QKV and post-FE LN+proj)."""
    N, Din = x.shape
    Dout = w.shape[1]
    out_dtype = out_dtype or x.dtype
    bm = _row_block(N)
    # TODO(synk): at production Din/Dout, tile Dout and K with an f32 VMEM
    # accumulator (grid=(rows, n_out, k), ("parallel","parallel","arbitrary"))
    # and mark the constant weight blocks pipeline_mode=pl.Buffered(1) so
    # double-buffered weights fit the v7x 64 MiB budget.
    return pl.pallas_call(
        functools.partial(_ln_linear_kernel, eps=eps),
        out_shape=jax.ShapeDtypeStruct((N, Dout), out_dtype),
        grid=(pl.cdiv(N, bm),),
        in_specs=[
            pl.BlockSpec((bm, Din), lambda i: (i, 0)),
            pl.BlockSpec((1, Din), lambda i: (0, 0)),
            pl.BlockSpec((1, Din), lambda i: (0, 0)),
            pl.BlockSpec((Din, Dout), lambda i: (0, 0)),
            pl.BlockSpec((1, Dout), lambda i: (0, 0)),
        ],
        out_specs=pl.BlockSpec((bm, Dout), lambda i: (i, 0)),
        compiler_params=_cparams(1),
    )(x,
      g.reshape(1, Din).astype(jnp.float32),
      b.reshape(1, Din).astype(jnp.float32),
      w,
      wb.reshape(1, Dout).astype(jnp.float32))


def _ln_ffn_kernel(x_ref, g_ref, b_ref, w1_ref, b1_ref, w2_ref, b2_ref, o_ref, *, eps):
    x = x_ref[...].astype(jnp.float32)
    mu = jnp.mean(x, axis=-1, keepdims=True)
    var = jnp.mean(jnp.square(x - mu), axis=-1, keepdims=True)
    h = (x - mu) * jax.lax.rsqrt(var + eps)
    h = (h * g_ref[...] + b_ref[...]).astype(w1_ref.dtype)
    h1 = jnp.dot(h, w1_ref[...], preferred_element_type=jnp.float32) + b1_ref[...]
    # TODO(synk): PyTorch nn.GELU defaults to exact erf; tanh approx keeps it on EUP.
    h1 = jax.nn.gelu(h1, approximate=True).astype(w2_ref.dtype)
    y = jnp.dot(h1, w2_ref[...], preferred_element_type=jnp.float32) + b2_ref[...]
    o_ref[...] = (x + y).astype(o_ref.dtype)          # pre-norm residual (f32 add)


def pallas_ln_ffn(x, g, b, w1, b1, w2, b2, eps=1e-5):
    """Fused pre-norm FFN block: x + W2(GELU(W1(LN(x))))."""
    N, D = x.shape
    F = w1.shape[1]
    bm = _row_block(N)
    # TODO(synk): same production-scale Dout/K tiling + Buffered(1) note as above.
    return pl.pallas_call(
        functools.partial(_ln_ffn_kernel, eps=eps),
        out_shape=jax.ShapeDtypeStruct((N, D), x.dtype),
        grid=(pl.cdiv(N, bm),),
        in_specs=[
            pl.BlockSpec((bm, D), lambda i: (i, 0)),
            pl.BlockSpec((1, D), lambda i: (0, 0)),
            pl.BlockSpec((1, D), lambda i: (0, 0)),
            pl.BlockSpec((D, F), lambda i: (0, 0)),
            pl.BlockSpec((1, F), lambda i: (0, 0)),
            pl.BlockSpec((F, D), lambda i: (0, 0)),
            pl.BlockSpec((1, D), lambda i: (0, 0)),
        ],
        out_specs=pl.BlockSpec((bm, D), lambda i: (i, 0)),
        compiler_params=_cparams(1),
    )(x,
      g.reshape(1, D).astype(jnp.float32), b.reshape(1, D).astype(jnp.float32),
      w1, b1.reshape(1, F).astype(jnp.float32),
      w2, b2.reshape(1, D).astype(jnp.float32))


def _attn_out_kernel(qkv_ref, wo_ref, bo_ref, res_ref, o_ref, *, num_heads, scale):
    """Per-batch-element fused MHSA + output projection + residual.

    qkv never leaves VMEM in the (H, T, Dh) layout; the out-projection is
    applied per head (ctx @ Wo == sum_h o_h @ Wo[h*Dh:(h+1)*Dh]), which avoids
    both the lane concat and any (B,H,T,Dh) HBM round trip.
    """
    qkv = qkv_ref[...]                                  # (T, 3D) bf16
    T, threeD = qkv.shape
    D = threeD // 3
    Dh = D // num_heads
    q = qkv[:, 0:D]
    k = qkv[:, D:2 * D]
    v = qkv[:, 2 * D:3 * D]
    wo = wo_ref[...]
    acc = jnp.zeros((T, D), jnp.float32)
    # TODO(synk): Dh=8 contraction uses ~3% of the MXU depth; production configs
    # need Dh>=128 (or restructured contractions) to be MXU-bound.
    # TODO(synk): add a KV grid axis ("arbitrary") with running max/denominator
    # scratch (flash-style) once T exceeds ~256 to keep the (T,T) scores in VMEM.
    for h in range(num_heads):
        qh = q[:, h * Dh:(h + 1) * Dh]
        kh = k[:, h * Dh:(h + 1) * Dh]
        vh = v[:, h * Dh:(h + 1) * Dh]
        s = jax.lax.dot_general(qh, kh, (((1,), (1,)), ((), ())),
                                preferred_element_type=jnp.float32) * scale
        s = s - jnp.max(s, axis=-1, keepdims=True)
        p = jnp.exp(s)
        # approx reciprocal on the EUP slot; ~1e-3 relative error is fine for training.
        p = p * pl.reciprocal(jnp.sum(p, axis=-1, keepdims=True), approx=True)
        oh = jnp.dot(p.astype(vh.dtype), vh, preferred_element_type=jnp.float32)
        acc = acc + jnp.dot(oh.astype(wo.dtype), wo[h * Dh:(h + 1) * Dh, :],
                            preferred_element_type=jnp.float32)
    y = acc + bo_ref[...]
    o_ref[...] = (y + res_ref[...].astype(jnp.float32)).astype(o_ref.dtype)


def pallas_attention_block(qkv_btd, wo, bo, res_btd, num_heads):
    """qkv: (B, T, 3D), res: (B, T, D) -> attn + out-proj + residual, (B, T, D)."""
    B, T, threeD = qkv_btd.shape
    D = threeD // 3
    Dh = D // num_heads
    scale = 1.0 / float(np.sqrt(Dh))
    # TODO(synk): for v7x (2 TCs) add a query-tile parallel axis when B is small.
    return pl.pallas_call(
        functools.partial(_attn_out_kernel, num_heads=num_heads, scale=scale),
        out_shape=jax.ShapeDtypeStruct((B, T, D), res_btd.dtype),
        grid=(B,),
        in_specs=[
            pl.BlockSpec((None, T, threeD), lambda b: (b, 0, 0)),
            pl.BlockSpec((D, D), lambda b: (0, 0)),
            pl.BlockSpec((1, D), lambda b: (0, 0)),
            pl.BlockSpec((None, T, D), lambda b: (b, 0, 0)),
        ],
        out_specs=pl.BlockSpec((None, T, D), lambda b: (b, 0, 0)),
        compiler_params=_cparams(1),
    )(qkv_btd, wo, bo.reshape(1, D).astype(jnp.float32), res_btd)


def _conv_kernel(x_ref, w_ref, *rest, r_taps, lout, eps, groupnorm):
    """Strided conv as r_taps unit-stride slices + matmuls on the stride-folded
    input view; optional GroupNorm(C, C) over time + GELU (feature-extractor
    layer 0)."""
    if groupnorm:
        g_ref, b_ref, o_ref = rest
    else:
        (o_ref,) = rest
    x = x_ref[...]                                       # (Lfold, s*Cin)
    cout = w_ref.shape[-1]
    acc = jnp.zeros((lout, cout), jnp.float32)
    for r in range(r_taps):
        acc = acc + jnp.dot(x[r:r + lout, :], w_ref[r],
                            preferred_element_type=jnp.float32)
    y = acc
    if groupnorm:
        mu = jnp.mean(y, axis=0, keepdims=True)          # per-channel, over time
        var = jnp.mean(jnp.square(y - mu), axis=0, keepdims=True)
        y = (y - mu) * jax.lax.rsqrt(var + eps)
        y = y * g_ref[...] + b_ref[...]
    y = jax.nn.gelu(y, approximate=True)
    o_ref[...] = y.astype(o_ref.dtype)


def pallas_conv_block(xf, w_fold, lout, gn=None, eps=1e-5):
    """xf: stride-folded input (B, Lfold, s*Cin); w_fold: (R, s*Cin, Cout)."""
    B, Lfold, SC = xf.shape
    R, _, Cout = w_fold.shape
    in_specs = [pl.BlockSpec((None, Lfold, SC), lambda b: (b, 0, 0)),
                pl.BlockSpec((R, SC, Cout), lambda b: (0, 0, 0))]
    args = [xf, w_fold]
    if gn is not None:
        g, beta = gn
        in_specs += [pl.BlockSpec((1, Cout), lambda b: (0, 0)),
                     pl.BlockSpec((1, Cout), lambda b: (0, 0))]
        args += [g.reshape(1, Cout).astype(jnp.float32),
                 beta.reshape(1, Cout).astype(jnp.float32)]
    # TODO(synk): tile the time axis (two-pass GroupNorm) for long audio and to
    # give v7x's second TensorCore work when B is small.
    return pl.pallas_call(
        functools.partial(_conv_kernel, r_taps=R, lout=lout, eps=eps,
                          groupnorm=gn is not None),
        out_shape=jax.ShapeDtypeStruct((B, lout, Cout), xf.dtype),
        grid=(B,),
        in_specs=in_specs,
        out_specs=pl.BlockSpec((None, lout, Cout), lambda b: (b, 0, 0)),
        compiler_params=_cparams(1),
    )(*args)


def _instnorm_kernel(x_ref, o_ref, *, eps):
    x = x_ref[...].astype(jnp.float32)                   # (T, D)
    mu = jnp.mean(x, axis=0, keepdims=True)              # over time, per channel
    var = jnp.mean(jnp.square(x - mu), axis=0, keepdims=True)
    o_ref[...] = ((x - mu) * jax.lax.rsqrt(var + eps)).astype(o_ref.dtype)


def pallas_instance_norm_stack(x_lbtd, eps=1e-5):
    """F.instance_norm over time for a whole stack of layer results in one
    launch; grid (layers, batch) -> two parallel axes (v7x megacore)."""
    L, B, T, D = x_lbtd.shape
    return pl.pallas_call(
        functools.partial(_instnorm_kernel, eps=eps),
        out_shape=jax.ShapeDtypeStruct((L, B, T, D), jnp.float32),
        grid=(L, B),
        in_specs=[pl.BlockSpec((None, None, T, D), lambda l, b: (l, b, 0, 0))],
        out_specs=pl.BlockSpec((None, None, T, D), lambda l, b: (l, b, 0, 0)),
        compiler_params=_cparams(2),
    )(x_lbtd)


def _codebook_argmin_kernel(x_ref, c_ref, o_ref, *, kc):
    """Nearest-codeword index, computed in (K, N) orientation so the argmin is
    a sublane reduction and the store is lane-dense (1, N)."""
    x = x_ref[...]                                        # (N, D) f32
    c = c_ref[...]                                        # (Kc, D) f32
    c_sq = jnp.sum(c * c, axis=-1, keepdims=True)         # (Kc, 1) f32
    # bf16 cross term on the MXU (f32 accumulation); ||x||^2 dropped: it is
    # constant over codewords so it does not change the argmin.
    xc = jax.lax.dot_general(c.astype(jnp.bfloat16), x.astype(jnp.bfloat16),
                             (((1,), (1,)), ((), ())),
                             preferred_element_type=jnp.float32)   # (Kc, N)
    d = c_sq - 2.0 * xc
    mind = jnp.min(d, axis=0, keepdims=True)
    iota = jax.lax.broadcasted_iota(jnp.int32, d.shape, 0)
    idx = jnp.min(jnp.where(d <= mind, iota, kc), axis=0, keepdims=True)
    o_ref[...] = jnp.minimum(idx, kc - 1).astype(jnp.int32)         # (1, N)


def pallas_codebook_closest(x_stack, codebook):
    """x_stack: (Kl, N, D) f32, codebook: (Kl, Kc, D) f32 -> (Kl, N) int32."""
    Kl, N, D = x_stack.shape
    Kc = codebook.shape[1]
    out = pl.pallas_call(
        functools.partial(_codebook_argmin_kernel, kc=Kc),
        out_shape=jax.ShapeDtypeStruct((Kl, 1, N), jnp.int32),
        grid=(Kl,),
        in_specs=[
            pl.BlockSpec((None, N, D), lambda i: (i, 0, 0)),
            pl.BlockSpec((None, Kc, D), lambda i: (i, 0, 0)),
        ],
        out_specs=pl.BlockSpec((None, 1, N), lambda i: (i, 0, 0)),
        compiler_params=_cparams(1),
    )(x_stack.astype(jnp.float32), codebook.astype(jnp.float32))
    return out[:, 0, :]


def _cls_loss_kernel(x_ref, w_ref, b_ref, tgt_ref, m_ref, red_ref, *, kc):
    """Classifier head + masked CE / accuracy / softmax-mean / argmax-histogram
    reductions for one layer.  The (N, Kc) logits never leave VMEM; only a
    (4, Kc) f32 reduction slab is stored."""
    x = x_ref[...]                                         # (N, D) bf16
    logits = jnp.dot(x, w_ref[...], preferred_element_type=jnp.float32) + b_ref[...]
    tgt = tgt_ref[...]                                     # (N, 1) int32
    m = m_ref[...]                                         # (N, 1) f32 mask
    lane = jax.lax.broadcasted_iota(jnp.int32, logits.shape, 1)
    onehot_t = (lane == tgt).astype(jnp.float32)
    mx = jnp.max(logits, axis=-1, keepdims=True)
    z = logits - mx
    ez = jnp.exp(z)
    sez = jnp.sum(ez, axis=-1, keepdims=True)
    logp = z - jnp.log(sez)
    probs = ez / sez
    pred = jnp.min(jnp.where(logits >= mx, lane, kc), axis=-1, keepdims=True)
    pred = jnp.minimum(pred, kc - 1)
    onehot_p = (lane == pred).astype(jnp.float32)
    probsum = jnp.sum(probs * m, axis=0, keepdims=True)                 # (1, Kc)
    hist = jnp.sum(onehot_p * m, axis=0, keepdims=True)                 # (1, Kc)
    loss_pc = jnp.sum(onehot_t * (-logp) * m, axis=0, keepdims=True)    # (1, Kc)
    hits_pc = jnp.sum(onehot_t * onehot_p * m, axis=0, keepdims=True)   # (1, Kc)
    red_ref[pl.ds(0, 1), :] = probsum
    red_ref[pl.ds(1, 1), :] = hist
    red_ref[pl.ds(2, 1), :] = loss_pc
    red_ref[pl.ds(3, 1), :] = hits_pc


def pallas_classifier_losses(x_stack, w_stack, b_stack, tgt_col, mask_col):
    """All classifier heads + masked reductions in one call.
    x_stack (Kl,N,D) bf16, w (Kl,D,Kc) bf16, b (Kl,1,Kc) f32, tgt (Kl,N,1) i32,
    mask (N,1) f32 -> (Kl, 4, Kc) f32: [probsum, hist, loss_per_class, hits_per_class]."""
    Kl, N, D = x_stack.shape
    Kc = w_stack.shape[-1]
    return pl.pallas_call(
        functools.partial(_cls_loss_kernel, kc=Kc),
        out_shape=jax.ShapeDtypeStruct((Kl, 4, Kc), jnp.float32),
        grid=(Kl,),
        in_specs=[
            pl.BlockSpec((None, N, D), lambda i: (i, 0, 0)),
            pl.BlockSpec((None, D, Kc), lambda i: (i, 0, 0)),
            pl.BlockSpec((None, 1, Kc), lambda i: (i, 0, 0)),
            pl.BlockSpec((None, N, 1), lambda i: (i, 0, 0)),
            pl.BlockSpec((N, 1), lambda i: (0, 0)),
        ],
        out_specs=pl.BlockSpec((None, 4, Kc), lambda i: (i, 0, 0)),
        compiler_params=_cparams(1),
    )(x_stack, w_stack, b_stack, tgt_col, mask_col)


# ----------------------------------------------------------------------------
# Model pieces
# ----------------------------------------------------------------------------

def get_starting_mask_prob(mask_prob, mask_length):
    return mask_prob / mask_length


def out_conv_lengths(lengths, conv_layers):
    L = lengths
    for (_, k, s) in conv_layers:
        L = (L - k) // s + 1
    return L


def fold_conv_weight(w, k, s, cin):
    """(k*Cin, Cout) tap-major weight -> stride-folded (R, s*Cin, Cout)."""
    R = -(-k // s)
    cout = w.shape[-1]
    pad_rows = R * s * cin - k * cin
    if pad_rows:
        w = jnp.concatenate([w, jnp.zeros((pad_rows, cout), w.dtype)], axis=0)
    return w.reshape(R, s * cin, cout)


def init_conv_params(key, conv_layers, dtype):
    params = []
    in_ch = 1
    for idx, (out_ch, k, s) in enumerate(conv_layers):
        kk = jax.random.fold_in(key, idx)
        w = (0.1 * jax.random.normal(kk, (k * in_ch, out_ch), jnp.float32)).astype(dtype)
        p = dict(w_fold=fold_conv_weight(w, k, s, in_ch))
        if idx == 0:   # GroupNorm affine only on layer 0 (extractor_mode='default')
            p["gn_g"] = jnp.ones((out_ch,), jnp.float32)
            p["gn_b"] = jnp.zeros((out_ch,), jnp.float32)
        params.append(p)
        in_ch = out_ch
    return params


def conv_feature_extractor(conv_arrays, conv_layers, waveforms, dtype):
    """wav2vec2-style conv stack, channels-last throughout, no im2col expansion:
    each layer is fed a stride-folded (B, Lout+R-1, s*Cin) view (free reshape)
    and applies the taps in-kernel."""
    x = waveforms[..., None].astype(dtype)                    # (B, L, 1)
    for idx, ((out_ch, k, s), p) in enumerate(zip(conv_layers, conv_arrays)):
        B, L, Cin = x.shape
        Lout = (L - k) // s + 1
        R = -(-k // s)
        Lpad = (Lout + R - 1) * s
        if Lpad > L:
            x = jnp.pad(x, ((0, 0), (0, Lpad - L), (0, 0)))
        elif Lpad < L:
            x = x[:, :Lpad]
        xf = x.reshape(B, Lout + R - 1, s * Cin)              # contiguous, no copy
        gn = (p["gn_g"], p["gn_b"]) if idx == 0 else None
        x = pallas_conv_block(xf, p["w_fold"], Lout, gn=gn)
    return x                                                  # (B, T, C)


def init_transformer_params(key, num_layers, d, ffn_dim, dtype):
    params = []
    for l in range(num_layers):
        keys = jax.random.split(jax.random.fold_in(key, l), 4)
        w = lambda kk, shape: (0.02 * jax.random.normal(kk, shape, jnp.float32)).astype(dtype)
        params.append(dict(
            ln1_g=jnp.ones((d,), jnp.float32), ln1_b=jnp.zeros((d,), jnp.float32),
            wqkv=w(keys[0], (d, 3 * d)), bqkv=jnp.zeros((3 * d,), jnp.float32),
            wo=w(keys[1], (d, d)), bo=jnp.zeros((d,), jnp.float32),
            ln2_g=jnp.ones((d,), jnp.float32), ln2_b=jnp.zeros((d,), jnp.float32),
            w1=w(keys[2], (d, ffn_dim)), b1=jnp.zeros((ffn_dim,), jnp.float32),
            w2=w(keys[3], (ffn_dim, d)), b2=jnp.zeros((d,), jnp.float32),
        ))
    return params


def transformer_forward(layer_params, x_btd, num_heads):
    """Pre-norm transformer encoder.  Returns (x (T,B,D), layer_results) with
    layer_results[i][2] of shape (T, B, D) — the model_creator contract."""
    B, T, D = x_btd.shape
    x = x_btd
    layer_results = []
    for lp in layer_params:
        qkv = pallas_ln_linear(x.reshape(B * T, D), lp["ln1_g"], lp["ln1_b"],
                               lp["wqkv"], lp["bqkv"]).reshape(B, T, 3 * D)
        x = pallas_attention_block(qkv, lp["wo"], lp["bo"], x, num_heads)  # (B,T,D)
        x = pallas_ln_ffn(x.reshape(B * T, D), lp["ln2_g"], lp["ln2_b"],
                          lp["w1"], lp["b1"], lp["w2"], lp["b2"]).reshape(B, T, D)
        layer_results.append((None, None, jnp.transpose(x, (1, 0, 2))))
    return jnp.transpose(x, (1, 0, 2)), layer_results


# ----------------------------------------------------------------------------
# Jitted forward core (fixed-shape; masked reductions instead of row gathers)
# ----------------------------------------------------------------------------

def _forward_core(params, waveforms, lengths, rng_key, *, cfg, conv_layers, only_student):
    D = cfg.encoder_embed_dim
    k_layers = cfg.average_top_k_layers

    feats = conv_feature_extractor(params["conv"], conv_layers, waveforms, _COMPUTE_DTYPE)
    B, T, C = feats.shape
    features = pallas_ln_linear(
        feats.reshape(B * T, C), params["fe_ln_g"], params["fe_ln_b"],
        params["proj_w"], params["proj_b"]).reshape(B, T, D)

    feat_lengths = out_conv_lengths(lengths, conv_layers)

    # span mask (matches the reference; no forced fallback — empty masks only
    # affect the denominators, which are guarded below)
    start_p = get_starting_mask_prob(cfg.mask_prob, cfg.mask_length)
    starting = (jax.random.uniform(rng_key, (B, T)) < start_p).astype(jnp.int32)
    ending = jnp.zeros_like(starting).at[:, cfg.mask_length:].set(
        starting[:, :-cfg.mask_length])
    bases = jnp.cumsum(starting - ending, axis=1) > 0
    included = jnp.arange(T)[None, :] <= feat_lengths[:, None]
    mask = included & bases

    masked_features = features * mask[..., None].astype(features.dtype)
    x_tbd, student_lr_tbd = transformer_forward(
        params["student"], masked_features, cfg.num_heads)
    assert x_tbd.shape == (T, B, D), f"got {x_tbd.shape}, want {(T, B, D)}"
    student_x = jnp.transpose(x_tbd, (1, 0, 2))
    student_lr = [jnp.transpose(lr[2], (1, 0, 2)) for lr in student_lr_tbd]

    out = {
        "out_lengths": feat_lengths,
        "mask": mask,
        "student_x": student_x,
        "student_layer_results": student_lr,
    }
    if only_student:
        return out

    # ----- teacher (frozen copy; stop_gradient mirrors torch.no_grad) -----
    _, teacher_lr_tbd = transformer_forward(params["teacher"], features, cfg.num_heads)
    teacher_stack_btd = jnp.transpose(
        jnp.stack([lr[2] for lr in teacher_lr_tbd]), (0, 2, 1, 3))      # (L, B, T, D)
    teacher_norm = jax.lax.stop_gradient(
        pallas_instance_norm_stack(teacher_stack_btd))                  # (L, B, T, D) f32
    n_layers = len(teacher_lr_tbd)
    teacher_lr = [teacher_norm[i] for i in range(n_layers)]
    # In this encoder the final output y equals the last layer result, so
    # instance_norm(y) == teacher_norm[-1].
    out["teacher_x"] = teacher_norm[-1]
    out["teacher_layer_results"] = teacher_lr

    first = cfg.encoder_layers - k_layers
    teacher_codebook_in = teacher_norm[first:].reshape(k_layers, B * T, D)
    closest = pallas_codebook_closest(teacher_codebook_in, params["codebook"])  # (k, B*T)
    out["closest_full"] = closest

    # classifiers on student layer results 0..k-1 (matches reference indexing),
    # fused with the masked loss reductions — logits never hit HBM.
    student_stack = jnp.stack(student_lr[:k_layers]).reshape(k_layers, B * T, D)
    mask_f = mask.reshape(-1).astype(jnp.float32)
    count = jnp.sum(mask_f)
    count_safe = jnp.maximum(count, 1.0)
    red = pallas_classifier_losses(
        student_stack, params["cls_w"], params["cls_b"],
        closest[..., None], mask_f[:, None])                           # (k, 4, Kc)

    Kc = cfg.codebook_size
    probsum = red[:, 0, :]                       # (k, Kc)
    hist_last = red[-1, 1, :]                    # (Kc,)
    loss = jnp.sum(red[:, 2, :])                 # masked-sum CE over all layers
    acc = jnp.sum(red[:, 3, :]) / count_safe     # sum_j hits_j / count
    cluster_probs = probsum / count_safe
    uniform = 1.0 / Kc
    kl = jnp.sum(uniform * (float(np.log(uniform)) - jnp.log(cluster_probs)))

    out["prob_bins"] = hist_last / count_safe
    out["prob_bins_binary"] = hist_last > 0
    ce_loss = loss / k_layers
    kl_loss = cfg.kl_div_from_uniform_lambda * kl / k_layers
    out["loss"] = ce_loss + kl_loss
    out["cross_entropy_loss"] = ce_loss
    out["kl_divergence_loss"] = kl_loss
    out["accuracy"] = acc / k_layers
    return out


# ----------------------------------------------------------------------------
# DinoSR
# ----------------------------------------------------------------------------

class Config:
    model_type = "transformer"
    encoder_embed_dim = 32
    encoder_layers = 3
    average_top_k_layers = 2
    codebook_size = 16
    conv_feature_layers = "[(32, 3, 2), (32, 3, 2)]"
    extractor_mode = "default"
    mask_prob = 0.65
    mask_length = 2
    dropout = 0.0
    kl_div_from_uniform_lambda = 0.1
    ema_decay = 0.999
    ema_end_decay = 0.9999
    ema_anneal_end_step = 1000
    num_heads = 4
    ffn_dim = 64


class DinoSRPallas:
    def __init__(self, cfg, key):
        self.cfg = cfg
        self.conv_layers = tuple(eval(cfg.conv_feature_layers))
        k_conv, k_proj, k_enc, k_cls, k_cb = jax.random.split(key, 5)

        C = self.conv_layers[-1][0]
        D = cfg.encoder_embed_dim
        K = cfg.codebook_size
        kL = cfg.average_top_k_layers

        conv = init_conv_params(k_conv, self.conv_layers, _COMPUTE_DTYPE)
        student = init_transformer_params(k_enc, cfg.encoder_layers, D, cfg.ffn_dim,
                                          _COMPUTE_DTYPE)
        teacher = jax.tree_util.tree_map(jnp.copy, student)   # real copy, not an alias

        self.params = dict(
            conv=conv,
            fe_ln_g=jnp.ones((C,), jnp.float32),
            fe_ln_b=jnp.zeros((C,), jnp.float32),
            proj_w=(0.02 * jax.random.normal(k_proj, (C, D), jnp.float32)
                    ).astype(_COMPUTE_DTYPE),
            proj_b=jnp.zeros((D,), jnp.float32),
            student=student,
            teacher=teacher,
            cls_w=(0.02 * jax.random.normal(k_cls, (kL, D, K), jnp.float32)
                   ).astype(_COMPUTE_DTYPE),
            cls_b=jnp.zeros((kL, 1, K), jnp.float32),
            codebook=0.5 * jax.random.normal(k_cb, (kL, K, D), jnp.float32),
        )

        self._core_full = jax.jit(functools.partial(
            _forward_core, cfg=cfg, conv_layers=self.conv_layers, only_student=False))
        self._core_student = jax.jit(functools.partial(
            _forward_core, cfg=cfg, conv_layers=self.conv_layers, only_student=True))

    def forward(self, waveforms, lengths, rng_key, only_student=False):
        cfg = self.cfg
        core = self._core_student if only_student else self._core_full
        co = core(self.params, waveforms, jnp.asarray(lengths, jnp.int32), rng_key)

        result = {
            "out_lengths": co["out_lengths"],
            "student": {"x": co["student_x"],
                        "layer_results": co["student_layer_results"]},
        }
        if only_student:
            return result

        result["teacher"] = {"x": co["teacher_x"],
                             "layer_results": co["teacher_layer_results"]}
        for k in ("loss", "cross_entropy_loss", "kl_divergence_loss", "accuracy",
                  "prob_bins", "prob_bins_binary"):
            result[k] = co[k]

        # TODO(synk): variable-length masked-row gathers have no fixed-shape
        # Pallas equivalent; this is the single host sync at the very end.
        D = cfg.encoder_embed_dim
        first = cfg.encoder_layers - cfg.average_top_k_layers
        flat_mask = np.asarray(co["mask"]).reshape(-1)
        closest_all = np.asarray(co["closest_full"])
        result["codebook_update"] = {}
        for j in range(cfg.average_top_k_layers):
            t_full = np.asarray(co["teacher_layer_results"][first + j]).reshape(-1, D)
            result["codebook_update"][j] = {
                "closest_codewords": jnp.asarray(closest_all[j][flat_mask]),
                "flattened_teacher_layer_results": jnp.asarray(t_full[flat_mask]),
            }
        result["targets"] = result["codebook_update"][
            cfg.average_top_k_layers - 1]["closest_codewords"]
        return result


# ----------------------------------------------------------------------------

if __name__ == "__main__":
    cfg = Config()
    key = jax.random.PRNGKey(0)
    k_wave, k_model, k_mask = jax.random.split(key, 3)

    waveforms = jax.random.normal(k_wave, (2, 64), jnp.float32)   # (B=2, L=64)
    lengths = jnp.array([64, 50], jnp.int32)

    model = DinoSRPallas(cfg, k_model)
    result = model.forward(waveforms, lengths, k_mask)

    jax.block_until_ready(result["loss"])
    jax.block_until_ready(result["student"]["x"])
    jax.block_until_ready(result["teacher"]["x"])
    jax.block_until_ready(result["targets"])
    print("KERNEL_OK")
</pallas_src>

<mosaic_0001>
module attributes {stable_mosaic.version = 11 : i64} {
  func.func @_ln_linear_kernel(%arg0: i32, %arg1: memref<30x32xbf16, #tpu.memory_space<vmem>>, %arg2: memref<1x32xf32, #tpu.memory_space<vmem>>, %arg3: memref<1x32xf32, #tpu.memory_space<vmem>>, %arg4: memref<32x96xbf16, #tpu.memory_space<vmem>>, %arg5: memref<1x96xf32, #tpu.memory_space<vmem>>, %arg6: memref<30x96xbf16, #tpu.memory_space<vmem>>) attributes {dimension_semantics = [#tpu.dimension_semantics<parallel>], iteration_bounds = array<i64: 1>, scalar_prefetch = 0 : i64, scratch_operands = 0 : i64, tpu.core_type = #tpu.core_type<tc>, window_params = [{transform_indices = @transform_0, window_bounds = array<i64: 30, 32>}, {pipeline_mode = #tpu.pipeline_mode<synchronous>, transform_indices = @transform_1, window_bounds = array<i64: 1, 32>}, {pipeline_mode = #tpu.pipeline_mode<synchronous>, transform_indices = @transform_2, window_bounds = array<i64: 1, 32>}, {pipeline_mode = #tpu.pipeline_mode<synchronous>, transform_indices = @transform_3, window_bounds = array<i64: 32, 96>}, {pipeline_mode = #tpu.pipeline_mode<synchronous>, transform_indices = @transform_4, window_bounds = array<i64: 1, 96>}, {transform_indices = @transform_5, window_bounds = array<i64: 30, 96>}]} {
    %c0 = arith.constant 0 : index
    %c0_0 = arith.constant 0 : index
    %0 = vector.load %arg1[%c0, %c0_0] : memref<30x32xbf16, #tpu.memory_space<vmem>>, vector<30x32xbf16>
    %1 = arith.extf %0 : vector<30x32xbf16> to vector<30x32xf32>
    %cst = arith.constant dense<0.000000e+00> : vector<30xf32>
    %2 = vector.multi_reduction <add>, %1, %cst [1] : vector<30x32xf32> to vector<30xf32>
    %3 = vector.shape_cast %2 : vector<30xf32> to vector<30x1xf32>
    %cst_1 = arith.constant 3.200000e+01 : f32
    %4 = vector.broadcast %cst_1 : f32 to vector<30x1xf32>
    %5 = arith.divf %3, %4 : vector<30x1xf32>
    %6 = vector.broadcast %5 : vector<30x1xf32> to vector<30x32xf32>
    %7 = arith.subf %1, %6 : vector<30x32xf32>
    %8 = arith.mulf %7, %7 : vector<30x32xf32>
    %cst_2 = arith.constant dense<0.000000e+00> : vector<30xf32>
    %9 = vector.multi_reduction <add>, %8, %cst_2 [1] : vector<30x32xf32> to vector<30xf32>
    %10 = vector.shape_cast %9 : vector<30xf32> to vector<30x1xf32>
    %cst_3 = arith.constant 3.200000e+01 : f32
    %11 = vector.broadcast %cst_3 : f32 to vector<30x1xf32>
    %12 = arith.divf %10, %11 : vector<30x1xf32>
    %13 = vector.broadcast %5 : vector<30x1xf32> to vector<30x32xf32>
    %14 = arith.subf %1, %13 : vector<30x32xf32>
    %cst_4 = arith.constant 9.99999974E-6 : f32
    %15 = vector.broadcast %cst_4 : f32 to vector<30x1xf32>
    %16 = arith.addf %12, %15 : vector<30x1xf32>
    %17 = math.rsqrt %16 : vector<30x1xf32>
    %18 = vector.broadcast %17 : vector<30x1xf32> to vector<30x32xf32>
    %19 = arith.mulf %14, %18 : vector<30x32xf32>
    %c0_5 = arith.constant 0 : index
    %c0_6 = arith.constant 0 : index
    %20 = vector.load %arg2[%c0_5, %c0_6] : memref<1x32xf32, #tpu.memory_space<vmem>>, vector<1x32xf32>
    %21 = vector.broadcast %20 : vector<1x32xf32> to vector<30x32xf32>
    %22 = arith.mulf %19, %21 : vector<30x32xf32>
    %c0_7 = arith.constant 0 : index
    %c0_8 = arith.constant 0 : index
    %23 = vector.load %arg3[%c0_7, %c0_8] : memref<1x32xf32, #tpu.memory_space<vmem>>, vector<1x32xf32>
    %24 = vector.broadcast %23 : vector<1x32xf32> to vector<30x32xf32>
    %25 = arith.addf %22, %24 : vector<30x32xf32>
    %26 = arith.truncf %25 : vector<30x32xf32> to vector<30x32xbf16>
    %c0_9 = arith.constant 0 : index
    %c0_10 = arith.constant 0 : index
    %27 = vector.load %arg4[%c0_9, %c0_10] : memref<32x96xbf16, #tpu.memory_space<vmem>>, vector<32x96xbf16>
    %cst_11 = arith.constant dense<0.000000e+00> : vector<30x96xf32>
    %28 = tpu.matmul %26, %27, %cst_11 {dimension_numbers = #tpu.dot_dimension_numbers<[1], [0], [0], [1], [0, 0, 1, 1], [], []>} : vector<30x32xbf16>, vector<32x96xbf16>, vector<30x96xf32> -> vector<30x96xf32>
    %c0_12 = arith.constant 0 : index
    %c0_13 = arith.constant 0 : index
    %29 = vector.load %arg5[%c0_12, %c0_13] : memref<1x96xf32, #tpu.memory_space<vmem>>, vector<1x96xf32>
    %30 = vector.broadcast %29 : vector<1x96xf32> to vector<30x96xf32>
    %31 = arith.addf %28, %30 : vector<30x96xf32>
    %32 = arith.truncf %31 : vector<30x96xf32> to vector<30x96xbf16>
    %c0_14 = arith.constant 0 : index
    %c0_15 = arith.constant 0 : index
    %33 = vector.load %arg6[%c0_14, %c0_15] : memref<30x96xbf16, #tpu.memory_space<vmem>>, vector<30x96xbf16>
    tpu.vector_store %arg6[%c0_14, %c0_15], %32 {strides = array<i32>} : memref<30x96xbf16, #tpu.memory_space<vmem>>, vector<30x96xbf16>,
    return
  }
  func.func @transform_0(%arg0: i32) -> (i32, i32) {
    %c0_i32 = arith.constant 0 : i32
    %c0_i32_0 = arith.constant 0 : i32
    return %arg0, %c0_i32 : i32, i32
  }
  func.func @transform_1(%arg0: i32) -> (i32, i32) {
    %c0_i32 = arith.constant 0 : i32
    %c0_i32_0 = arith.constant 0 : i32
    %c0_i32_1 = arith.constant 0 : i32
    return %c0_i32, %c0_i32_0 : i32, i32
  }
  func.func @transform_2(%arg0: i32) -> (i32, i32) {
    %c0_i32 = arith.constant 0 : i32
    %c0_i32_0 = arith.constant 0 : i32
    %c0_i32_1 = arith.constant 0 : i32
    return %c0_i32, %c0_i32_0 : i32, i32
  }
  func.func @transform_3(%arg0: i32) -> (i32, i32) {
    %c0_i32 = arith.constant 0 : i32
    %c0_i32_0 = arith.constant 0 : i32
    %c0_i32_1 = arith.constant 0 : i32
    return %c0_i32, %c0_i32_0 : i32, i32
  }
  func.func @transform_4(%arg0: i32) -> (i32, i32) {
    %c0_i32 = arith.constant 0 : i32
    %c0_i32_0 = arith.constant 0 : i32
    %c0_i32_1 = arith.constant 0 : i32
    return %c0_i32, %c0_i32_0 : i32, i32
  }
  func.func @transform_5(%arg0: i32) -> (i32, i32) {
    %c0_i32 = arith.constant 0 : i32
    %c0_i32_0 = arith.constant 0 : i32
    return %arg0, %c0_i32 : i32, i32
  }
}

module attributes {stable_mosaic.version = 11 : i64} {
  func.func @_conv_kernel(%arg0: i32, %arg1: memref<1x32x2xbf16, #tpu.memory_space<vmem>>, %arg2: memref<2x2x32xbf16, #tpu.memory_space<vmem>>, %arg3: memref<1x32xf32, #tpu.memory_space<vmem>>, %arg4: memref<1x32xf32, #tpu.memory_space<vmem>>, %arg5: memref<1x31x32xbf16, #tpu.memory_space<vmem>>) attributes {dimension_semantics = [#tpu.dimension_semantics<parallel>], iteration_bounds = array<i64: 2>, scalar_prefetch = 0 : i64, scratch_operands = 0 : i64, tpu.core_type = #tpu.core_type<tc>, window_params = [{transform_indices = @transform_0, window_bounds = array<i64: 1, 32, 2>}, {pipeline_mode = #tpu.pipeline_mode<synchronous>, transform_indices = @transform_1, window_bounds = array<i64: 2, 2, 32>}, {pipeline_mode = #tpu.pipeline_mode<synchronous>, transform_indices = @transform_2, window_bounds = array<i64: 1, 32>}, {pipeline_mode = #tpu.pipeline_mode<synchronous>, transform_indices = @transform_3, window_bounds = array<i64: 1, 32>}, {transform_indices = @transform_4, window_bounds = array<i64: 1, 31, 32>}]} {
    %c0 = arith.constant 0 : index
    %c0_0 = arith.constant 0 : index
    %c0_1 = arith.constant 0 : index
    %0 = vector.load %arg1[%c0, %c0_0, %c0_1] : memref<1x32x2xbf16, #tpu.memory_space<vmem>>, vector<1x32x2xbf16>
    %1 = vector.shape_cast %0 : vector<1x32x2xbf16> to vector<32x2xbf16>
    %cst = arith.constant 0.000000e+00 : f32
    %2 = vector.broadcast %cst : f32 to vector<31x32xf32>
    %3 = vector.extract_strided_slice %1 {offsets = [0, 0], sizes = [31, 2], strides = [1, 1]} : vector<32x2xbf16> to vector<31x2xbf16>
    %c0_2 = arith.constant 0 : index
    %c0_3 = arith.constant 0 : index
    %c0_4 = arith.constant 0 : index
    %4 = vector.load %arg2[%c0_2, %c0_3, %c0_4] : memref<2x2x32xbf16, #tpu.memory_space<vmem>>, vector<1x2x32xbf16>
    %5 = vector.shape_cast %4 : vector<1x2x32xbf16> to vector<2x32xbf16>
    %cst_5 = arith.constant dense<0.000000e+00> : vector<31x32xf32>
    %6 = tpu.matmul %3, %5, %cst_5 {dimension_numbers = #tpu.dot_dimension_numbers<[1], [0], [0], [1], [0, 0, 1, 1], [], []>} : vector<31x2xbf16>, vector<2x32xbf16>, vector<31x32xf32> -> vector<31x32xf32>
    %7 = arith.addf %2, %6 : vector<31x32xf32>
    %8 = vector.extract_strided_slice %1 {offsets = [1, 0], sizes = [31, 2], strides = [1, 1]} : vector<32x2xbf16> to vector<31x2xbf16>
    %c1 = arith.constant 1 : index
    %c0_6 = arith.constant 0 : index
    %c0_7 = arith.constant 0 : index
    %9 = vector.load %arg2[%c1, %c0_6, %c0_7] : memref<2x2x32xbf16, #tpu.memory_space<vmem>>, vector<1x2x32xbf16>
    %10 = vector.shape_cast %9 : vector<1x2x32xbf16> to vector<2x32xbf16>
    %cst_8 = arith.constant dense<0.000000e+00> : vector<31x32xf32>
    %11 = tpu.matmul %8, %10, %cst_8 {dimension_numbers = #tpu.dot_dimension_numbers<[1], [0], [0], [1], [0, 0, 1, 1], [], []>} : vector<31x2xbf16>, vector<2x32xbf16>, vector<31x32xf32> -> vector<31x32xf32>
    %12 = arith.addf %7, %11 : vector<31x32xf32>
    %cst_9 = arith.constant dense<0.000000e+00> : vector<32xf32>
    %13 = vector.multi_reduction <add>, %12, %cst_9 [0] : vector<31x32xf32> to vector<32xf32>
    %14 = vector.shape_cast %13 : vector<32xf32> to vector<1x32xf32>
    %cst_10 = arith.constant 3.100000e+01 : f32
    %15 = vector.broadcast %cst_10 : f32 to vector<1x32xf32>
    %16 = arith.divf %14, %15 : vector<1x32xf32>
    %17 = vector.broadcast %16 : vector<1x32xf32> to vector<31x32xf32>
    %18 = arith.subf %12, %17 : vector<31x32xf32>
    %19 = arith.mulf %18, %18 : vector<31x32xf32>
    %cst_11 = arith.constant dense<0.000000e+00> : vector<32xf32>
    %20 = vector.multi_reduction <add>, %19, %cst_11 [0] : vector<31x32xf32> to vector<32xf32>
    %21 = vector.shape_cast %20 : vector<32xf32> to vector<1x32xf32>
    %cst_12 = arith.constant 3.100000e+01 : f32
    %22 = vector.broadcast %cst_12 : f32 to vector<1x32xf32>
    %23 = arith.divf %21, %22 : vector<1x32xf32>
    %24 = vector.broadcast %16 : vector<1x32xf32> to vector<31x32xf32>
    %25 = arith.subf %12, %24 : vector<31x32xf32>
    %cst_13 = arith.constant 9.99999974E-6 : f32
    %26 = vector.broadcast %cst_13 : f32 to vector<1x32xf32>
    %27 = arith.addf %23, %26 : vector<1x32xf32>
    %28 = math.rsqrt %27 : vector<1x32xf32>
    %29 = vector.broadcast %28 : vector<1x32xf32> to vector<31x32xf32>
    %30 = arith.mulf %25, %29 : vector<31x32xf32>
    %c0_14 = arith.constant 0 : index
    %c0_15 = arith.constant 0 : index
    %31 = vector.load %arg3[%c0_14, %c0_15] : memref<1x32xf32, #tpu.memory_space<vmem>>, vector<1x32xf32>
    %32 = vector.broadcast %31 : vector<1x32xf32> to vector<31x32xf32>
    %33 = arith.mulf %30, %32 : vector<31x32xf32>
    %c0_16 = arith.constant 0 : index
    %c0_17 = arith.constant 0 : index
    %34 = vector.load %arg4[%c0_16, %c0_17] : memref<1x32xf32, #tpu.memory_space<vmem>>, vector<1x32xf32>
    %35 = vector.broadcast %34 : vector<1x32xf32> to vector<31x32xf32>
    %36 = arith.addf %33, %35 : vector<31x32xf32>
    %37 = arith.mulf %36, %36 : vector<31x32xf32>
    %38 = arith.mulf %36, %37 : vector<31x32xf32>
    %cst_18 = arith.constant 4.471500e-02 : f32
    %39 = vector.broadcast %cst_18 : f32 to vector<31x32xf32>
    %40 = arith.mulf %39, %38 : vector<31x32xf32>
    %41 = arith.addf %36, %40 : vector<31x32xf32>
    %cst_19 = arith.constant 0.797884583 : f32
    %42 = vector.broadcast %cst_19 : f32 to vector<31x32xf32>
    %43 = arith.mulf %42, %41 : vector<31x32xf32>
    %44 = math.tanh %43 : vector<31x32xf32>
    %cst_20 = arith.constant 1.000000e+00 : f32
    %45 = vector.broadcast %cst_20 : f32 to vector<31x32xf32>
    %46 = arith.addf %45, %44 : vector<31x32xf32>
    %cst_21 = arith.constant 5.000000e-01 : f32
    %47 = vector.broadcast %cst_21 : f32 to vector<31x32xf32>
    %48 = arith.mulf %47, %46 : vector<31x32xf32>
    %49 = arith.mulf %36, %48 : vector<31x32xf32>
    %50 = arith.truncf %49 : vector<31x32xf32> to vector<31x32xbf16>
    %c0_22 = arith.constant 0 : index
    %c0_23 = arith.constant 0 : index
    %c0_24 = arith.constant 0 : index
    %51 = vector.load %arg5[%c0_22, %c0_23, %c0_24] : memref<1x31x32xbf16, #tpu.memory_space<vmem>>, vector<1x31x32xbf16>
    %52 = vector.shape_cast %51 : vector<1x31x32xbf16> to vector<31x32xbf16>
    %53 = vector.shape_cast %50 : vector<31x32xbf16> to vector<1x31x32xbf16>
    tpu.vector_store %arg5[%c0_22, %c0_23, %c0_24], %53 {strides = array<i32>} : memref<1x31x32xbf16, #tpu.memory_space<vmem>>, vector<1x31x32xbf16>,
    return
  }
  func.func @transform_0(%arg0: i32) -> (i32, i32, i32) {
    %c0_i32 = arith.constant 0 : i32
    %c0_i32_0 = arith.constant 0 : i32
    %c0_i32_1 = arith.constant 0 : i32
    return %arg0, %c0_i32, %c0_i32_0 : i32, i32, i32
  }
  func.func @transform_1(%arg0: i32) -> (i32, i32, i32) {
    %c0_i32 = arith.constant 0 : i32
    %c0_i32_0 = arith.constant 0 : i32
    %c0_i32_1 = arith.constant 0 : i32
    %c0_i32_2 = arith.constant 0 : i32
    return %c0_i32, %c0_i32_0, %c0_i32_1 : i32, i32, i32
  }
  func.func @transform_2(%arg0: i32) -> (i32, i32) {
    %c0_i32 = arith.constant 0 : i32
    %c0_i32_0 = arith.constant 0 : i32
    %c0_i32_1 = arith.constant 0 : i32
    return %c0_i32, %c0_i32_0 : i32, i32
  }
  func.func @transform_3(%arg0: i32) -> (i32, i32) {
    %c0_i32 = arith.constant 0 : i32
    %c0_i32_0 = arith.constant 0 : i32
    %c0_i32_1 = arith.constant 0 : i32
    return %c0_i32, %c0_i32_0 : i32, i32
  }
  func.func @transform_4(%arg0: i32) -> (i32, i32, i32) {
    %c0_i32 = arith.constant 0 : i32
    %c0_i32_0 = arith.constant 0 : i32
    %c0_i32_1 = arith.constant 0 : i32
    return %arg0, %c0_i32, %c0_i32_0 : i32, i32, i32
  }
}

module attributes {stable_mosaic.version = 11 : i64} {
  func.func @_conv_kernel(%arg0: i32, %arg1: memref<1x16x64xbf16, #tpu.memory_space<vmem>>, %arg2: memref<2x64x32xbf16, #tpu.memory_space<vmem>>, %arg3: memref<1x15x32xbf16, #tpu.memory_space<vmem>>) attributes {dimension_semantics = [#tpu.dimension_semantics<parallel>], iteration_bounds = array<i64: 2>, scalar_prefetch = 0 : i64, scratch_operands = 0 : i64, tpu.core_type = #tpu.core_type<tc>, window_params = [{transform_indices = @transform_0, window_bounds = array<i64: 1, 16, 64>}, {pipeline_mode = #tpu.pipeline_mode<synchronous>, transform_indices = @transform_1, window_bounds = array<i64: 2, 64, 32>}, {transform_indices = @transform_2, window_bounds = array<i64: 1, 15, 32>}]} {
    %c0 = arith.constant 0 : index
    %c0_0 = arith.constant 0 : index
    %c0_1 = arith.constant 0 : index
    %0 = vector.load %arg1[%c0, %c0_0, %c0_1] : memref<1x16x64xbf16, #tpu.memory_space<vmem>>, vector<1x16x64xbf16>
    %1 = vector.shape_cast %0 : vector<1x16x64xbf16> to vector<16x64xbf16>
    %cst = arith.constant 0.000000e+00 : f32
    %2 = vector.broadcast %cst : f32 to vector<15x32xf32>
    %3 = vector.extract_strided_slice %1 {offsets = [0, 0], sizes = [15, 64], strides = [1, 1]} : vector<16x64xbf16> to vector<15x64xbf16>
    %c0_2 = arith.constant 0 : index
    %c0_3 = arith.constant 0 : index
    %c0_4 = arith.constant 0 : index
    %4 = vector.load %arg2[%c0_2, %c0_3, %c0_4] : memref<2x64x32xbf16, #tpu.memory_space<vmem>>, vector<1x64x32xbf16>
    %5 = vector.shape_cast %4 : vector<1x64x32xbf16> to vector<64x32xbf16>
    %cst_5 = arith.constant dense<0.000000e+00> : vector<15x32xf32>
    %6 = tpu.matmul %3, %5, %cst_5 {dimension_numbers = #tpu.dot_dimension_numbers<[1], [0], [0], [1], [0, 0, 1, 1], [], []>} : vector<15x64xbf16>, vector<64x32xbf16>, vector<15x32xf32> -> vector<15x32xf32>
    %7 = arith.addf %2, %6 : vector<15x32xf32>
    %8 = vector.extract_strided_slice %1 {offsets = [1, 0], sizes = [15, 64], strides = [1, 1]} : vector<16x64xbf16> to vector<15x64xbf16>
    %c1 = arith.constant 1 : index
    %c0_6 = arith.constant 0 : index
    %c0_7 = arith.constant 0 : index
    %9 = vector.load %arg2[%c1, %c0_6, %c0_7] : memref<2x64x32xbf16, #tpu.memory_space<vmem>>, vector<1x64x32xbf16>
    %10 = vector.shape_cast %9 : vector<1x64x32xbf16> to vector<64x32xbf16>
    %cst_8 = arith.constant dense<0.000000e+00> : vector<15x32xf32>
    %11 = tpu.matmul %8, %10, %cst_8 {dimension_numbers = #tpu.dot_dimension_numbers<[1], [0], [0], [1], [0, 0, 1, 1], [], []>} : vector<15x64xbf16>, vector<64x32xbf16>, vector<15x32xf32> -> vector<15x32xf32>
    %12 = arith.addf %7, %11 : vector<15x32xf32>
    %13 = arith.mulf %12, %12 : vector<15x32xf32>
    %14 = arith.mulf %12, %13 : vector<15x32xf32>
    %cst_9 = arith.constant 4.471500e-02 : f32
    %15 = vector.broadcast %cst_9 : f32 to vector<15x32xf32>
    %16 = arith.mulf %15, %14 : vector<15x32xf32>
    %17 = arith.addf %12, %16 : vector<15x32xf32>
    %cst_10 = arith.constant 0.797884583 : f32
    %18 = vector.broadcast %cst_10 : f32 to vector<15x32xf32>
    %19 = arith.mulf %18, %17 : vector<15x32xf32>
    %20 = math.tanh %19 : vector<15x32xf32>
    %cst_11 = arith.constant 1.000000e+00 : f32
    %21 = vector.broadcast %cst_11 : f32 to vector<15x32xf32>
    %22 = arith.addf %21, %20 : vector<15x32xf32>
    %cst_12 = arith.constant 5.000000e-01 : f32
    %23 = vector.broadcast %cst_12 : f32 to vector<15x32xf32>
    %24 = arith.mulf %23, %22 : vector<15x32xf32>
    %25 = arith.mulf %12, %24 : vector<15x32xf32>
    %26 = arith.truncf %25 : vector<15x32xf32> to vector<15x32xbf16>
    %c0_13 = arith.constant 0 : index
    %c0_14 = arith.constant 0 : index
    %c0_15 = arith.constant 0 : index
    %27 = vector.load %arg3[%c0_13, %c0_14, %c0_15] : memref<1x15x32xbf16, #tpu.memory_space<vmem>>, vector<1x15x32xbf16>
    %28 = vector.shape_cast %27 : vector<1x15x32xbf16> to vector<15x32xbf16>
    %29 = vector.shape_cast %26 : vector<15x32xbf16> to vector<1x15x32xbf16>
    tpu.vector_store %arg3[%c0_13, %c0_14, %c0_15], %29 {strides = array<i32>} : memref<1x15x32xbf16, #tpu.memory_space<vmem>>, vector<1x15x32xbf16>,
    return
  }
  func.func @transform_0(%arg0: i32) -> (i32, i32, i32) {
    %c0_i32 = arith.constant 0 : i32
    %c0_i32_0 = arith.constant 0 : i32
    %c0_i32_1 = arith.constant 0 : i32
    return %arg0, %c0_i32, %c0_i32_0 : i32, i32, i32
  }
  func.func @transform_1(%arg0: i32) -> (i32, i32, i32) {
    %c0_i32 = arith.constant 0 : i32
    %c0_i32_0 = arith.constant 0 : i32
    %c0_i32_1 = arith.constant 0 : i32
    %c0_i32_2 = arith.constant 0 : i32
    return %c0_i32, %c0_i32_0, %c0_i32_1 : i32, i32, i32
  }
  func.func @transform_2(%arg0: i32) -> (i32, i32, i32) {
    %c0_i32 = arith.constant 0 : i32
    %c0_i32_0 = arith.constant 0 : i32
    %c0_i32_1 = arith.constant 0 : i32
    return %arg0, %c0_i32, %c0_i32_0 : i32, i32, i32
  }
}

module attributes {stable_mosaic.version = 11 : i64} {
  func.func @_ln_linear_kernel(%arg0: i32, %arg1: memref<30x32xbf16, #tpu.memory_space<vmem>>, %arg2: memref<1x32xf32, #tpu.memory_space<vmem>>, %arg3: memref<1x32xf32, #tpu.memory_space<vmem>>, %arg4: memref<32x32xbf16, #tpu.memory_space<vmem>>, %arg5: memref<1x32xf32, #tpu.memory_space<vmem>>, %arg6: memref<30x32xbf16, #tpu.memory_space<vmem>>) attributes {dimension_semantics = [#tpu.dimension_semantics<parallel>], iteration_bounds = array<i64: 1>, scalar_prefetch = 0 : i64, scratch_operands = 0 : i64, tpu.core_type = #tpu.core_type<tc>, window_params = [{transform_indices = @transform_0, window_bounds = array<i64: 30, 32>}, {pipeline_mode = #tpu.pipeline_mode<synchronous>, transform_indices = @transform_1, window_bounds = array<i64: 1, 32>}, {pipeline_mode = #tpu.pipeline_mode<synchronous>, transform_indices = @transform_2, window_bounds = array<i64: 1, 32>}, {pipeline_mode = #tpu.pipeline_mode<synchronous>, transform_indices = @transform_3, window_bounds = array<i64: 32, 32>}, {pipeline_mode = #tpu.pipeline_mode<synchronous>, transform_indices = @transform_4, window_bounds = array<i64: 1, 32>}, {transform_indices = @transform_5, window_bounds = array<i64: 30, 32>}]} {
    %c0 = arith.constant 0 : index
    %c0_0 = arith.constant 0 : index
    %0 = vector.load %arg1[%c0, %c0_0] : memref<30x32xbf16, #tpu.memory_space<vmem>>, vector<30x32xbf16>
    %1 = arith.extf %0 : vector<30x32xbf16> to vector<30x32xf32>
    %cst = arith.constant dense<0.000000e+00> : vector<30xf32>
    %2 = vector.multi_reduction <add>, %1, %cst [1] : vector<30x32xf32> to vector<30xf32>
    %3 = vector.shape_cast %2 : vector<30xf32> to vector<30x1xf32>
    %cst_1 = arith.constant 3.200000e+01 : f32
    %4 = vector.broadcast %cst_1 : f32 to vector<30x1xf32>
    %5 = arith.divf %3, %4 : vector<30x1xf32>
    %6 = vector.broadcast %5 : vector<30x1xf32> to vector<30x32xf32>
    %7 = arith.subf %1, %6 : vector<30x32xf32>
    %8 = arith.mulf %7, %7 : vector<30x32xf32>
    %cst_2 = arith.constant dense<0.000000e+00> : vector<30xf32>
    %9 = vector.multi_reduction <add>, %8, %cst_2 [1] : vector<30x32xf32> to vector<30xf32>
    %10 = vector.shape_cast %9 : vector<30xf32> to vector<30x1xf32>
    %cst_3 = arith.constant 3.200000e+01 : f32
    %11 = vector.broadcast %cst_3 : f32 to vector<30x1xf32>
    %12 = arith.divf %10, %11 : vector<30x1xf32>
    %13 = vector.broadcast %5 : vector<30x1xf32> to vector<30x32xf32>
    %14 = arith.subf %1, %13 : vector<30x32xf32>
    %cst_4 = arith.constant 9.99999974E-6 : f32
    %15 = vector.broadcast %cst_4 : f32 to vector<30x1xf32>
    %16 = arith.addf %12, %15 : vector<30x1xf32>
    %17 = math.rsqrt %16 : vector<30x1xf32>
    %18 = vector.broadcast %17 : vector<30x1xf32> to vector<30x32xf32>
    %19 = arith.mulf %14, %18 : vector<30x32xf32>
    %c0_5 = arith.constant 0 : index
    %c0_6 = arith.constant 0 : index
    %20 = vector.load %arg2[%c0_5, %c0_6] : memref<1x32xf32, #tpu.memory_space<vmem>>, vector<1x32xf32>
    %21 = vector.broadcast %20 : vector<1x32xf32> to vector<30x32xf32>
    %22 = arith.mulf %19, %21 : vector<30x32xf32>
    %c0_7 = arith.constant 0 : index
    %c0_8 = arith.constant 0 : index
    %23 = vector.load %arg3[%c0_7, %c0_8] : memref<1x32xf32, #tpu.memory_space<vmem>>, vector<1x32xf32>
    %24 = vector.broadcast %23 : vector<1x32xf32> to vector<30x32xf32>
    %25 = arith.addf %22, %24 : vector<30x32xf32>
    %26 = arith.truncf %25 : vector<30x32xf32> to vector<30x32xbf16>
    %c0_9 = arith.constant 0 : index
    %c0_10 = arith.constant 0 : index
    %27 = vector.load %arg4[%c0_9, %c0_10] : memref<32x32xbf16, #tpu.memory_space<vmem>>, vector<32x32xbf16>
    %cst_11 = arith.constant dense<0.000000e+00> : vector<30x32xf32>
    %28 = tpu.matmul %26, %27, %cst_11 {dimension_numbers = #tpu.dot_dimension_numbers<[1], [0], [0], [1], [0, 0, 1, 1], [], []>} : vector<30x32xbf16>, vector<32x32xbf16>, vector<30x32xf32> -> vector<30x32xf32>
    %c0_12 = arith.constant 0 : index
    %c0_13 = arith.constant 0 : index
    %29 = vector.load %arg5[%c0_12, %c0_13] : memref<1x32xf32, #tpu.memory_space<vmem>>, vector<1x32xf32>
    %30 = vector.broadcast %29 : vector<1x32xf32> to vector<30x32xf32>
    %31 = arith.addf %28, %30 : vector<30x32xf32>
    %32 = arith.truncf %31 : vector<30x32xf32> to vector<30x32xbf16>
    %c0_14 = arith.constant 0 : index
    %c0_15 = arith.constant 0 : index
    %33 = vector.load %arg6[%c0_14, %c0_15] : memref<30x32xbf16, #tpu.memory_space<vmem>>, vector<30x32xbf16>
    tpu.vector_store %arg6[%c0_14, %c0_15], %32 {strides = array<i32>} : memref<30x32xbf16, #tpu.memory_space<vmem>>, vector<30x32xbf16>,
    return
  }
  func.func @transform_0(%arg0: i32) -> (i32, i32) {
    %c0_i32 = arith.constant 0 : i32
    %c0_i32_0 = arith.constant 0 : i32
    return %arg0, %c0_i32 : i32, i32
  }
  func.func @transform_1(%arg0: i32) -> (i32, i32) {
    %c0_i32 = arith.constant 0 : i32
    %c0_i32_0 = arith.constant 0 : i32
    %c0_i32_1 = arith.constant 0 : i32
    return %c0_i32, %c0_i32_0 : i32, i32
  }
  func.func @transform_2(%arg0: i32) -> (i32, i32) {
    %c0_i32 = arith.constant 0 : i32
    %c0_i32_0 = arith.constant 0 : i32
    %c0_i32_1 = arith.constant 0 : i32
    return %c0_i32, %c0_i32_0 : i32, i32
  }
  func.func @transform_3(%arg0: i32) -> (i32, i32) {
    %c0_i32 = arith.constant 0 : i32
    %c0_i32_0 = arith.constant 0 : i32
    %c0_i32_1 = arith.constant 0 : i32
    return %c0_i32, %c0_i32_0 : i32, i32
  }
  func.func @transform_4(%arg0: i32) -> (i32, i32) {
    %c0_i32 = arith.constant 0 : i32
    %c0_i32_0 = arith.constant 0 : i32
    %c0_i32_1 = arith.constant 0 : i32
    return %c0_i32, %c0_i32_0 : i32, i32
  }
  func.func @transform_5(%arg0: i32) -> (i32, i32) {
    %c0_i32 = arith.constant 0 : i32
    %c0_i32_0 = arith.constant 0 : i32
    return %arg0, %c0_i32 : i32, i32
  }
}

module attributes {stable_mosaic.version = 11 : i64} {
  func.func @_attn_out_kernel(%arg0: i32, %arg1: memref<1x15x96xbf16, #tpu.memory_space<vmem>>, %arg2: memref<32x32xbf16, #tpu.memory_space<vmem>>, %arg3: memref<1x32xf32, #tpu.memory_space<vmem>>, %arg4: memref<1x15x32xbf16, #tpu.memory_space<vmem>>, %arg5: memref<1x15x32xbf16, #tpu.memory_space<vmem>>) attributes {dimension_semantics = [#tpu.dimension_semantics<parallel>], iteration_bounds = array<i64: 2>, scalar_prefetch = 0 : i64, scratch_operands = 0 : i64, tpu.core_type = #tpu.core_type<tc>, window_params = [{transform_indices = @transform_0, window_bounds = array<i64: 1, 15, 96>}, {pipeline_mode = #tpu.pipeline_mode<synchronous>, transform_indices = @transform_1, window_bounds = array<i64: 32, 32>}, {pipeline_mode = #tpu.pipeline_mode<synchronous>, transform_indices = @transform_2, window_bounds = array<i64: 1, 32>}, {transform_indices = @transform_3, window_bounds = array<i64: 1, 15, 32>}, {transform_indices = @transform_4, window_bounds = array<i64: 1, 15, 32>}]} {
    %c0 = arith.constant 0 : index
    %c0_0 = arith.constant 0 : index
    %c0_1 = arith.constant 0 : index
    %0 = vector.load %arg1[%c0, %c0_0, %c0_1] : memref<1x15x96xbf16, #tpu.memory_space<vmem>>, vector<1x15x96xbf16>
    %1 = vector.shape_cast %0 : vector<1x15x96xbf16> to vector<15x96xbf16>
    %2 = vector.extract_strided_slice %1 {offsets = [0, 0], sizes = [15, 32], strides = [1, 1]} : vector<15x96xbf16> to vector<15x32xbf16>
    %3 = vector.extract_strided_slice %1 {offsets = [0, 32], sizes = [15, 32], strides = [1, 1]} : vector<15x96xbf16> to vector<15x32xbf16>
    %4 = vector.extract_strided_slice %1 {offsets = [0, 64], sizes = [15, 32], strides = [1, 1]} : vector<15x96xbf16> to vector<15x32xbf16>
    %c0_2 = arith.constant 0 : index
    %c0_3 = arith.constant 0 : index
    %5 = vector.load %arg2[%c0_2, %c0_3] : memref<32x32xbf16, #tpu.memory_space<vmem>>, vector<32x32xbf16>
    %cst = arith.constant 0.000000e+00 : f32
    %6 = vector.broadcast %cst : f32 to vector<15x32xf32>
    %7 = vector.extract_strided_slice %2 {offsets = [0, 0], sizes = [15, 8], strides = [1, 1]} : vector<15x32xbf16> to vector<15x8xbf16>
    %8 = vector.extract_strided_slice %3 {offsets = [0, 0], sizes = [15, 8], strides = [1, 1]} : vector<15x32xbf16> to vector<15x8xbf16>
    %9 = vector.extract_strided_slice %4 {offsets = [0, 0], sizes = [15, 8], strides = [1, 1]} : vector<15x32xbf16> to vector<15x8xbf16>
    %cst_4 = arith.constant dense<0.000000e+00> : vector<15x15xf32>
    %10 = tpu.matmul %7, %8, %cst_4 {dimension_numbers = #tpu.dot_dimension_numbers<[1], [1], [0], [0], [0, 0, 1, 0], [], []>} : vector<15x8xbf16>, vector<15x8xbf16>, vector<15x15xf32> -> vector<15x15xf32>
    %cst_5 = arith.constant 0.353553385 : f32
    %11 = vector.broadcast %cst_5 : f32 to vector<15x15xf32>
    %12 = arith.mulf %10, %11 : vector<15x15xf32>
    %cst_6 = arith.constant dense<0xFF800000> : vector<15xf32>
    %13 = vector.multi_reduction <maximumf>, %12, %cst_6 [1] : vector<15x15xf32> to vector<15xf32>
    %14 = vector.shape_cast %13 : vector<15xf32> to vector<15x1xf32>
    %15 = vector.broadcast %14 : vector<15x1xf32> to vector<15x15xf32>
    %16 = arith.subf %12, %15 : vector<15x15xf32>
    %17 = math.exp %16 : vector<15x15xf32>
    %cst_7 = arith.constant dense<0.000000e+00> : vector<15xf32>
    %18 = vector.multi_reduction <add>, %17, %cst_7 [1] : vector<15x15xf32> to vector<15xf32>
    %19 = vector.shape_cast %18 : vector<15xf32> to vector<15x1xf32>
    %20 = tpu.reciprocal %19 {approx = true} : vector<15x1xf32> -> vector<15x1xf32>
    %21 = vector.broadcast %20 : vector<15x1xf32> to vector<15x15xf32>
    %22 = arith.mulf %17, %21 : vector<15x15xf32>
    %23 = arith.truncf %22 : vector<15x15xf32> to vector<15x15xbf16>
    %cst_8 = arith.constant dense<0.000000e+00> : vector<15x8xf32>
    %24 = tpu.matmul %23, %9, %cst_8 {dimension_numbers = #tpu.dot_dimension_numbers<[1], [0], [0], [1], [0, 0, 1, 1], [], []>} : vector<15x15xbf16>, vector<15x8xbf16>, vector<15x8xf32> -> vector<15x8xf32>
    %25 = arith.truncf %24 : vector<15x8xf32> to vector<15x8xbf16>
    %26 = vector.extract_strided_slice %5 {offsets = [0, 0], sizes = [8, 32], strides = [1, 1]} : vector<32x32xbf16> to vector<8x32xbf16>
    %cst_9 = arith.constant dense<0.000000e+00> : vector<15x32xf32>
    %27 = tpu.matmul %25, %26, %cst_9 {dimension_numbers = #tpu.dot_dimension_numbers<[1], [0], [0], [1], [0, 0, 1, 1], [], []>} : vector<15x8xbf16>, vector<8x32xbf16>, vector<15x32xf32> -> vector<15x32xf32>
    %28 = arith.addf %6, %27 : vector<15x32xf32>
    %29 = vector.extract_strided_slice %2 {offsets = [0, 8], sizes = [15, 8], strides = [1, 1]} : vector<15x32xbf16> to vector<15x8xbf16>
    %30 = vector.extract_strided_slice %3 {offsets = [0, 8], sizes = [15, 8], strides = [1, 1]} : vector<15x32xbf16> to vector<15x8xbf16>
    %31 = vector.extract_strided_slice %4 {offsets = [0, 8], sizes = [15, 8], strides = [1, 1]} : vector<15x32xbf16> to vector<15x8xbf16>
    %cst_10 = arith.constant dense<0.000000e+00> : vector<15x15xf32>
    %32 = tpu.matmul %29, %30, %cst_10 {dimension_numbers = #tpu.dot_dimension_numbers<[1], [1], [0], [0], [0, 0, 1, 0], [], []>} : vector<15x8xbf16>, vector<15x8xbf16>, vector<15x15xf32> -> vector<15x15xf32>
    %cst_11 = arith.constant 0.353553385 : f32
    %33 = vector.broadcast %cst_11 : f32 to vector<15x15xf32>
    %34 = arith.mulf %32, %33 : vector<15x15xf32>
    %cst_12 = arith.constant dense<0xFF800000> : vector<15xf32>
    %35 = vector.multi_reduction <maximumf>, %34, %cst_12 [1] : vector<15x15xf32> to vector<15xf32>
    %36 = vector.shape_cast %35 : vector<15xf32> to vector<15x1xf32>
    %37 = vector.broadcast %36 : vector<15x1xf32> to vector<15x15xf32>
    %38 = arith.subf %34, %37 : vector<15x15xf32>
    %39 = math.exp %38 : vector<15x15xf32>
    %cst_13 = arith.constant dense<0.000000e+00> : vector<15xf32>
    %40 = vector.multi_reduction <add>, %39, %cst_13 [1] : vector<15x15xf32> to vector<15xf32>
    %41 = vector.shape_cast %40 : vector<15xf32> to vector<15x1xf32>
    %42 = tpu.reciprocal %41 {approx = true} : vector<15x1xf32> -> vector<15x1xf32>
    %43 = vector.broadcast %42 : vector<15x1xf32> to vector<15x15xf32>
    %44 = arith.mulf %39, %43 : vector<15x15xf32>
    %45 = arith.truncf %44 : vector<15x15xf32> to vector<15x15xbf16>
    %cst_14 = arith.constant dense<0.000000e+00> : vector<15x8xf32>
    %46 = tpu.matmul %45, %31, %cst_14 {dimension_numbers = #tpu.dot_dimension_numbers<[1], [0], [0], [1], [0, 0, 1, 1], [], []>} : vector<15x15xbf16>, vector<15x8xbf16>, vector<15x8xf32> -> vector<15x8xf32>
    %47 = arith.truncf %46 : vector<15x8xf32> to vector<15x8xbf16>
    %48 = vector.extract_strided_slice %5 {offsets = [8, 0], sizes = [8, 32], strides = [1, 1]} : vector<32x32xbf16> to vector<8x32xbf16>
    %cst_15 = arith.constant dense<0.000000e+00> : vector<15x32xf32>
    %49 = tpu.matmul %47, %48, %cst_15 {dimension_numbers = #tpu.dot_dimension_numbers<[1], [0], [0], [1], [0, 0, 1, 1], [], []>} : vector<15x8xbf16>, vector<8x32xbf16>, vector<15x32xf32> -> vector<15x32xf32>
    %50 = arith.addf %28, %49 : vector<15x32xf32>
    %51 = vector.extract_strided_slice %2 {offsets = [0, 16], sizes = [15, 8], strides = [1, 1]} : vector<15x32xbf16> to vector<15x8xbf16>
    %52 = vector.extract_strided_slice %3 {offsets = [0, 16], sizes = [15, 8], strides = [1, 1]} : vector<15x32xbf16> to vector<15x8xbf16>
    %53 = vector.extract_strided_slice %4 {offsets = [0, 16], sizes = [15, 8], strides = [1, 1]} : vector<15x32xbf16> to vector<15x8xbf16>
    %cst_16 = arith.constant dense<0.000000e+00> : vector<15x15xf32>
    %54 = tpu.matmul %51, %52, %cst_16 {dimension_numbers = #tpu.dot_dimension_numbers<[1], [1], [0], [0], [0, 0, 1, 0], [], []>} : vector<15x8xbf16>, vector<15x8xbf16>, vector<15x15xf32> -> vector<15x15xf32>
    %cst_17 = arith.constant 0.353553385 : f32
    %55 = vector.broadcast %cst_17 : f32 to vector<15x15xf32>
    %56 = arith.mulf %54, %55 : vector<15x15xf32>
    %cst_18 = arith.constant dense<0xFF800000> : vector<15xf32>
    %57 = vector.multi_reduction <maximumf>, %56, %cst_18 [1] : vector<15x15xf32> to vector<15xf32>
    %58 = vector.shape_cast %57 : vector<15xf32> to vector<15x1xf32>
    %59 = vector.broadcast %58 : vector<15x1xf32> to vector<15x15xf32>
    %60 = arith.subf %56, %59 : vector<15x15xf32>
    %61 = math.exp %60 : vector<15x15xf32>
    %cst_19 = arith.constant dense<0.000000e+00> : vector<15xf32>
    %62 = vector.multi_reduction <add>, %61, %cst_19 [1] : vector<15x15xf32> to vector<15xf32>
    %63 = vector.shape_cast %62 : vector<15xf32> to vector<15x1xf32>
    %64 = tpu.reciprocal %63 {approx = true} : vector<15x1xf32> -> vector<15x1xf32>
    %65 = vector.broadcast %64 : vector<15x1xf32> to vector<15x15xf32>
    %66 = arith.mulf %61, %65 : vector<15x15xf32>
    %67 = arith.truncf %66 : vector<15x15xf32> to vector<15x15xbf16>
    %cst_20 = arith.constant dense<0.000000e+00> : vector<15x8xf32>
    %68 = tpu.matmul %67, %53, %cst_20 {dimension_numbers = #tpu.dot_dimension_numbers<[1], [0], [0], [1], [0, 0, 1, 1], [], []>} : vector<15x15xbf16>, vector<15x8xbf16>, vector<15x8xf32> -> vector<15x8xf32>
    %69 = arith.truncf %68 : vector<15x8xf32> to vector<15x8xbf16>
    %70 = vector.extract_strided_slice %5 {offsets = [16, 0], sizes = [8, 32], strides = [1, 1]} : vector<32x32xbf16> to vector<8x32xbf16>
    %cst_21 = arith.constant dense<0.000000e+00> : vector<15x32xf32>
    %71 = tpu.matmul %69, %70, %cst_21 {dimension_numbers = #tpu.dot_dimension_numbers<[1], [0], [0], [1], [0, 0, 1, 1], [], []>} : vector<15x8xbf16>, vector<8x32xbf16>, vector<15x32xf32> -> vector<15x32xf32>
    %72 = arith.addf %50, %71 : vector<15x32xf32>
    %73 = vector.extract_strided_slice %2 {offsets = [0, 24], sizes = [15, 8], strides = [1, 1]} : vector<15x32xbf16> to vector<15x8xbf16>
    %74 = vector.extract_strided_slice %3 {offsets = [0, 24], sizes = [15, 8], strides = [1, 1]} : vector<15x32xbf16> to vector<15x8xbf16>
    %75 = vector.extract_strided_slice %4 {offsets = [0, 24], sizes = [15, 8], strides = [1, 1]} : vector<15x32xbf16> to vector<15x8xbf16>
    %cst_22 = arith.constant dense<0.000000e+00> : vector<15x15xf32>
    %76 = tpu.matmul %73, %74, %cst_22 {dimension_numbers = #tpu.dot_dimension_numbers<[1], [1], [0], [0], [0, 0, 1, 0], [], []>} : vector<15x8xbf16>, vector<15x8xbf16>, vector<15x15xf32> -> vector<15x15xf32>
    %cst_23 = arith.constant 0.353553385 : f32
    %77 = vector.broadcast %cst_23 : f32 to vector<15x15xf32>
    %78 = arith.mulf %76, %77 : vector<15x15xf32>
    %cst_24 = arith.constant dense<0xFF800000> : vector<15xf32>
    %79 = vector.multi_reduction <maximumf>, %78, %cst_24 [1] : vector<15x15xf32> to vector<15xf32>
    %80 = vector.shape_cast %79 : vector<15xf32> to vector<15x1xf32>
    %81 = vector.broadcast %80 : vector<15x1xf32> to vector<15x15xf32>
    %82 = arith.subf %78, %81 : vector<15x15xf32>
    %83 = math.exp %82 : vector<15x15xf32>
    %cst_25 = arith.constant dense<0.000000e+00> : vector<15xf32>
    %84 = vector.multi_reduction <add>, %83, %cst_25 [1] : vector<15x15xf32> to vector<15xf32>
    %85 = vector.shape_cast %84 : vector<15xf32> to vector<15x1xf32>
    %86 = tpu.reciprocal %85 {approx = true} : vector<15x1xf32> -> vector<15x1xf32>
    %87 = vector.broadcast %86 : vector<15x1xf32> to vector<15x15xf32>
    %88 = arith.mulf %83, %87 : vector<15x15xf32>
    %89 = arith.truncf %88 : vector<15x15xf32> to vector<15x15xbf16>
    %cst_26 = arith.constant dense<0.000000e+00> : vector<15x8xf32>
    %90 = tpu.matmul %89, %75, %cst_26 {dimension_numbers = #tpu.dot_dimension_numbers<[1], [0], [0], [1], [0, 0, 1, 1], [], []>} : vector<15x15xbf16>, vector<15x8xbf16>, vector<15x8xf32> -> vector<15x8xf32>
    %91 = arith.truncf %90 : vector<15x8xf32> to vector<15x8xbf16>
    %92 = vector.extract_strided_slice %5 {offsets = [24, 0], sizes = [8, 32], strides = [1, 1]} : vector<32x32xbf16> to vector<8x32xbf16>
    %cst_27 = arith.constant dense<0.000000e+00> : vector<15x32xf32>
    %93 = tpu.matmul %91, %92, %cst_27 {dimension_numbers = #tpu.dot_dimension_numbers<[1], [0], [0], [1], [0, 0, 1, 1], [], []>} : vector<15x8xbf16>, vector<8x32xbf16>, vector<15x32xf32> -> vector<15x32xf32>
    %94 = arith.addf %72, %93 : vector<15x32xf32>
    %c0_28 = arith.constant 0 : index
    %c0_29 = arith.constant 0 : index
    %95 = vector.load %arg3[%c0_28, %c0_29] : memref<1x32xf32, #tpu.memory_space<vmem>>, vector<1x32xf32>
    %96 = vector.broadcast %95 : vector<1x32xf32> to vector<15x32xf32>
    %97 = arith.addf %94, %96 : vector<15x32xf32>
    %c0_30 = arith.constant 0 : index
    %c0_31 = arith.constant 0 : index
    %c0_32 = arith.constant 0 : index
    %98 = vector.load %arg4[%c0_30, %c0_31, %c0_32] : memref<1x15x32xbf16, #tpu.memory_space<vmem>>, vector<1x15x32xbf16>
    %99 = vector.shape_cast %98 : vector<1x15x32xbf16> to vector<15x32xbf16>
    %100 = arith.extf %99 : vector<15x32xbf16> to vector<15x32xf32>
    %101 = arith.addf %97, %100 : vector<15x32xf32>
    %102 = arith.truncf %101 : vector<15x32xf32> to vector<15x32xbf16>
    %c0_33 = arith.constant 0 : index
    %c0_34 = arith.constant 0 : index
    %c0_35 = arith.constant 0 : index
    %103 = vector.load %arg5[%c0_33, %c0_34, %c0_35] : memref<1x15x32xbf16, #tpu.memory_space<vmem>>, vector<1x15x32xbf16>
    %104 = vector.shape_cast %103 : vector<1x15x32xbf16> to vector<15x32xbf16>
    %105 = vector.shape_cast %102 : vector<15x32xbf16> to vector<1x15x32xbf16>
    tpu.vector_store %arg5[%c0_33, %c0_34, %c0_35], %105 {strides = array<i32>} : memref<1x15x32xbf16, #tpu.memory_space<vmem>>, vector<1x15x32xbf16>,
    return
  }
  func.func @transform_0(%arg0: i32) -> (i32, i32, i32) {
    %c0_i32 = arith.constant 0 : i32
    %c0_i32_0 = arith.constant 0 : i32
    %c0_i32_1 = arith.constant 0 : i32
    return %arg0, %c0_i32, %c0_i32_0 : i32, i32, i32
  }
  func.func @transform_1(%arg0: i32) -> (i32, i32) {
    %c0_i32 = arith.constant 0 : i32
    %c0_i32_0 = arith.constant 0 : i32
    %c0_i32_1 = arith.constant 0 : i32
    return %c0_i32, %c0_i32_0 : i32, i32
  }
  func.func @transform_2(%arg0: i32) -> (i32, i32) {
    %c0_i32 = arith.constant 0 : i32
    %c0_i32_0 = arith.constant 0 : i32
    %c0_i32_1 = arith.constant 0 : i32
    return %c0_i32, %c0_i32_0 : i32, i32
  }
  func.func @transform_3(%arg0: i32) -> (i32, i32, i32) {
    %c0_i32 = arith.constant 0 : i32
    %c0_i32_0 = arith.constant 0 : i32
    %c0_i32_1 = arith.constant 0 : i32
    return %arg0, %c0_i32, %c0_i32_0 : i32, i32, i32
  }
  func.func @transform_4(%arg0: i32) -> (i32, i32, i32) {
    %c0_i32 = arith.constant 0 : i32
    %c0_i32_0 = arith.constant 0 : i32
    %c0_i32_1 = arith.constant 0 : i32
    return %arg0, %c0_i32, %c0_i32_0 : i32, i32, i32
  }
}

module attributes {stable_mosaic.version = 11 : i64} {
  func.func @_ln_ffn_kernel(%arg0: i32, %arg1: memref<30x32xbf16, #tpu.memory_space<vmem>>, %arg2: memref<1x32xf32, #tpu.memory_space<vmem>>, %arg3: memref<1x32xf32, #tpu.memory_space<vmem>>, %arg4: memref<32x64xbf16, #tpu.memory_space<vmem>>, %arg5: memref<1x64xf32, #tpu.memory_space<vmem>>, %arg6: memref<64x32xbf16, #tpu.memory_space<vmem>>, %arg7: memref<1x32xf32, #tpu.memory_space<vmem>>, %arg8: memref<30x32xbf16, #tpu.memory_space<vmem>>) attributes {dimension_semantics = [#tpu.dimension_semantics<parallel>], iteration_bounds = array<i64: 1>, scalar_prefetch = 0 : i64, scratch_operands = 0 : i64, tpu.core_type = #tpu.core_type<tc>, window_params = [{transform_indices = @transform_0, window_bounds = array<i64: 30, 32>}, {pipeline_mode = #tpu.pipeline_mode<synchronous>, transform_indices = @transform_1, window_bounds = array<i64: 1, 32>}, {pipeline_mode = #tpu.pipeline_mode<synchronous>, transform_indices = @transform_2, window_bounds = array<i64: 1, 32>}, {pipeline_mode = #tpu.pipeline_mode<synchronous>, transform_indices = @transform_3, window_bounds = array<i64: 32, 64>}, {pipeline_mode = #tpu.pipeline_mode<synchronous>, transform_indices = @transform_4, window_bounds = array<i64: 1, 64>}, {pipeline_mode = #tpu.pipeline_mode<synchronous>, transform_indices = @transform_5, window_bounds = array<i64: 64, 32>}, {pipeline_mode = #tpu.pipeline_mode<synchronous>, transform_indices = @transform_6, window_bounds = array<i64: 1, 32>}, {transform_indices = @transform_7, window_bounds = array<i64: 30, 32>}]} {
    %c0 = arith.constant 0 : index
    %c0_0 = arith.constant 0 : index
    %0 = vector.load %arg1[%c0, %c0_0] : memref<30x32xbf16, #tpu.memory_space<vmem>>, vector<30x32xbf16>
    %1 = arith.extf %0 : vector<30x32xbf16> to vector<30x32xf32>
    %cst = arith.constant dense<0.000000e+00> : vector<30xf32>
    %2 = vector.multi_reduction <add>, %1, %cst [1] : vector<30x32xf32> to vector<30xf32>
    %3 = vector.shape_cast %2 : vector<30xf32> to vector<30x1xf32>
    %cst_1 = arith.constant 3.200000e+01 : f32
    %4 = vector.broadcast %cst_1 : f32 to vector<30x1xf32>
    %5 = arith.divf %3, %4 : vector<30x1xf32>
    %6 = vector.broadcast %5 : vector<30x1xf32> to vector<30x32xf32>
    %7 = arith.subf %1, %6 : vector<30x32xf32>
    %8 = arith.mulf %7, %7 : vector<30x32xf32>
    %cst_2 = arith.constant dense<0.000000e+00> : vector<30xf32>
    %9 = vector.multi_reduction <add>, %8, %cst_2 [1] : vector<30x32xf32> to vector<30xf32>
    %10 = vector.shape_cast %9 : vector<30xf32> to vector<30x1xf32>
    %cst_3 = arith.constant 3.200000e+01 : f32
    %11 = vector.broadcast %cst_3 : f32 to vector<30x1xf32>
    %12 = arith.divf %10, %11 : vector<30x1xf32>
    %13 = vector.broadcast %5 : vector<30x1xf32> to vector<30x32xf32>
    %14 = arith.subf %1, %13 : vector<30x32xf32>
    %cst_4 = arith.constant 9.99999974E-6 : f32
    %15 = vector.broadcast %cst_4 : f32 to vector<30x1xf32>
    %16 = arith.addf %12, %15 : vector<30x1xf32>
    %17 = math.rsqrt %16 : vector<30x1xf32>
    %18 = vector.broadcast %17 : vector<30x1xf32> to vector<30x32xf32>
    %19 = arith.mulf %14, %18 : vector<30x32xf32>
    %c0_5 = arith.constant 0 : index
    %c0_6 = arith.constant 0 : index
    %20 = vector.load %arg2[%c0_5, %c0_6] : memref<1x32xf32, #tpu.memory_space<vmem>>, vector<1x32xf32>
    %21 = vector.broadcast %20 : vector<1x32xf32> to vector<30x32xf32>
    %22 = arith.mulf %19, %21 : vector<30x32xf32>
    %c0_7 = arith.constant 0 : index
    %c0_8 = arith.constant 0 : index
    %23 = vector.load %arg3[%c0_7, %c0_8] : memref<1x32xf32, #tpu.memory_space<vmem>>, vector<1x32xf32>
    %24 = vector.broadcast %23 : vector<1x32xf32> to vector<30x32xf32>
    %25 = arith.addf %22, %24 : vector<30x32xf32>
    %26 = arith.truncf %25 : vector<30x32xf32> to vector<30x32xbf16>
    %c0_9 = arith.constant 0 : index
    %c0_10 = arith.constant 0 : index
    %27 = vector.load %arg4[%c0_9, %c0_10] : memref<32x64xbf16, #tpu.memory_space<vmem>>, vector<32x64xbf16>
    %cst_11 = arith.constant dense<0.000000e+00> : vector<30x64xf32>
    %28 = tpu.matmul %26, %27, %cst_11 {dimension_numbers = #tpu.dot_dimension_numbers<[1], [0], [0], [1], [0, 0, 1, 1], [], []>} : vector<30x32xbf16>, vector<32x64xbf16>, vector<30x64xf32> -> vector<30x64xf32>
    %c0_12 = arith.constant 0 : index
    %c0_13 = arith.constant 0 : index
    %29 = vector.load %arg5[%c0_12, %c0_13] : memref<1x64xf32, #tpu.memory_space<vmem>>, vector<1x64xf32>
    %30 = vector.broadcast %29 : vector<1x64xf32> to vector<30x64xf32>
    %31 = arith.addf %28, %30 : vector<30x64xf32>
    %32 = arith.mulf %31, %31 : vector<30x64xf32>
    %33 = arith.mulf %31, %32 : vector<30x64xf32>
    %cst_14 = arith.constant 4.471500e-02 : f32
    %34 = vector.broadcast %cst_14 : f32 to vector<30x64xf32>
    %35 = arith.mulf %34, %33 : vector<30x64xf32>
    %36 = arith.addf %31, %35 : vector<30x64xf32>
    %cst_15 = arith.constant 0.797884583 : f32
    %37 = vector.broadcast %cst_15 : f32 to vector<30x64xf32>
    %38 = arith.mulf %37, %36 : vector<30x64xf32>
    %39 = math.tanh %38 : vector<30x64xf32>
    %cst_16 = arith.constant 1.000000e+00 : f32
    %40 = vector.broadcast %cst_16 : f32 to vector<30x64xf32>
    %41 = arith.addf %40, %39 : vector<30x64xf32>
    %cst_17 = arith.constant 5.000000e-01 : f32
    %42 = vector.broadcast %cst_17 : f32 to vector<30x64xf32>
    %43 = arith.mulf %42, %41 : vector<30x64xf32>
    %44 = arith.mulf %31, %43 : vector<30x64xf32>
    %45 = arith.truncf %44 : vector<30x64xf32> to vector<30x64xbf16>
    %c0_18 = arith.constant 0 : index
    %c0_19 = arith.constant 0 : index
    %46 = vector.load %arg6[%c0_18, %c0_19] : memref<64x32xbf16, #tpu.memory_space<vmem>>, vector<64x32xbf16>
    %cst_20 = arith.constant dense<0.000000e+00> : vector<30x32xf32>
    %47 = tpu.matmul %45, %46, %cst_20 {dimension_numbers = #tpu.dot_dimension_numbers<[1], [0], [0], [1], [0, 0, 1, 1], [], []>} : vector<30x64xbf16>, vector<64x32xbf16>, vector<30x32xf32> -> vector<30x32xf32>
    %c0_21 = arith.constant 0 : index
    %c0_22 = arith.constant 0 : index
    %48 = vector.load %arg7[%c0_21, %c0_22] : memref<1x32xf32, #tpu.memory_space<vmem>>, vector<1x32xf32>
    %49 = vector.broadcast %48 : vector<1x32xf32> to vector<30x32xf32>
    %50 = arith.addf %47, %49 : vector<30x32xf32>
    %51 = arith.addf %1, %50 : vector<30x32xf32>
    %52 = arith.truncf %51 : vector<30x32xf32> to vector<30x32xbf16>
    %c0_23 = arith.constant 0 : index
    %c0_24 = arith.constant 0 : index
    %53 = vector.load %arg8[%c0_23, %c0_24] : memref<30x32xbf16, #tpu.memory_space<vmem>>, vector<30x32xbf16>
    tpu.vector_store %arg8[%c0_23, %c0_24], %52 {strides = array<i32>} : memref<30x32xbf16, #tpu.memory_space<vmem>>, vector<30x32xbf16>,
    return
  }
  func.func @transform_0(%arg0: i32) -> (i32, i32) {
    %c0_i32 = arith.constant 0 : i32
    %c0_i32_0 = arith.constant 0 : i32
    return %arg0, %c0_i32 : i32, i32
  }
  func.func @transform_1(%arg0: i32) -> (i32, i32) {
    %c0_i32 = arith.constant 0 : i32
    %c0_i32_0 = arith.constant 0 : i32
    %c0_i32_1 = arith.constant 0 : i32
    return %c0_i32, %c0_i32_0 : i32, i32
  }
  func.func @transform_2(%arg0: i32) -> (i32, i32) {
    %c0_i32 = arith.constant 0 : i32
    %c0_i32_0 = arith.constant 0 : i32
    %c0_i32_1 = arith.constant 0 : i32
    return %c0_i32, %c0_i32_0 : i32, i32
  }
  func.func @transform_3(%arg0: i32) -> (i32, i32) {
    %c0_i32 = arith.constant 0 : i32
    %c0_i32_0 = arith.constant 0 : i32
    %c0_i32_1 = arith.constant 0 : i32
    return %c0_i32, %c0_i32_0 : i32, i32
  }
  func.func @transform_4(%arg0: i32) -> (i32, i32) {
    %c0_i32 = arith.constant 0 : i32
    %c0_i32_0 = arith.constant 0 : i32
    %c0_i32_1 = arith.constant 0 : i32
    return %c0_i32, %c0_i32_0 : i32, i32
  }
  func.func @transform_5(%arg0: i32) -> (i32, i32) {
    %c0_i32 = arith.constant 0 : i32
    %c0_i32_0 = arith.constant 0 : i32
    %c0_i32_1 = arith.constant 0 : i32
    return %c0_i32, %c0_i32_0 : i32, i32
  }
  func.func @transform_6(%arg0: i32) -> (i32, i32) {
    %c0_i32 = arith.constant 0 : i32
    %c0_i32_0 = arith.constant 0 : i32
    %c0_i32_1 = arith.constant 0 : i32
    return %c0_i32, %c0_i32_0 : i32, i32
  }
  func.func @transform_7(%arg0: i32) -> (i32, i32) {
    %c0_i32 = arith.constant 0 : i32
    %c0_i32_0 = arith.constant 0 : i32
    return %arg0, %c0_i32 : i32, i32
  }
}

module attributes {stable_mosaic.version = 11 : i64} {
  func.func @_instnorm_kernel(%arg0: i32, %arg1: i32, %arg2: memref<1x1x15x32xbf16, #tpu.memory_space<vmem>>, %arg3: memref<1x1x15x32xf32, #tpu.memory_space<vmem>>) attributes {dimension_semantics = [#tpu.dimension_semantics<parallel>, #tpu.dimension_semantics<parallel>], iteration_bounds = array<i64: 3, 2>, scalar_prefetch = 0 : i64, scratch_operands = 0 : i64, tpu.core_type = #tpu.core_type<tc>, window_params = [{transform_indices = @transform_0, window_bounds = array<i64: 1, 1, 15, 32>}, {transform_indices = @transform_1, window_bounds = array<i64: 1, 1, 15, 32>}]} {
    %c0 = arith.constant 0 : index
    %c0_0 = arith.constant 0 : index
    %c0_1 = arith.constant 0 : index
    %c0_2 = arith.constant 0 : index
    %0 = vector.load %arg2[%c0, %c0_0, %c0_1, %c0_2] : memref<1x1x15x32xbf16, #tpu.memory_space<vmem>>, vector<1x1x15x32xbf16>
    %1 = vector.shape_cast %0 : vector<1x1x15x32xbf16> to vector<15x32xbf16>
    %2 = arith.extf %1 : vector<15x32xbf16> to vector<15x32xf32>
    %cst = arith.constant dense<0.000000e+00> : vector<32xf32>
    %3 = vector.multi_reduction <add>, %2, %cst [0] : vector<15x32xf32> to vector<32xf32>
    %4 = vector.shape_cast %3 : vector<32xf32> to vector<1x32xf32>
    %cst_3 = arith.constant 1.500000e+01 : f32
    %5 = vector.broadcast %cst_3 : f32 to vector<1x32xf32>
    %6 = arith.divf %4, %5 : vector<1x32xf32>
    %7 = vector.broadcast %6 : vector<1x32xf32> to vector<15x32xf32>
    %8 = arith.subf %2, %7 : vector<15x32xf32>
    %9 = arith.mulf %8, %8 : vector<15x32xf32>
    %cst_4 = arith.constant dense<0.000000e+00> : vector<32xf32>
    %10 = vector.multi_reduction <add>, %9, %cst_4 [0] : vector<15x32xf32> to vector<32xf32>
    %11 = vector.shape_cast %10 : vector<32xf32> to vector<1x32xf32>
    %cst_5 = arith.constant 1.500000e+01 : f32
    %12 = vector.broadcast %cst_5 : f32 to vector<1x32xf32>
    %13 = arith.divf %11, %12 : vector<1x32xf32>
    %14 = vector.broadcast %6 : vector<1x32xf32> to vector<15x32xf32>
    %15 = arith.subf %2, %14 : vector<15x32xf32>
    %cst_6 = arith.constant 9.99999974E-6 : f32
    %16 = vector.broadcast %cst_6 : f32 to vector<1x32xf32>
    %17 = arith.addf %13, %16 : vector<1x32xf32>
    %18 = math.rsqrt %17 : vector<1x32xf32>
    %19 = vector.broadcast %18 : vector<1x32xf32> to vector<15x32xf32>
    %20 = arith.mulf %15, %19 : vector<15x32xf32>
    %c0_7 = arith.constant 0 : index
    %c0_8 = arith.constant 0 : index
    %c0_9 = arith.constant 0 : index
    %c0_10 = arith.constant 0 : index
    %21 = vector.load %arg3[%c0_7, %c0_8, %c0_9, %c0_10] : memref<1x1x15x32xf32, #tpu.memory_space<vmem>>, vector<1x1x15x32xf32>
    %22 = vector.shape_cast %21 : vector<1x1x15x32xf32> to vector<15x32xf32>
    %23 = vector.shape_cast %20 : vector<15x32xf32> to vector<1x1x15x32xf32>
    tpu.vector_store %arg3[%c0_7, %c0_8, %c0_9, %c0_10], %23 {strides = array<i32>} : memref<1x1x15x32xf32, #tpu.memory_space<vmem>>, vector<1x1x15x32xf32>,
    return
  }
  func.func @transform_0(%arg0: i32, %arg1: i32) -> (i32, i32, i32, i32) {
    %c0_i32 = arith.constant 0 : i32
    %c0_i32_0 = arith.constant 0 : i32
    %c0_i32_1 = arith.constant 0 : i32
    return %arg0, %arg1, %c0_i32, %c0_i32_0 : i32, i32, i32, i32
  }
  func.func @transform_1(%arg0: i32, %arg1: i32) -> (i32, i32, i32, i32) {
    %c0_i32 = arith.constant 0 : i32
    %c0_i32_0 = arith.constant 0 : i32
    %c0_i32_1 = arith.constant 0 : i32
    return %arg0, %arg1, %c0_i32, %c0_i32_0 : i32, i32, i32, i32
  }
}

module attributes {stable_mosaic.version = 11 : i64} {
  func.func @_cls_loss_kernel(%arg0: i32, %arg1: memref<1x30x32xbf16, #tpu.memory_space<vmem>>, %arg2: memref<1x32x16xbf16, #tpu.memory_space<vmem>>, %arg3: memref<1x1x16xf32, #tpu.memory_space<vmem>>, %arg4: memref<1x30x1xi32, #tpu.memory_space<vmem>>, %arg5: memref<30x1xf32, #tpu.memory_space<vmem>>, %arg6: memref<1x4x16xf32, #tpu.memory_space<vmem>>) attributes {dimension_semantics = [#tpu.dimension_semantics<parallel>], iteration_bounds = array<i64: 2>, scalar_prefetch = 0 : i64, scratch_operands = 0 : i64, tpu.core_type = #tpu.core_type<tc>, window_params = [{transform_indices = @transform_0, window_bounds = array<i64: 1, 30, 32>}, {transform_indices = @transform_1, window_bounds = array<i64: 1, 32, 16>}, {transform_indices = @transform_2, window_bounds = array<i64: 1, 1, 16>}, {transform_indices = @transform_3, window_bounds = array<i64: 1, 30, 1>}, {pipeline_mode = #tpu.pipeline_mode<synchronous>, transform_indices = @transform_4, window_bounds = array<i64: 30, 1>}, {transform_indices = @transform_5, window_bounds = array<i64: 1, 4, 16>}]} {
    %c0 = arith.constant 0 : index
    %c0_0 = arith.constant 0 : index
    %c0_1 = arith.constant 0 : index
    %0 = vector.load %arg1[%c0, %c0_0, %c0_1] : memref<1x30x32xbf16, #tpu.memory_space<vmem>>, vector<1x30x32xbf16>
    %1 = vector.shape_cast %0 : vector<1x30x32xbf16> to vector<30x32xbf16>
    %c0_2 = arith.constant 0 : index
    %c0_3 = arith.constant 0 : index
    %c0_4 = arith.constant 0 : index
    %2 = vector.load %arg2[%c0_2, %c0_3, %c0_4] : memref<1x32x16xbf16, #tpu.memory_space<vmem>>, vector<1x32x16xbf16>
    %3 = vector.shape_cast %2 : vector<1x32x16xbf16> to vector<32x16xbf16>
    %cst = arith.constant dense<0.000000e+00> : vector<30x16xf32>
    %4 = tpu.matmul %1, %3, %cst {dimension_numbers = #tpu.dot_dimension_numbers<[1], [0], [0], [1], [0, 0, 1, 1], [], []>} : vector<30x32xbf16>, vector<32x16xbf16>, vector<30x16xf32> -> vector<30x16xf32>
    %c0_5 = arith.constant 0 : index
    %c0_6 = arith.constant 0 : index
    %c0_7 = arith.constant 0 : index
    %5 = vector.load %arg3[%c0_5, %c0_6, %c0_7] : memref<1x1x16xf32, #tpu.memory_space<vmem>>, vector<1x1x16xf32>
    %6 = vector.shape_cast %5 : vector<1x1x16xf32> to vector<1x16xf32>
    %7 = vector.broadcast %6 : vector<1x16xf32> to vector<30x16xf32>
    %8 = arith.addf %4, %7 : vector<30x16xf32>
    %c0_8 = arith.constant 0 : index
    %c0_9 = arith.constant 0 : index
    %c0_10 = arith.constant 0 : index
    %9 = vector.load %arg4[%c0_8, %c0_9, %c0_10] : memref<1x30x1xi32, #tpu.memory_space<vmem>>, vector<1x30x1xi32>
    %10 = vector.shape_cast %9 : vector<1x30x1xi32> to vector<30x1xi32>
    %c0_11 = arith.constant 0 : index
    %c0_12 = arith.constant 0 : index
    %11 = vector.load %arg5[%c0_11, %c0_12] : memref<30x1xf32, #tpu.memory_space<vmem>>, vector<30x1xf32>
    %12 = tpu.iota {dimensions = array<i32: 1>} : vector<30x16xi32>
    %13 = vector.broadcast %10 : vector<30x1xi32> to vector<30x16xi32>
    %14 = arith.cmpi eq, %12, %13 : vector<30x16xi32>
    %15 = arith.extui %14 : vector<30x16xi1> to vector<30x16xi32>
    %16 = arith.sitofp %15 : vector<30x16xi32> to vector<30x16xf32>
    %cst_13 = arith.constant dense<0xFF800000> : vector<30xf32>
    %17 = vector.multi_reduction <maximumf>, %8, %cst_13 [1] : vector<30x16xf32> to vector<30xf32>
    %18 = vector.shape_cast %17 : vector<30xf32> to vector<30x1xf32>
    %19 = vector.broadcast %18 : vector<30x1xf32> to vector<30x16xf32>
    %20 = arith.subf %8, %19 : vector<30x16xf32>
    %21 = math.exp %20 : vector<30x16xf32>
    %cst_14 = arith.constant dense<0.000000e+00> : vector<30xf32>
    %22 = vector.multi_reduction <add>, %21, %cst_14 [1] : vector<30x16xf32> to vector<30xf32>
    %23 = vector.shape_cast %22 : vector<30xf32> to vector<30x1xf32>
    %24 = math.log %23 : vector<30x1xf32>
    %25 = vector.broadcast %24 : vector<30x1xf32> to vector<30x16xf32>
    %26 = arith.subf %20, %25 : vector<30x16xf32>
    %27 = vector.broadcast %23 : vector<30x1xf32> to vector<30x16xf32>
    %28 = arith.divf %21, %27 : vector<30x16xf32>
    %29 = vector.broadcast %18 : vector<30x1xf32> to vector<30x16xf32>
    %30 = arith.cmpf oge, %8, %29 : vector<30x16xf32>
    %c16_i32 = arith.constant 16 : i32
    %31 = vector.broadcast %c16_i32 : i32 to vector<30x16xi32>
    %32 = arith.select %30, %12, %31 : vector<30x16xi1>, vector<30x16xi32>
    %cst_15 = arith.constant dense<2147483647> : vector<30xi32>
    %33 = vector.multi_reduction <minsi>, %32, %cst_15 [1] : vector<30x16xi32> to vector<30xi32>
    %34 = vector.shape_cast %33 : vector<30xi32> to vector<30x1xi32>
    %c15_i32 = arith.constant 15 : i32
    %35 = vector.broadcast %c15_i32 : i32 to vector<30x1xi32>
    %36 = arith.minsi %34, %35 : vector<30x1xi32>
    %37 = vector.broadcast %36 : vector<30x1xi32> to vector<30x16xi32>
    %38 = arith.cmpi eq, %12, %37 : vector<30x16xi32>
    %39 = arith.extui %38 : vector<30x16xi1> to vector<30x16xi32>
    %40 = arith.sitofp %39 : vector<30x16xi32> to vector<30x16xf32>
    %41 = vector.broadcast %11 : vector<30x1xf32> to vector<30x16xf32>
    %42 = arith.mulf %28, %41 : vector<30x16xf32>
    %cst_16 = arith.constant dense<0.000000e+00> : vector<16xf32>
    %43 = vector.multi_reduction <add>, %42, %cst_16 [0] : vector<30x16xf32> to vector<16xf32>
    %44 = vector.shape_cast %43 : vector<16xf32> to vector<1x16xf32>
    %45 = vector.broadcast %11 : vector<30x1xf32> to vector<30x16xf32>
    %46 = arith.mulf %40, %45 : vector<30x16xf32>
    %cst_17 = arith.constant dense<0.000000e+00> : vector<16xf32>
    %47 = vector.multi_reduction <add>, %46, %cst_17 [0] : vector<30x16xf32> to vector<16xf32>
    %48 = vector.shape_cast %47 : vector<16xf32> to vector<1x16xf32>
    %cst_18 = arith.constant 0.000000e+00 : f32
    %49 = vector.broadcast %cst_18 : f32 to vector<30x16xf32>
    %50 = arith.subf %49, %26 : vector<30x16xf32>
    %51 = arith.mulf %16, %50 : vector<30x16xf32>
    %52 = vector.broadcast %11 : vector<30x1xf32> to vector<30x16xf32>
    %53 = arith.mulf %51, %52 : vector<30x16xf32>
    %cst_19 = arith.constant dense<0.000000e+00> : vector<16xf32>
    %54 = vector.multi_reduction <add>, %53, %cst_19 [0] : vector<30x16xf32> to vector<16xf32>
    %55 = vector.shape_cast %54 : vector<16xf32> to vector<1x16xf32>
    %56 = arith.mulf %16, %40 : vector<30x16xf32>
    %57 = vector.broadcast %11 : vector<30x1xf32> to vector<30x16xf32>
    %58 = arith.mulf %56, %57 : vector<30x16xf32>
    %cst_20 = arith.constant dense<0.000000e+00> : vector<16xf32>
    %59 = vector.multi_reduction <add>, %58, %cst_20 [0] : vector<30x16xf32> to vector<16xf32>
    %60 = vector.shape_cast %59 : vector<16xf32> to vector<1x16xf32>
    %c0_21 = arith.constant 0 : index
    %c0_22 = arith.constant 0 : index
    %c0_23 = arith.constant 0 : index
    %61 = vector.load %arg6[%c0_21, %c0_22, %c0_23] : memref<1x4x16xf32, #tpu.memory_space<vmem>>, vector<1x1x16xf32>
    %62 = vector.shape_cast %61 : vector<1x1x16xf32> to vector<1x16xf32>
    %63 = vector.shape_cast %44 : vector<1x16xf32> to vector<1x1x16xf32>
    tpu.vector_store %arg6[%c0_21, %c0_22, %c0_23], %63 {strides = array<i32>} : memref<1x4x16xf32, #tpu.memory_space<vmem>>, vector<1x1x16xf32>,
    %c0_24 = arith.constant 0 : index
    %c1 = arith.constant 1 : index
    %c0_25 = arith.constant 0 : index
    %64 = vector.load %arg6[%c0_24, %c1, %c0_25] : memref<1x4x16xf32, #tpu.memory_space<vmem>>, vector<1x1x16xf32>
    %65 = vector.shape_cast %64 : vector<1x1x16xf32> to vector<1x16xf32>
    %66 = vector.shape_cast %48 : vector<1x16xf32> to vector<1x1x16xf32>
    tpu.vector_store %arg6[%c0_24, %c1, %c0_25], %66 {strides = array<i32>} : memref<1x4x16xf32, #tpu.memory_space<vmem>>, vector<1x1x16xf32>,
    %c0_26 = arith.constant 0 : index
    %c2 = arith.constant 2 : index
    %c0_27 = arith.constant 0 : index
    %67 = vector.load %arg6[%c0_26, %c2, %c0_27] : memref<1x4x16xf32, #tpu.memory_space<vmem>>, vector<1x1x16xf32>
    %68 = vector.shape_cast %67 : vector<1x1x16xf32> to vector<1x16xf32>
    %69 = vector.shape_cast %55 : vector<1x16xf32> to vector<1x1x16xf32>
    tpu.vector_store %arg6[%c0_26, %c2, %c0_27], %69 {strides = array<i32>} : memref<1x4x16xf32, #tpu.memory_space<vmem>>, vector<1x1x16xf32>,
    %c0_28 = arith.constant 0 : index
    %c3 = arith.constant 3 : index
    %c0_29 = arith.constant 0 : index
    %70 = vector.load %arg6[%c0_28, %c3, %c0_29] : memref<1x4x16xf32, #tpu.memory_space<vmem>>, vector<1x1x16xf32>
    %71 = vector.shape_cast %70 : vector<1x1x16xf32> to vector<1x16xf32>
    %72 = vector.shape_cast %60 : vector<1x16xf32> to vector<1x1x16xf32>
    tpu.vector_store %arg6[%c0_28, %c3, %c0_29], %72 {strides = array<i32>} : memref<1x4x16xf32, #tpu.memory_space<vmem>>, vector<1x1x16xf32>,
    return
  }
  func.func @transform_0(%arg0: i32) -> (i32, i32, i32) {
    %c0_i32 = arith.constant 0 : i32
    %c0_i32_0 = arith.constant 0 : i32
    %c0_i32_1 = arith.constant 0 : i32
    return %arg0, %c0_i32, %c0_i32_0 : i32, i32, i32
  }
  func.func @transform_1(%arg0: i32) -> (i32, i32, i32) {
    %c0_i32 = arith.constant 0 : i32
    %c0_i32_0 = arith.constant 0 : i32
    %c0_i32_1 = arith.constant 0 : i32
    return %arg0, %c0_i32, %c0_i32_0 : i32, i32, i32
  }
  func.func @transform_2(%arg0: i32) -> (i32, i32, i32) {
    %c0_i32 = arith.constant 0 : i32
    %c0_i32_0 = arith.constant 0 : i32
    %c0_i32_1 = arith.constant 0 : i32
    return %arg0, %c0_i32, %c0_i32_0 : i32, i32, i32
  }
  func.func @transform_3(%arg0: i32) -> (i32, i32, i32) {
    %c0_i32 = arith.constant 0 : i32
    %c0_i32_0 = arith.constant 0 : i32
    %c0_i32_1 = arith.constant 0 : i32
    return %arg0, %c0_i32, %c0_i32_0 : i32, i32, i32
  }
  func.func @transform_4(%arg0: i32) -> (i32, i32) {
    %c0_i32 = arith.constant 0 : i32
    %c0_i32_0 = arith.constant 0 : i32
    %c0_i32_1 = arith.constant 0 : i32
    return %c0_i32, %c0_i32_0 : i32, i32
  }
  func.func @transform_5(%arg0: i32) -> (i32, i32, i32) {
    %c0_i32 = arith.constant 0 : i32
    %c0_i32_0 = arith.constant 0 : i32
    %c0_i32_1 = arith.constant 0 : i32
    return %arg0, %c0_i32, %c0_i32_0 : i32, i32, i32
  }
}

module attributes {stable_mosaic.version = 11 : i64} {
  func.func @_codebook_argmin_kernel(%arg0: i32, %arg1: memref<1x30x32xf32, #tpu.memory_space<vmem>>, %arg2: memref<1x16x32xf32, #tpu.memory_space<vmem>>, %arg3: memref<1x1x30xi32, #tpu.memory_space<vmem>>) attributes {dimension_semantics = [#tpu.dimension_semantics<parallel>], iteration_bounds = array<i64: 2>, scalar_prefetch = 0 : i64, scratch_operands = 0 : i64, tpu.core_type = #tpu.core_type<tc>, window_params = [{transform_indices = @transform_0, window_bounds = array<i64: 1, 30, 32>}, {transform_indices = @transform_1, window_bounds = array<i64: 1, 16, 32>}, {transform_indices = @transform_2, window_bounds = array<i64: 1, 1, 30>}]} {
    %c0 = arith.constant 0 : index
    %c0_0 = arith.constant 0 : index
    %c0_1 = arith.constant 0 : index
    %0 = vector.load %arg1[%c0, %c0_0, %c0_1] : memref<1x30x32xf32, #tpu.memory_space<vmem>>, vector<1x30x32xf32>
    %1 = vector.shape_cast %0 : vector<1x30x32xf32> to vector<30x32xf32>
    %c0_2 = arith.constant 0 : index
    %c0_3 = arith.constant 0 : index
    %c0_4 = arith.constant 0 : index
    %2 = vector.load %arg2[%c0_2, %c0_3, %c0_4] : memref<1x16x32xf32, #tpu.memory_space<vmem>>, vector<1x16x32xf32>
    %3 = vector.shape_cast %2 : vector<1x16x32xf32> to vector<16x32xf32>
    %4 = arith.mulf %3, %3 : vector<16x32xf32>
    %cst = arith.constant dense<0.000000e+00> : vector<16xf32>
    %5 = vector.multi_reduction <add>, %4, %cst [1] : vector<16x32xf32> to vector<16xf32>
    %6 = vector.shape_cast %5 : vector<16xf32> to vector<16x1xf32>
    %7 = arith.truncf %3 : vector<16x32xf32> to vector<16x32xbf16>
    %8 = arith.truncf %1 : vector<30x32xf32> to vector<30x32xbf16>
    %cst_5 = arith.constant dense<0.000000e+00> : vector<16x30xf32>
    %9 = tpu.matmul %7, %8, %cst_5 {dimension_numbers = #tpu.dot_dimension_numbers<[1], [1], [0], [0], [0, 0, 1, 0], [], []>} : vector<16x32xbf16>, vector<30x32xbf16>, vector<16x30xf32> -> vector<16x30xf32>
    %cst_6 = arith.constant 2.000000e+00 : f32
    %10 = vector.broadcast %cst_6 : f32 to vector<16x30xf32>
    %11 = arith.mulf %10, %9 : vector<16x30xf32>
    %12 = vector.broadcast %6 : vector<16x1xf32> to vector<16x30xf32>
    %13 = arith.subf %12, %11 : vector<16x30xf32>
    %cst_7 = arith.constant dense<0x7F800000> : vector<30xf32>
    %14 = vector.multi_reduction <minimumf>, %13, %cst_7 [0] : vector<16x30xf32> to vector<30xf32>
    %15 = vector.shape_cast %14 : vector<30xf32> to vector<1x30xf32>
    %16 = tpu.iota {dimensions = array<i32: 0>} : vector<16x30xi32>
    %17 = vector.broadcast %15 : vector<1x30xf32> to vector<16x30xf32>
    %18 = arith.cmpf ole, %13, %17 : vector<16x30xf32>
    %c16_i32 = arith.constant 16 : i32
    %19 = vector.broadcast %c16_i32 : i32 to vector<16x30xi32>
    %20 = arith.select %18, %16, %19 : vector<16x30xi1>, vector<16x30xi32>
    %cst_8 = arith.constant dense<2147483647> : vector<30xi32>
    %21 = vector.multi_reduction <minsi>, %20, %cst_8 [0] : vector<16x30xi32> to vector<30xi32>
    %22 = vector.shape_cast %21 : vector<30xi32> to vector<1x30xi32>
    %c15_i32 = arith.constant 15 : i32
    %23 = vector.broadcast %c15_i32 : i32 to vector<1x30xi32>
    %24 = arith.minsi %22, %23 : vector<1x30xi32>
    %c0_9 = arith.constant 0 : index
    %c0_10 = arith.constant 0 : index
    %c0_11 = arith.constant 0 : index
    %25 = vector.load %arg3[%c0_9, %c0_10, %c0_11] : memref<1x1x30xi32, #tpu.memory_space<vmem>>, vector<1x1x30xi32>
    %26 = vector.shape_cast %25 : vector<1x1x30xi32> to vector<1x30xi32>
    %27 = vector.shape_cast %24 : vector<1x30xi32> to vector<1x1x30xi32>
    tpu.vector_store %arg3[%c0_9, %c0_10, %c0_11], %27 {strides = array<i32>} : memref<1x1x30xi32, #tpu.memory_space<vmem>>, vector<1x1x30xi32>,
    return
  }
  func.func @transform_0(%arg0: i32) -> (i32, i32, i32) {
    %c0_i32 = arith.constant 0 : i32
    %c0_i32_0 = arith.constant 0 : i32
    %c0_i32_1 = arith.constant 0 : i32
    return %arg0, %c0_i32, %c0_i32_0 : i32, i32, i32
  }
  func.func @transform_1(%arg0: i32) -> (i32, i32, i32) {
    %c0_i32 = arith.constant 0 : i32
    %c0_i32_0 = arith.constant 0 : i32
    %c0_i32_1 = arith.constant 0 : i32
    return %arg0, %c0_i32, %c0_i32_0 : i32, i32, i32
  }
  func.func @transform_2(%arg0: i32) -> (i32, i32, i32) {
    %c0_i32 = arith.constant 0 : i32
    %c0_i32_0 = arith.constant 0 : i32
    %c0_i32_1 = arith.constant 0 : i32
    return %arg0, %c0_i32, %c0_i32_0 : i32, i32, i32
  }
}

</mosaic_0001>

<bundles_post_ra>
// kernel: _forward_core.26
= control target key start
LH: loop header
LB: loop body
LE: loop exit
PB: predicated region body
PF: predicated region fallthrough
CT: control target
= control target key end

     0   :  { %vm29_vm0 = vcmask 261120   ;;  %vm39_vm1 = vcmask 259072   ;;  %vm202_vm2 = vcmask 257024   ;;  %vm206_vm3 = vcmask 256000   ;;  %s329_s0 = inlined_call_operand.vmem [shape: bf16[30,32], index: 0, kind: input, shape index: {}]   ;;  %s330_s3 = inlined_call_operand.vmem [shape: bf16[32,32], index: 3, kind: input, shape index: {}]   ;;  %s331_s1 = inlined_call_operand.vmem [shape: f32[1,32], index: 1, kind: input, shape index: {}]   ;;  %s332_s2 = inlined_call_operand.vmem [shape: f32[1,32], index: 2, kind: input, shape index: {}]   ;;  %s333_s4 = inlined_call_operand.vmem [shape: f32[1,32], index: 4, kind: input, shape index: {}]   ;;  %s334_s5 = inlined_call_operand.vmem [shape: bf16[30,32], index: 5, kind: output, shape index: {}]  }
   0x1   :  { %v228_v0 = vld [vmem:[%s329_s0] sm:$0xff]   ;;  %v23_v1 = vld [vmem:[%s329_s0 + $0x8] sm:$0xf]  ;;  %v24_v2 = vld [vmem:[%s329_s0 + $0xc] sm:$0x7] }
   0x2   :  { %v229_v3 = vunpack.c.l.bf16 %v228_v0  ;;  %v27_v4 = vunpack.c.l.bf16 %v23_v1  ;;  %v230_v5 = vunpack.c.h.bf16 %v228_v0  ;;  %v28_v6 = vunpack.c.l.bf16 %v24_v2  ;;  %v243_v31 = vld [vmem:[%s330_s3] sm:$0xff]   ;;  %v244_v32 = vld [vmem:[%s330_s3 + $0x8] sm:$0xff]  }
   0x3   :  { %235 = vmatprep.subr.bf16.mxu0 %v243_v31  ;;  %v212_v47 = vld [vmem:[%s331_s1] ss:$0 sm:$0xff] }
   0x4   :  { %v30_v7 = vsel %vm29_vm0, %v229_v3, 0.0  ;;  %v36_v8 = vsel %vm29_vm0, %v27_v4, 0.0  ;;  %v33_v9 = vsel %vm29_vm0, %v230_v5, 0.0  ;;  %v40_v10 = vsel %vm39_vm1, %v28_v6, 0.0  ;;  %236 = vmatpush3.bf16.msra.mxu0 %v243_v31  ;;  %v213_v53 = vld [vmem:[%s332_s2] ss:$0 sm:$0xff] }
   0x5   :  { %31 = vadd.xlane.f32.xlu0 %v30_v7  ;;  %37 = vadd.xlane.f32.xlu1 %v36_v8  ;;  %v214_v1 = vld [vmem:[%s333_s4] ss:$0 sm:$0xff] }
   0x6   :  { %237 = vmatprep.subr.bf16.mxu0 %v244_v32 }
   0x8   :  { %238 = vmatpush3.bf16.msra.mxu0 %v244_v32 }
   0x9   :  { %34 = vadd.xlane.f32.xlu0 %v33_v9  ;;  %41 = vadd.xlane.f32.xlu1 %v40_v10 }
  0x92   :  { %v32_v11 = vpop.xlane.xlu0 %31  ;;  %v38_v12 = vpop.xlane.xlu1 %37 }
  0x93   :  { %v44_v13 = vmul.f32 0.03125, %v32_v11  ;;  %v46_v14 = vmul.f32 0.03125, %v38_v12 }
  0x95   :  { %v48_v15 = vsub.f32 %v229_v3, %v44_v13  ;;  %v50_v16 = vsub.f32 %v27_v4, %v46_v14 }
  0x96   :  { %v35_v17 = vpop.xlane.xlu0 %34  ;;  %v42_v18 = vpop.xlane.xlu1 %41 }
  0x97   :  { %v45_v19 = vmul.f32 0.03125, %v35_v17  ;;  %v47_v20 = vmul.f32 0.03125, %v42_v18  ;;  %v52_v21 = vmul.f32 %v48_v15, %v48_v15  ;;  %v54_v22 = vmul.f32 %v50_v16, %v50_v16 }
  0x99   :  { %v49_v23 = vsub.f32 %v230_v5, %v45_v19  ;;  %v51_v24 = vsub.f32 %v28_v6, %v47_v20  ;;  %v56_v25 = vsel %vm29_vm0, %v52_v21, 0.0  ;;  %v62_v26 = vsel %vm29_vm0, %v54_v22, 0.0 }
  0x9a   :  { %57 = vadd.xlane.f32.xlu0 %v56_v25 }
  0x9b   :  { %v53_v27 = vmul.f32 %v49_v23, %v49_v23  ;;  %v55_v28 = vmul.f32 %v51_v24, %v51_v24 }
  0x9d   :  { %v59_v29 = vsel %vm29_vm0, %v53_v27, 0.0  ;;  %v65_v30 = vsel %vm39_vm1, %v55_v28, 0.0 }
  0x9e   :  { %63 = vadd.xlane.f32.xlu0 %v62_v26  ;;  %60 = vadd.xlane.f32.xlu1 %v59_v29 }
  0xa2   :  { %66 = vadd.xlane.f32.xlu1 %v65_v30 }
 0x127   :  { %v58_v33 = vpop.xlane.xlu0 %57 }
 0x128   :  { %v68_v34 = vmul.f32 0.03125, %v58_v33 }
 0x12a   :  { %v72_v35 = vadd.f32 1e-05, %v68_v34 }
 0x12b   :  { %v61_v36 = vpop.xlane.xlu1 %60  ;;  %v64_v37 = vpop.xlane.xlu0 %63 }
 0x12c   :  { %245 = vrsqrt.f32 %v72_v35  ;;  %v69_v38 = vmul.f32 0.03125, %v61_v36  ;;  %v70_v39 = vmul.f32 0.03125, %v64_v37 }
 0x12e   :  { %v73_v40 = vadd.f32 1e-05, %v69_v38  ;;  %v74_v41 = vadd.f32 1e-05, %v70_v39 }
 0x12f   :  { %v67_v42 = vpop.xlane.xlu1 %66 }
 0x130   :  { %247 = vrsqrt.f32 %v73_v40  ;;  %v71_v43 = vmul.f32 0.03125, %v67_v42 }
 0x131   :  { %249 = vrsqrt.f32 %v74_v41 }
 0x132   :  { %v75_v44 = vadd.f32 1e-05, %v71_v43 }
 0x134   :  { %251 = vrsqrt.f32 %v75_v44 }
 0x136   :  { %v246_v45 = vpop.eup %245 }
 0x137   :  { %v80_v46 = vmul.f32 %v246_v45, %v48_v15 }
 0x139   :  { %v91_v51 = vmul.f32 %v212_v47, %v80_v46 }
 0x13a   :  { %v248_v48 = vpop.eup %247 }
 0x13b   :  { %v250_v49 = vpop.eup %249  ;;  %v81_v50 = vmul.f32 %v248_v48, %v49_v23  ;;  %v102_v57 = vadd.f32 %v213_v53, %v91_v51 }
 0x13c   :  { %v82_v52 = vmul.f32 %v250_v49, %v50_v16 }
 0x13d   :  { %v92_v54 = vmul.f32 %v212_v47, %v81_v50 }
 0x13e   :  { %v252_v55 = vpop.eup %251  ;;  %v93_v59 = vmul.f32 %v212_v47, %v82_v52 }
 0x13f   :  { %v83_v56 = vmul.f32 %v252_v55, %v51_v24  ;;  %v103_v58 = vadd.f32 %v213_v53, %v92_v54 }
 0x140   :  { %v104_v62 = vadd.f32 %v213_v53, %v93_v59 }
 0x141   :  { %v106_v60 = vpack.c.bf16 %v103_v58, %v102_v57  ;;  %v94_v61 = vmul.f32 %v212_v47, %v83_v56 }
 0x143   :  { %239 = vmatprep.mubr.msk.bf16.mxu0 %vm29_vm0, %v106_v60  ;;  %v105_v63 = vadd.f32 %v213_v53, %v94_v61 }
 0x145   :  { %v107_v0 = vpack.c.bf16 %v105_v63, %v104_v62 }
 0x147   :  { %240 = vmatmul.mubr.msk.bf16.vlgmr.msra.gmra.mrb[0].mxu0 %vm29_vm0, %v107_v0 }
 0x21a   :  { %v241_v2 = vpop.f32.mrb[0].mxu0 }
 0x21b   :  { %v180_v3 = vadd.f32 %v241_v2, %v214_v1  ;;  %v171_v4 = vpop.f32.mrb[1].mxu0 }
 0x21c   :  { %v172_v5 = vadd.f32 %v214_v1, %v171_v4  ;;  %v242_v6 = vpop.f32.mrb[2].mxu0 }
 0x21d   :  { %v225_v7 = vpack.c.bf16 %v180_v3, %v180_v3  ;;  %v183_v8 = vadd.f32 %v242_v6, %v214_v1  ;;  %v174_v9 = vpop.f32.mrb[3].mxu0 }
 0x21e   :  { %v223_v10 = vpack.c.bf16 %v172_v5, %v172_v5  ;;  %v175_v11 = vadd.f32 %v214_v1, %v174_v9 }
 0x21f   :  { %205 = vst.msk [vmem:[%s334_s5 + $0x8] sm:$0xf] %vm202_vm2, %v225_v7  ;;  %v226_v12 = vpack.c.bf16 %v183_v8, %v183_v8 }
 0x220   :  { %203 = vst.msk [vmem:[%s334_s5] sm:$0xf] %vm202_vm2, %v223_v10  ;;  %v224_v13 = vpack.c.bf16 %v175_v11, %v175_v11 }
 0x221   :  { %207 = vst.msk [vmem:[%s334_s5 + $0xc] sm:$0x7] %vm206_vm3, %v226_v12 }
 0x222   :  { %204 = vst.msk [vmem:[%s334_s5 + $0x4] sm:$0xf] %vm202_vm2, %v224_v13 }

// kernel: _forward_core.24
= control target key start
LH: loop header
LB: loop body
LE: loop exit
PB: predicated region body
PF: predicated region fallthrough
CT: control target
= control target key end

     0   :  { %s639_s15 = smov 0   ;;  %s687_s0 = inlined_call_operand.vmem [shape: bf16[2,32,2], index: 0, kind: input, shape index: {}]   ;;  %s688_s1 = inlined_call_operand.vmem [shape: bf16[2,2,32], index: 1, kind: input, shape index: {}]   ;;  %s689_s2 = inlined_call_operand.vmem [shape: f32[1,32], index: 2, kind: input, shape index: {}]   ;;  %s690_s3 = inlined_call_operand.vmem [shape: f32[1,32], index: 3, kind: input, shape index: {}]   ;;  %s691_s4 = inlined_call_operand.vmem [shape: bf16[2,31,32], index: 4, kind: output, shape index: {}]  }
   0x1 LB: > { %s532_s16 = sadd.s32 4294967295, %s612_s15   ;;  %p536_p0 = scmp.ge.s32.totalorder %s612_s15, 1  ;;  %s612_s15 = sphi %s639_s15, %s14_s15  }
   0x2   : > { %p162_p1 = scmp.lt.s32.totalorder %s612_s15, 3 }
   0x4   : > { %p163_p2 = pnand %p536_p0, %p162_p1 }
   0x5   : > { %v203_v0 = vld [vmem:[%s688_s1] sm:$0x1] (!%p163_p2)  ;;  %vm239_vm0 = vcmask (!%p163_p2), 1040384   ;;  %v541_v1 = vld [vmem:[%s688_s1 + $0x1] sm:$0x1] (!%p163_p2)  ;;  %p188_p3 = scmp.lt.s32.totalorder (!%p163_p2), %s532_s16, 1 }
   0x6   : > { %166 = sbr.rel (%p163_p2) target bundleno = 341 (0x155), region = 36  ;;  %585 = vmatprep.subr.msk.bf16.mxu0 (!%p163_p2), %vm239_vm0, %v203_v0  ;;  %v297_v2 = vsel (!%p163_p2), %vm239_vm0, %v203_v0, 0  ;;  %584 = vmatprep.subr.msk.bf16.mxu1 (!%p163_p2), %vm239_vm0, %v541_v1  ;;  %v241_v3 = vsel (!%p163_p2), %vm239_vm0, %v541_v1, 0  ;;  %vm232_vm1 = vcmask (!%p163_p2), 15360   ;;  %vm216_vm2 = vsmask.f32 (!%p163_p2), 7424 }
   0x7   : > { %575 = vmatpush3.bf16.msra.mxu0 (!%p163_p2), %v297_v2  ;;  %569 = vmatpush3.bf16.msra.mxu1 (!%p163_p2), %v241_v3  ;;  %vm348_vm3 = vcmask (!%p163_p2), 261120   ;;  %vm354_vm4 = vcmask (!%p163_p2), 260096   ;;  %v548_v1 = vld [vmem:[%s689_s2] ss:$0 sm:$0xff] (!%p163_p2)  ;;  %vm467_vm5 = vcmask (!%p163_p2), 257024  }
   0x8   : > { %vm472_vm6 = vsmask.f32 (!%p163_p2), 3328 }
   0x9   : > { %vm473_vm7 = vmand (!%p163_p2), %vm467_vm5, %vm472_vm6 }
   0xd   : > { %s693_s16 = smov (!%p188_p3, %s532_s16), 1 }
   0xe   : > { %s556_s21 = sshll.u32 %s693_s16, 4 }
   0xf   : > { %s192_s24 = scalar_lea.vmem %s687_s0, %s556_s21  ;;  %s197_s5 = scalar_lea.vmem %s691_s4, %s556_s21 }
  0x10   : > { %v594_v4 = vld [vmem:[%s192_s24] sm:$0xff]   ;;  %v595_v5 = vld [vmem:[%s192_s24 + $0x8] sm:$0xff]  }
  0x11   : > { %576 = vmatprep.mubr.msk.bf16.mxu0 %vm232_vm1, %v594_v4  ;;  %v218_v6 = vshrl.u32 %v594_v4, 16  ;;  %v220_v7 = vshll.u32 %v594_v4, 16  ;;  %v225_v9 = vshll.u32 %v595_v5, 16  ;;  %v229_v10 = vshrl.u32 %v595_v5, 16 }
  0x12   : > { %577 = vmatmul.mubr.msk.bf16.vlgmr.msra.gmra.mrb[0].mxu0 %vm232_vm1, %v595_v5 }
  0x13   : > { %v222_v8 = vrot.slane %v220_v7, 1  ;;  %v227_v12 = vrot.slane %v225_v9, 1 }
  0x15   : > { %v223_v11 = vor.u32 %v222_v8, %v218_v6  ;;  %v231_v14 = vor.u32 %v229_v10, %v227_v12  ;;  %v549_v6 = vld [vmem:[%s690_s3] ss:$0 sm:$0xff] }
  0x17   : > { %v228_v13 = vsel %vm216_vm2, %v223_v11, %v227_v12 }
  0x18   : > { %570 = vmatprep.mubr.msk.bf16.mxu1 %vm232_vm1, %v228_v13 }
  0x19   : > { %571 = vmatmul.mubr.msk.bf16.vlgmr.msra.gmra.mrb[0].mxu1 %vm232_vm1, %v231_v14 }
  0xe5   : > { %v578_v15 = vpop.f32.mrb[0].mxu0 }
  0xe6   : > { %v333_v16 = vpop.f32.mrb[1].mxu0 }
  0xe7   : > { %v579_v17 = vpop.f32.mrb[2].mxu0 }
  0xe8   : > { %v336_v18 = vpop.f32.mrb[3].mxu0 }
  0xec   : > { %v572_v19 = vpop.f32.mrb[0].mxu1 }
  0xed   : > { %v342_v20 = vadd.f32 %v578_v15, %v572_v19  ;;  %v277_v21 = vpop.f32.mrb[1].mxu1 }
  0xee   : > { %v334_v22 = vadd.f32 %v333_v16, %v277_v21  ;;  %v573_v23 = vpop.f32.mrb[2].mxu1 }
  0xef   : > { %v345_v24 = vadd.f32 %v579_v17, %v573_v23  ;;  %v280_v25 = vpop.f32.mrb[3].mxu1  ;;  %v352_v30 = vsel %vm348_vm3, %v342_v20, 0.0 }
  0xf0   : > { %v337_v26 = vadd.f32 %v336_v18, %v280_v25  ;;  %v349_v27 = vsel %vm348_vm3, %v334_v22, 0.0 }
  0xf1   : > { %v355_v32 = vsel %vm354_vm4, %v345_v24, 0.0 }
  0xf2   : > { %v350_v28 = vsel %vm348_vm3, %v337_v26, 0.0 }
  0xf3   : > { %v351_v29 = vadd.f32 %v350_v28, %v349_v27 }
  0xf5   : > { %v353_v31 = vadd.f32 %v352_v30, %v351_v29 }
  0xf7   : > { %v356_v33 = vadd.f32 %v355_v32, %v353_v31 }
  0xf9   : > { %v357_v34 = vrot.slane %v356_v33, 4 }
  0xfb   : > { %v358_v35 = vadd.f32 %v357_v34, %v356_v33 }
  0xfd   : > { %v359_v36 = vrot.slane %v358_v35, 2 }
  0xff   : > { %v360_v37 = vadd.f32 %v359_v36, %v358_v35 }
 0x101   : > { %v361_v38 = vrot.slane %v360_v37, 1 }
 0x103   : > { %v362_v39 = vadd.f32 %v361_v38, %v360_v37 }
 0x105   : > { %v364_v40 = vmul.f32 0.032258064, %v362_v39 }
 0x107   : > { %v365_v41 = vsub.f32 %v334_v22, %v364_v40  ;;  %v366_v42 = vsub.f32 %v337_v26, %v364_v40  ;;  %v367_v43 = vsub.f32 %v342_v20, %v364_v40  ;;  %v368_v44 = vsub.f32 %v345_v24, %v364_v40 }
 0x109   : > { %v369_v45 = vmul.f32 %v365_v41, %v365_v41  ;;  %v370_v46 = vmul.f32 %v366_v42, %v366_v42  ;;  %v371_v47 = vmul.f32 %v367_v43, %v367_v43  ;;  %v372_v48 = vmul.f32 %v368_v44, %v368_v44 }
 0x10b   : > { %v373_v49 = vsel %vm348_vm3, %v369_v45, 0.0  ;;  %v374_v50 = vsel %vm348_vm3, %v370_v46, 0.0  ;;  %v376_v52 = vsel %vm348_vm3, %v371_v47, 0.0  ;;  %v378_v54 = vsel %vm354_vm4, %v372_v48, 0.0 }
 0x10c   : > { %v375_v51 = vadd.f32 %v374_v50, %v373_v49 }
 0x10e   : > { %v377_v53 = vadd.f32 %v376_v52, %v375_v51 }
 0x110   : > { %v379_v55 = vadd.f32 %v378_v54, %v377_v53  ;;  %v474_v53 = vld [vmem:[%s197_s5 + $0xc] sm:$0xf] }
 0x112   : > { %v380_v56 = vrot.slane %v379_v55, 4 }
 0x114   : > { %v381_v57 = vadd.f32 %v380_v56, %v379_v55 }
 0x116   : > { %v382_v58 = vrot.slane %v381_v57, 2 }
 0x118   : > { %v383_v59 = vadd.f32 %v382_v58, %v381_v57 }
 0x11a   : > { %v384_v60 = vrot.slane %v383_v59, 1 }
 0x11c   : > { %v385_v61 = vadd.f32 %v384_v60, %v383_v59 }
 0x11e   : > { %v386_v62 = vmul.f32 0.032258064, %v385_v61 }
 0x120   : > { %v387_v63 = vadd.f32 1e-05, %v386_v62 }
 0x122   : > { %596 = vrsqrt.f32 %v387_v63 }
 0x12c   : > { %v597_v0 = vpop.eup %596 }
 0x12d   : > { %v389_v2 = vmul.f32 %v597_v0, %v365_v41  ;;  %v390_v3 = vmul.f32 %v597_v0, %v366_v42  ;;  %v391_v4 = vmul.f32 %v597_v0, %v367_v43  ;;  %v392_v5 = vmul.f32 %v597_v0, %v368_v44 }
 0x12f   : > { %v400_v7 = vmul.f32 %v548_v1, %v389_v2  ;;  %v401_v8 = vmul.f32 %v548_v1, %v390_v3  ;;  %v402_v9 = vmul.f32 %v548_v1, %v391_v4  ;;  %v403_v10 = vmul.f32 %v548_v1, %v392_v5 }
 0x131   : > { %v411_v11 = vadd.f32 %v549_v6, %v400_v7  ;;  %v412_v12 = vadd.f32 %v549_v6, %v401_v8  ;;  %v413_v13 = vadd.f32 %v549_v6, %v402_v9  ;;  %v414_v14 = vadd.f32 %v549_v6, %v403_v10 }
 0x133   : > { %v415_v15 = vmul.f32 %v411_v11, %v411_v11  ;;  %v416_v16 = vmul.f32 %v412_v12, %v412_v12  ;;  %v417_v17 = vmul.f32 %v413_v13, %v413_v13  ;;  %v418_v18 = vmul.f32 %v414_v14, %v414_v14 }
 0x135   : > { %v419_v19 = vmul.f32 %v415_v15, %v411_v11  ;;  %v420_v20 = vmul.f32 %v416_v16, %v412_v12  ;;  %v421_v21 = vmul.f32 %v417_v17, %v413_v13  ;;  %v422_v22 = vmul.f32 %v418_v18, %v414_v14 }
 0x137   : > { %v423_v23 = vmul.f32 0.044715, %v419_v19  ;;  %v424_v24 = vmul.f32 0.044715, %v420_v20  ;;  %v425_v25 = vmul.f32 0.044715, %v421_v21 }
 0x138   : > { %v426_v26 = vmul.f32 0.044715, %v422_v22 }
 0x139   : > { %v427_v27 = vadd.f32 %v423_v23, %v411_v11  ;;  %v428_v28 = vadd.f32 %v424_v24, %v412_v12  ;;  %v429_v29 = vadd.f32 %v425_v25, %v413_v13 }
 0x13a   : > { %v430_v30 = vadd.f32 %v426_v26, %v414_v14 }
 0x13b   : > { %v431_v31 = vmul.f32 0.7978846, %v427_v27  ;;  %v432_v32 = vmul.f32 0.7978846, %v428_v28  ;;  %v433_v33 = vmul.f32 0.7978846, %v429_v29 }
 0x13c   : > { %v434_v34 = vmul.f32 0.7978846, %v430_v30 }
 0x13d   : > { %598 = vtanh.f32 %v431_v31 }
 0x13e   : > { %600 = vtanh.f32 %v432_v32 }
 0x13f   : > { %602 = vtanh.f32 %v433_v33 }
 0x140   : > { %604 = vtanh.f32 %v434_v34 }
 0x147   : > { %v599_v35 = vpop.eup %598 }
 0x148   : > { %v601_v36 = vpop.eup %600  ;;  %v439_v37 = vadd.f32 1.0, %v599_v35 }
 0x149   : > { %v603_v38 = vpop.eup %602  ;;  %v440_v39 = vadd.f32 1.0, %v601_v36 }
 0x14a   : > { %v605_v40 = vpop.eup %604  ;;  %v441_v41 = vadd.f32 1.0, %v603_v38  ;;  %v443_v42 = vmul.f32 0.5, %v439_v37 }
 0x14b   : > { %v442_v43 = vadd.f32 1.0, %v605_v40  ;;  %v444_v44 = vmul.f32 0.5, %v440_v39 }
 0x14c   : > { %v445_v45 = vmul.f32 0.5, %v441_v41  ;;  %v447_v46 = vmul.f32 %v443_v42, %v411_v11 }
 0x14d   : > { %v446_v47 = vmul.f32 0.5, %v442_v43  ;;  %v448_v48 = vmul.f32 %v444_v44, %v412_v12 }
 0x14e   : > { %v449_v49 = vmul.f32 %v445_v45, %v413_v13  ;;  %v558_v50 = vpack.c.bf16 %v447_v46, %v447_v46 }
 0x14f   : > { %v450_v51 = vmul.f32 %v446_v47, %v414_v14  ;;  %v559_v52 = vpack.c.bf16 %v448_v48, %v448_v48 }
 0x150   : > { %v560_v54 = vpack.c.bf16 %v449_v49, %v449_v49  ;;  %468 = vst.msk [vmem:[%s197_s5] sm:$0xf] %vm467_vm5, %v558_v50 }
 0x151   : > { %v561_v55 = vpack.c.bf16 %v450_v51, %v450_v51  ;;  %469 = vst.msk [vmem:[%s197_s5 + $0x4] sm:$0xf] %vm467_vm5, %v559_v52 }
 0x152   : > { %470 = vst.msk [vmem:[%s197_s5 + $0x8] sm:$0xf] %vm467_vm5, %v560_v54 }
 0x153   : > { %v475_v56 = vsel %vm473_vm7, %v561_v55, %v474_v53 }
 0x154   : > { %476 = vst [vmem:[%s197_s5 + $0xc] sm:$0xf] %v475_v56 }
 0x155 PF: > { %s14_s15 = sadd.s32 1, %s612_s15  }
 0x156   : > { %p11_p4 = scmp.ge.s32.totalorder %s14_s15, 4  }
 0x158   :  { %13 = sbr.rel (!%p11_p4) target bundleno = 1 (0x1), region = 67 }

// kernel: _forward_core.27
= control target key start
LH: loop header
LB: loop body
LE: loop exit
PB: predicated region body
PF: predicated region fallthrough
CT: control target
= control target key end

     0   :  { %vm29_vm0 = vcmask 261120   ;;  %vm39_vm1 = vcmask 259072   ;;  %vm202_vm2 = vcmask 781312   ;;  %vm206_vm3 = vcmask 780288   ;;  %s329_s0 = inlined_call_operand.vmem [shape: bf16[30,32], index: 0, kind: input, shape index: {}]   ;;  %s330_s3 = inlined_call_operand.vmem [shape: bf16[32,96], index: 3, kind: input, shape index: {}]   ;;  %s331_s1 = inlined_call_operand.vmem [shape: f32[1,32], index: 1, kind: input, shape index: {}]   ;;  %s332_s2 = inlined_call_operand.vmem [shape: f32[1,32], index: 2, kind: input, shape index: {}]   ;;  %s333_s4 = inlined_call_operand.vmem [shape: f32[1,96], index: 4, kind: input, shape index: {}]   ;;  %s334_s5 = inlined_call_operand.vmem [shape: bf16[30,96], index: 5, kind: output, shape index: {}]  }
   0x1   :  { %v228_v0 = vld [vmem:[%s329_s0] sm:$0xff]   ;;  %v23_v1 = vld [vmem:[%s329_s0 + $0x8] sm:$0xf]  ;;  %v24_v2 = vld [vmem:[%s329_s0 + $0xc] sm:$0x7] }
   0x2   :  { %v229_v3 = vunpack.c.l.bf16 %v228_v0  ;;  %v27_v4 = vunpack.c.l.bf16 %v23_v1  ;;  %v230_v5 = vunpack.c.h.bf16 %v228_v0  ;;  %v28_v6 = vunpack.c.l.bf16 %v24_v2  ;;  %v243_v31 = vld [vmem:[%s330_s3] sm:$0xff]   ;;  %v244_v32 = vld [vmem:[%s330_s3 + $0x8] sm:$0xff]  }
   0x3   :  { %235 = vmatprep.subr.bf16.mxu0 %v243_v31  ;;  %v212_v47 = vld [vmem:[%s331_s1] ss:$0 sm:$0xff] }
   0x4   :  { %v30_v7 = vsel %vm29_vm0, %v229_v3, 0.0  ;;  %v36_v8 = vsel %vm29_vm0, %v27_v4, 0.0  ;;  %v33_v9 = vsel %vm29_vm0, %v230_v5, 0.0  ;;  %v40_v10 = vsel %vm39_vm1, %v28_v6, 0.0  ;;  %236 = vmatpush3.bf16.msra.mxu0 %v243_v31  ;;  %v213_v53 = vld [vmem:[%s332_s2] ss:$0 sm:$0xff] }
   0x5   :  { %31 = vadd.xlane.f32.xlu0 %v30_v7  ;;  %37 = vadd.xlane.f32.xlu1 %v36_v8  ;;  %v214_v1 = vld [vmem:[%s333_s4] ss:$0 sm:$0xff] }
   0x6   :  { %237 = vmatprep.subr.bf16.mxu0 %v244_v32 }
   0x8   :  { %238 = vmatpush3.bf16.msra.mxu0 %v244_v32 }
   0x9   :  { %34 = vadd.xlane.f32.xlu0 %v33_v9  ;;  %41 = vadd.xlane.f32.xlu1 %v40_v10 }
  0x92   :  { %v32_v11 = vpop.xlane.xlu0 %31  ;;  %v38_v12 = vpop.xlane.xlu1 %37 }
  0x93   :  { %v44_v13 = vmul.f32 0.03125, %v32_v11  ;;  %v46_v14 = vmul.f32 0.03125, %v38_v12 }
  0x95   :  { %v48_v15 = vsub.f32 %v229_v3, %v44_v13  ;;  %v50_v16 = vsub.f32 %v27_v4, %v46_v14 }
  0x96   :  { %v35_v17 = vpop.xlane.xlu0 %34  ;;  %v42_v18 = vpop.xlane.xlu1 %41 }
  0x97   :  { %v45_v19 = vmul.f32 0.03125, %v35_v17  ;;  %v47_v20 = vmul.f32 0.03125, %v42_v18  ;;  %v52_v21 = vmul.f32 %v48_v15, %v48_v15  ;;  %v54_v22 = vmul.f32 %v50_v16, %v50_v16 }
  0x99   :  { %v49_v23 = vsub.f32 %v230_v5, %v45_v19  ;;  %v51_v24 = vsub.f32 %v28_v6, %v47_v20  ;;  %v56_v25 = vsel %vm29_vm0, %v52_v21, 0.0  ;;  %v62_v26 = vsel %vm29_vm0, %v54_v22, 0.0 }
  0x9a   :  { %57 = vadd.xlane.f32.xlu0 %v56_v25 }
  0x9b   :  { %v53_v27 = vmul.f32 %v49_v23, %v49_v23  ;;  %v55_v28 = vmul.f32 %v51_v24, %v51_v24 }
  0x9d   :  { %v59_v29 = vsel %vm29_vm0, %v53_v27, 0.0  ;;  %v65_v30 = vsel %vm39_vm1, %v55_v28, 0.0 }
  0x9e   :  { %63 = vadd.xlane.f32.xlu0 %v62_v26  ;;  %60 = vadd.xlane.f32.xlu1 %v59_v29 }
  0xa2   :  { %66 = vadd.xlane.f32.xlu1 %v65_v30 }
 0x127   :  { %v58_v33 = vpop.xlane.xlu0 %57 }
 0x128   :  { %v68_v34 = vmul.f32 0.03125, %v58_v33 }
 0x12a   :  { %v72_v35 = vadd.f32 1e-05, %v68_v34 }
 0x12b   :  { %v61_v36 = vpop.xlane.xlu1 %60  ;;  %v64_v37 = vpop.xlane.xlu0 %63 }
 0x12c   :  { %245 = vrsqrt.f32 %v72_v35  ;;  %v69_v38 = vmul.f32 0.03125, %v61_v36  ;;  %v70_v39 = vmul.f32 0.03125, %v64_v37 }
 0x12e   :  { %v73_v40 = vadd.f32 1e-05, %v69_v38  ;;  %v74_v41 = vadd.f32 1e-05, %v70_v39 }
 0x12f   :  { %v67_v42 = vpop.xlane.xlu1 %66 }
 0x130   :  { %247 = vrsqrt.f32 %v73_v40  ;;  %v71_v43 = vmul.f32 0.03125, %v67_v42 }
 0x131   :  { %249 = vrsqrt.f32 %v74_v41 }
 0x132   :  { %v75_v44 = vadd.f32 1e-05, %v71_v43 }
 0x134   :  { %251 = vrsqrt.f32 %v75_v44 }
 0x136   :  { %v246_v45 = vpop.eup %245 }
 0x137   :  { %v80_v46 = vmul.f32 %v246_v45, %v48_v15 }
 0x139   :  { %v91_v51 = vmul.f32 %v212_v47, %v80_v46 }
 0x13a   :  { %v248_v48 = vpop.eup %247 }
 0x13b   :  { %v250_v49 = vpop.eup %249  ;;  %v81_v50 = vmul.f32 %v248_v48, %v49_v23  ;;  %v102_v57 = vadd.f32 %v213_v53, %v91_v51 }
 0x13c   :  { %v82_v52 = vmul.f32 %v250_v49, %v50_v16 }
 0x13d   :  { %v92_v54 = vmul.f32 %v212_v47, %v81_v50 }
 0x13e   :  { %v252_v55 = vpop.eup %251  ;;  %v93_v59 = vmul.f32 %v212_v47, %v82_v52 }
 0x13f   :  { %v83_v56 = vmul.f32 %v252_v55, %v51_v24  ;;  %v103_v58 = vadd.f32 %v213_v53, %v92_v54 }
 0x140   :  { %v104_v62 = vadd.f32 %v213_v53, %v93_v59 }
 0x141   :  { %v106_v60 = vpack.c.bf16 %v103_v58, %v102_v57  ;;  %v94_v61 = vmul.f32 %v212_v47, %v83_v56 }
 0x143   :  { %239 = vmatprep.mubr.msk.bf16.mxu0 %vm29_vm0, %v106_v60  ;;  %v105_v63 = vadd.f32 %v213_v53, %v94_v61 }
 0x145   :  { %v107_v0 = vpack.c.bf16 %v105_v63, %v104_v62 }
 0x147   :  { %240 = vmatmul.mubr.msk.bf16.vlgmr.msra.gmra.mrb[0].mxu0 %vm29_vm0, %v107_v0 }
 0x21a   :  { %v241_v2 = vpop.f32.mrb[0].mxu0 }
 0x21b   :  { %v180_v3 = vadd.f32 %v241_v2, %v214_v1  ;;  %v171_v4 = vpop.f32.mrb[1].mxu0 }
 0x21c   :  { %v172_v5 = vadd.f32 %v214_v1, %v171_v4  ;;  %v242_v6 = vpop.f32.mrb[2].mxu0 }
 0x21d   :  { %v225_v7 = vpack.c.bf16 %v180_v3, %v180_v3  ;;  %v183_v8 = vadd.f32 %v242_v6, %v214_v1  ;;  %v174_v9 = vpop.f32.mrb[3].mxu0 }
 0x21e   :  { %v223_v10 = vpack.c.bf16 %v172_v5, %v172_v5  ;;  %v175_v11 = vadd.f32 %v214_v1, %v174_v9 }
 0x21f   :  { %205 = vst.msk [vmem:[%s334_s5 + $0x8] sm:$0xf] %vm202_vm2, %v225_v7  ;;  %v226_v12 = vpack.c.bf16 %v183_v8, %v183_v8 }
 0x220   :  { %203 = vst.msk [vmem:[%s334_s5] sm:$0xf] %vm202_vm2, %v223_v10  ;;  %v224_v13 = vpack.c.bf16 %v175_v11, %v175_v11 }
 0x221   :  { %207 = vst.msk [vmem:[%s334_s5 + $0xc] sm:$0x7] %vm206_vm3, %v226_v12 }
 0x222   :  { %204 = vst.msk [vmem:[%s334_s5 + $0x4] sm:$0xf] %vm202_vm2, %v224_v13 }

// kernel: _forward_core.25
= control target key start
LH: loop header
LB: loop body
LE: loop exit
PB: predicated region body
PF: predicated region fallthrough
CT: control target
= control target key end

     0   :  { %s521_s9 = smov 0   ;;  %s569_s0 = inlined_call_operand.vmem [shape: bf16[2,16,64], index: 0, kind: input, shape index: {}]   ;;  %s570_s1 = inlined_call_operand.vmem [shape: bf16[2,64,32], index: 1, kind: input, shape index: {}]   ;;  %s571_s2 = inlined_call_operand.vmem [shape: bf16[2,15,32], index: 2, kind: output, shape index: {}]  }
   0x1 LB: > { %s401_s10 = sadd.s32 4294967295, %s502_s9   ;;  %p405_p0 = scmp.ge.s32.totalorder %s502_s9, 1  ;;  %s502_s9 = sphi %s521_s9, %s12_s9  }
   0x2   : > { %p112_p1 = scmp.lt.s32.totalorder %s502_s9, 3 }
   0x4   : > { %p113_p2 = pnand %p405_p0, %p112_p1 }
   0x5   : > { %v483_v0 = vld [vmem:[%s570_s1 + $0x20] sm:$0xff] (!%p113_p2)   ;;  %v504_v1 = vmov (!%p113_p2), 0.0   ;;  %v485_v3 = vld [vmem:[%s570_s1 + $0x28] sm:$0xff] (!%p113_p2)   ;;  %vm505_vm0 = vmmov (!%p113_p2), 0   ;;  %p134_p3 = scmp.lt.s32.totalorder (!%p113_p2), %s401_s10, 1  ;;  %v487_v5 = vld [vmem:[%s570_s1 + $0x30] sm:$0xff] (!%p113_p2)  }
   0x6   : > { %116 = sbr.rel (%p113_p2) target bundleno = 270 (0x10e), region = 28  ;;  %447 = vmatprep.subr.bf16.mxu1 (!%p113_p2), %v504_v1  ;;  %459 = vmatprep.subr.bf16.mxu0 (!%p113_p2), %v504_v1  ;;  %v484_v2 = vld [vmem:[%s570_s1] sm:$0xff] (!%p113_p2)   ;;  %v486_v4 = vld [vmem:[%s570_s1 + $0x8] sm:$0xff] (!%p113_p2)   ;;  %v488_v6 = vld [vmem:[%s570_s1 + $0x10] sm:$0xff] (!%p113_p2)   ;;  %vm200_vm1 = vcmask (!%p113_p2), 523264   ;;  %vm338_vm2 = vcmask (!%p113_p2), 257024  }
   0x7   : > { %448 = vmatpush3.bf16.msra.mxu1 (!%p113_p2), %v483_v0  ;;  %455 = vmatprep.mubr.msk.bf16.mxu1 (!%p113_p2), %vm505_vm0, %v504_v1  ;;  %v489_v8 = vld [vmem:[%s570_s1 + $0x38] sm:$0xff] (!%p113_p2)   ;;  %vm341_vm3 = vsmask.f32 (!%p113_p2), 3328 }
   0x8   : > { %460 = vmatpush3.bf16.msra.mxu0 (!%p113_p2), %v484_v2  ;;  %449 = vmatprep.subr.bf16.mxu1 (!%p113_p2), %v504_v1  ;;  %v490_v11 = vld [vmem:[%s570_s1 + $0x18] sm:$0xff] (!%p113_p2)   ;;  %vm342_vm4 = vmand (!%p113_p2), %vm338_vm2, %vm341_vm3 }
   0x9   : > { %461 = vmatprep.subr.bf16.mxu0 (!%p113_p2), %v504_v1  ;;  %467 = vmatprep.mubr.msk.bf16.mxu0 (!%p113_p2), %vm505_vm0, %v504_v1 }
   0xb   : > { %450 = vmatpush3.bf16.msra.mxu1 (!%p113_p2), %v485_v3 }
   0xc   : > { %462 = vmatpush3.bf16.msra.mxu0 (!%p113_p2), %v486_v4  ;;  %451 = vmatprep.subr.bf16.mxu1 (!%p113_p2), %v504_v1 }
   0xd   : > { %s573_s10 = smov (!%p134_p3, %s401_s10), 1  ;;  %463 = vmatprep.subr.bf16.mxu0 %v504_v1 }
   0xe   : > { %s433_s21 = sshll.u32 %s573_s10, 3 }
   0xf   : > { %s138_s26 = scalar_lea.vmem %s569_s0, %s433_s21  ;;  %452 = vmatpush3.bf16.msra.mxu1 %v487_v5  ;;  %s143_s5 = scalar_lea.vmem %s571_s2, %s433_s21 }
  0x10   : > { %v491_v7 = vld [vmem:[%s138_s26] sm:$0xff]   ;;  %464 = vmatpush3.bf16.msra.mxu0 %v488_v6  ;;  %453 = vmatprep.subr.bf16.mxu1 %v504_v1 }
  0x11   : > { %v170_v9 = vshrl.u32 %v491_v7, 16  ;;  %v172_v10 = vshll.u32 %v491_v7, 16  ;;  %465 = vmatprep.subr.bf16.mxu0 %v504_v1  ;;  %v343_v43 = vld [vmem:[%s143_s5 + $0x4] sm:$0xf] }
  0x13   : > { %v174_v12 = vrot.slane %v172_v10, 1  ;;  %454 = vmatpush3.bf16.msra.mxu1 %v489_v8 }
  0x14   : > { %466 = vmatpush3.bf16.msra.mxu0 %v490_v11 }
  0x15   : > { %v175_v13 = vor.u32 %v174_v12, %v170_v9 }
  0x17   : > { %456 = vmatmul.mubr.msk.bf16.vlgmr.msra.gmra.mrb[0].mxu1 %vm200_vm1, %v175_v13  ;;  %468 = vmatmul.mubr.msk.bf16.vlgmr.msra.gmra.mrb[0].mxu0 %vm200_vm1, %v491_v7 }
  0xea   : > { %v238_v14 = vpop.f32.mrb[0].mxu1  ;;  %v305_v15 = vpop.f32.mrb[0].mxu0 }
  0xeb   : > { %v457_v16 = vpop.f32.mrb[1].mxu1  ;;  %v306_v17 = vadd.f32 %v305_v15, %v238_v14  ;;  %v469_v18 = vpop.f32.mrb[1].mxu0 }
  0xec   : > { %v241_v19 = vpop.f32.mrb[2].mxu1  ;;  %v308_v20 = vpop.f32.mrb[2].mxu0 }
  0xed   : > { %v458_v21 = vpop.f32.mrb[3].mxu1  ;;  %v312_v22 = vmul.f32 %v306_v17, %v306_v17  ;;  %v309_v23 = vadd.f32 %v308_v20, %v241_v19  ;;  %v470_v24 = vpop.f32.mrb[3].mxu0 }
  0xef   : > { %v314_v25 = vmul.f32 %v312_v22, %v306_v17  ;;  %v313_v26 = vmul.f32 %v309_v23, %v309_v23 }
  0xf1   : > { %v316_v27 = vmul.f32 0.044715, %v314_v25  ;;  %v315_v28 = vmul.f32 %v313_v26, %v309_v23 }
  0xf3   : > { %v318_v29 = vadd.f32 %v316_v27, %v306_v17  ;;  %v317_v30 = vmul.f32 0.044715, %v315_v28 }
  0xf5   : > { %v320_v31 = vmul.f32 0.7978846, %v318_v29  ;;  %v319_v32 = vadd.f32 %v317_v30, %v309_v23 }
  0xf7   : > { %492 = vtanh.f32 %v320_v31  ;;  %v321_v33 = vmul.f32 0.7978846, %v319_v32 }
  0xf9   : > { %494 = vtanh.f32 %v321_v33 }
 0x101   : > { %v493_v34 = vpop.eup %492 }
 0x102   : > { %v324_v35 = vadd.f32 1.0, %v493_v34 }
 0x103   : > { %v495_v36 = vpop.eup %494 }
 0x104   : > { %v326_v37 = vmul.f32 0.5, %v324_v35  ;;  %v325_v38 = vadd.f32 1.0, %v495_v36 }
 0x106   : > { %v328_v39 = vmul.f32 %v326_v37, %v306_v17  ;;  %v327_v40 = vmul.f32 0.5, %v325_v38 }
 0x108   : > { %v435_v41 = vpack.c.bf16 %v328_v39, %v328_v39  ;;  %v329_v42 = vmul.f32 %v327_v40, %v309_v23 }
 0x10a   : > { %339 = vst.msk [vmem:[%s143_s5] sm:$0xf] %vm338_vm2, %v435_v41  ;;  %v436_v44 = vpack.c.bf16 %v329_v42, %v329_v42 }
 0x10c   : > { %v344_v45 = vsel %vm342_vm4, %v436_v44, %v343_v43 }
 0x10d   : > { %345 = vst [vmem:[%s143_s5 + $0x4] sm:$0xf] %v344_v45 }
 0x10e PF: > { %s12_s9 = sadd.s32 1, %s502_s9  }
 0x10f   : > { %p9_p4 = scmp.ge.s32.totalorder %s12_s9, 4  }
 0x111   :  { %11 = sbr.rel (!%p9_p4) target bundleno = 1 (0x1), region = 59 }

// kernel: _forward_core.42
= control target key start
LH: loop header
LB: loop body
LE: loop exit
PB: predicated region body
PF: predicated region fallthrough
CT: control target
= control target key end

     0   :  { %s394_s6 = smov 0   ;;  %s396_s7 = smov 0   ;;  %s455_s0 = inlined_call_operand.vmem [shape: bf16[3,2,15,32], index: 0, kind: input, shape index: {}]   ;;  %s456_s1 = inlined_call_operand.vmem [shape: f32[3,2,15,32], index: 1, kind: output, shape index: {}]  }
   0x1   :  { %s398_s8 = smov 0   ;;  %s400_s9 = smov 0  }
   0x2   :  { %s402_s10 = smov 0  }
   0x3 LB: > { %s20_s11 = sadd.s32 1, %s374_s8  ;;  %s23_s12 = sadd.s32 1, %s378_s9  ;;  %s382_s10 = sphi %s402_s10, %s11_s10   ;;  %s378_s9 = sphi %s400_s9, %s460_s9   ;;  %s374_s8 = sphi %s398_s8, %s459_s8   ;;  %s370_s7 = sphi %s396_s7, %s458_s7   ;;  %s366_s6 = sphi %s394_s6, %s457_s6  }
   0x4   : > { %p21_p0 = scmp.ge.s32.totalorder %s20_s11, 2  ;;  %p289_p1 = scmp.ge.s32.totalorder %s382_s10, 1 }
   0x5   : > { %p107_p2 = scmp.lt.s32.totalorder %s382_s10, 7 }
   0x6   : > { %s462_s11 = smov (%p21_p0, %s20_s11), 0  ;;  %s464_s12 = smov (!%p21_p0, %s23_s12), %s378_s9 }
   0x7   : > { %p108_p3 = pnand %p289_p1, %p107_p2  ;;  %p25_p4 = scmp.ge.s32.totalorder %s464_s12, 3 }
   0x8   : > { %p135_p5 = scmp.lt.s32.totalorder (!%p108_p3), %s370_s7, 2  ;;  %p137_p6 = scmp.lt.s32.totalorder (!%p108_p3), %s366_s6, 1  ;;  %vm157_vm0 = vcmask (!%p108_p3), 261120   ;;  %vm159_vm1 = vcmask (!%p108_p3), 260096  }
   0x9   : > { %s466_s12 = smov (%p25_p4, %s464_s12), 0  ;;  %111 = sbr.rel (%p108_p3) target bundleno = 79 (0x4f), region = 24 }
  0x10   : > { %s468_s7 = smov (!%p135_p5, %s370_s7), 2  ;;  %s470_s6 = smov (!%p137_p6, %s366_s6), 1 }
  0x11   : > { %s291_s13 = sshll.u32 %s468_s7, 2  ;;  %s290_s14 = sshll.u32 %s470_s6, 1 }
  0x12   : > { %s424_s15 = sadd.s32 %s291_s13, %s290_s14 }
  0x13   : > { %s292_s16 = sshll.u32 %s424_s15, 2  ;;  %s295_s20 = sshll.u32 %s424_s15, 3 }
  0x14   : > { %s143_s19 = scalar_lea.vmem %s455_s0, %s292_s16  ;;  %s152_s23 = scalar_lea.vmem %s456_s1, %s295_s20 }
  0x15   : > { %v299_v0 = vld [vmem:[%s143_s19] sm:$0xff]  }
  0x16   : > { %v300_v1 = vunpack.c.l.bf16 %v299_v0  ;;  %v301_v2 = vunpack.c.h.bf16 %v299_v0 }
  0x18   : > { %v158_v3 = vsel %vm157_vm0, %v300_v1, 0.0  ;;  %v160_v4 = vsel %vm159_vm1, %v301_v2, 0.0 }
  0x19   : > { %v161_v5 = vadd.f32 %v160_v4, %v158_v3 }
  0x1b   : > { %v162_v6 = vrot.slane %v161_v5, 4 }
  0x1d   : > { %v163_v7 = vadd.f32 %v162_v6, %v161_v5 }
  0x1f   : > { %v164_v8 = vrot.slane %v163_v7, 2 }
  0x21   : > { %v165_v9 = vadd.f32 %v164_v8, %v163_v7 }
  0x23   : > { %v166_v10 = vrot.slane %v165_v9, 1 }
  0x25   : > { %v167_v11 = vadd.f32 %v166_v10, %v165_v9 }
  0x27   : > { %v169_v12 = vmul.f32 0.06666667, %v167_v11 }
  0x29   : > { %v170_v13 = vsub.f32 %v300_v1, %v169_v12  ;;  %v171_v14 = vsub.f32 %v301_v2, %v169_v12 }
  0x2b   : > { %v172_v15 = vmul.f32 %v170_v13, %v170_v13  ;;  %v173_v16 = vmul.f32 %v171_v14, %v171_v14 }
  0x2d   : > { %v174_v17 = vsel %vm157_vm0, %v172_v15, 0.0  ;;  %v175_v18 = vsel %vm159_vm1, %v173_v16, 0.0 }
  0x2e   : > { %v176_v19 = vadd.f32 %v175_v18, %v174_v17 }
  0x30   : > { %v177_v20 = vrot.slane %v176_v19, 4 }
  0x32   : > { %v178_v21 = vadd.f32 %v177_v20, %v176_v19 }
  0x34   : > { %v179_v22 = vrot.slane %v178_v21, 2 }
  0x36   : > { %v180_v23 = vadd.f32 %v179_v22, %v178_v21 }
  0x38   : > { %v181_v24 = vrot.slane %v180_v23, 1 }
  0x3a   : > { %v182_v25 = vadd.f32 %v181_v24, %v180_v23 }
  0x3c   : > { %v183_v26 = vmul.f32 0.06666667, %v182_v25 }
  0x3e   : > { %v184_v27 = vadd.f32 1e-05, %v183_v26 }
  0x40   : > { %342 = vrsqrt.f32 %v184_v27 }
  0x4a   : > { %v343_v28 = vpop.eup %342 }
  0x4b   : > { %v186_v29 = vmul.f32 %v343_v28, %v170_v13  ;;  %v187_v30 = vmul.f32 %v343_v28, %v171_v14 }
  0x4d   : > { %188 = vst.msk [vmem:[%s152_s23] sm:$0xff] %vm157_vm0, %v186_v29 }
  0x4e   : > { %189 = vst.msk [vmem:[%s152_s23 + $0x8] sm:$0x7f] %vm159_vm1, %v187_v30 }
  0x4f PF: > { %s11_s10 = sadd.s32 1, %s382_s10   ;;  %s457_s6 = smov %s374_s8 }
  0x50   : > { %p8_p7 = scmp.ge.s32.totalorder %s11_s10, 8   ;;  %s458_s7 = smov %s378_s9 }
  0x51   : > { %s459_s8 = smov %s462_s11  ;;  %s460_s9 = smov %s466_s12 }
  0x52   :  { %10 = sbr.rel (!%p8_p7) target bundleno = 3 (0x3), region = 54 }

// kernel: _forward_core.28
= control target key start
LH: loop header
LB: loop body
LE: loop exit
PB: predicated region body
PF: predicated region fallthrough
CT: control target
= control target key end

     0   :  { %s1266_s15 = smov 0   ;;  %s1404_s0 = inlined_call_operand.vmem [shape: bf16[2,15,96], index: 0, kind: input, shape index: {}]   ;;  %s1405_s1 = inlined_call_operand.vmem [shape: bf16[32,32], index: 1, kind: input, shape index: {}]   ;;  %s1406_s2 = inlined_call_operand.vmem [shape: f32[1,32], index: 2, kind: input, shape index: {}]   ;;  %s1407_s3 = inlined_call_operand.vmem [shape: bf16[2,15,32], index: 3, kind: input, shape index: {}]   ;;  %s1408_s4 = inlined_call_operand.vmem [shape: bf16[2,15,32], index: 4, kind: output, shape index: {}]  }
   0x1 LB: > { %s1030_s16 = sadd.s32 4294967295, %s1225_s15   ;;  %p1034_p0 = scmp.ge.s32.totalorder %s1225_s15, 1  ;;  %s1225_s15 = sphi %s1266_s15, %s14_s15  }
   0x2   : > { %p172_p1 = scmp.lt.s32.totalorder %s1225_s15, 3 }
   0x4   : > { %p173_p2 = pnand %p1034_p0, %p172_p1 }
   0x5   : > { %p203_p3 = scmp.lt.s32.totalorder (!%p173_p2), %s1030_s16, 1  ;;  %v1227_v0 = vmov (!%p173_p2), 0.0   ;;  %vm1228_vm0 = vmmov (!%p173_p2), 0   ;;  %s1229_s21 = smov (!%p173_p2), 96   ;;  %vm232_vm1 = vcmask (!%p173_p2), 64512   ;;  %vm282_vm2 = vcmask (!%p173_p2), 121856  }
   0x6   : > { %176 = sbr.rel (%p173_p2) target bundleno = 2956 (0xb8c), region = 36  ;;  %1092 = vmatprep.subr.bf16.mxu0 (!%p173_p2), %v1227_v0  ;;  %1094 = vmatprep.mubr.msk.bf16.mxu0 (!%p173_p2), %vm1228_vm0, %v1227_v0  ;;  %vm286_vm3 = vcmask (!%p173_p2), 120832   ;;  %s1230_s22 = smov (!%p173_p2), 64   ;;  %vm312_vm4 = vcmask (!%p173_p2), 1046528   ;;  %vm313_vm5 = vcmask (!%p173_p2), 1047552   ;;  %v1231_v14 = vmov (!%p173_p2), 65535  }
   0x7   : > { %1098 = vmatprep.subr.bf16.mxu1 (!%p173_p2), %v1227_v0  ;;  %1100 = vmatprep.mubr.msk.bf16.mxu1 (!%p173_p2), %vm1228_vm0, %v1227_v0  ;;  %v314_v15 = vsel (!%p173_p2), %vm312_vm4, 4294967295, %v1231_v14  ;;  %s1232_s23 = smov (!%p173_p2), 88   ;;  %s1233_s24 = smov (!%p173_p2), 120   ;;  %vm490_vm6 = vcmask (!%p173_p2), 1043456   ;;  %v222_v60 = vld [vmem:[%s1405_s1 + $0x4] sm:$0xf] (!%p173_p2) }
   0x8   : > { %v1298_v19 = vsel (!%p173_p2), %vm313_vm5, %v314_v15, 0  ;;  %s1234_s25 = smov (!%p173_p2), 56   ;;  %s1235_s28 = smov (!%p173_p2), 80   ;;  %v492_v61 = vsel (!%p173_p2), %vm490_vm6, %v222_v60, 0  ;;  %v223_v60 = vld [vmem:[%s1405_s1 + $0x8] sm:$0xf] (!%p173_p2) }
   0x9   : > { %s1236_s29 = smov (!%p173_p2), 112   ;;  %s1237_s6 = smov (!%p173_p2), 48   ;;  %vm955_vm7 = vcmask (!%p173_p2), 257024   ;;  %vm958_vm8 = vsmask.f32 (!%p173_p2), 3328 }
   0xa   : > { %s1238_s7 = smov (!%p173_p2), 72   ;;  %s1239_s8 = smov (!%p173_p2), 104   ;;  %vm959_vm9 = vmand (!%p173_p2), %vm955_vm7, %vm958_vm8 }
   0xb   : > { %s1240_s11 = smov (!%p173_p2), 40  }
   0xd   : > { %s1410_s16 = smov (!%p203_p3, %s1030_s16), 1 }
   0xe   : > { %s1280_s17 = sshll.u32 %s1410_s16, 3 }
   0xf   : > { %s207_s20 = scalar_lea.vmem %s1404_s0, %s1280_s17  ;;  %s212_s18 = scalar_lea.vmem %s1407_s3, %s1280_s17 }
  0x10   : > { %v1286_v1 = vld [vmem:[%s207_s20] sm:$0xff]  }
  0x11   : > { %230 = vrot.lane.b32.xlu0 %v1286_v1, %s1229_s21 }
  0x83   : > { %v231_v2 = vpop.permute.xlu0 %230 }
  0x84   : > { %v237_v3 = vsel %vm232_vm1, %v231_v2, 0 }
  0x85   : > { %1093 = vmatpush3.bf16.xpose.msra.mxu0 %v237_v3 }
  0x86   : > { %1110 = vmatprep.subr.bf16.mxu0 %v1227_v0 }
  0x8c   : > { %1095 = vmatmul.mubr.msk.bf16.vlgmr.msra.gmra.mrb[0].mxu0 %vm232_vm1, %v1286_v1 }
  0x8d   : > { %1112 = vmatprep.mubr.msk.bf16.mxu0 %vm1228_vm0, %v1227_v0 }
 0x15f   : > { %v273_v4 = vpop.f32.mrb[0].mxu0 }
 0x160   : > { %v280_v5 = vmul.f32 0.35355338, %v273_v4  ;;  %v1096_v6 = vpop.f32.mrb[1].mxu0 }
 0x161   : > { %v276_v7 = vpop.f32.mrb[2].mxu0  ;;  %v221_v6 = vld [vmem:[%s1405_s1] sm:$0xf] }
 0x162   : > { %v281_v8 = vmul.f32 0.35355338, %v276_v7  ;;  %v1097_v9 = vpop.f32.mrb[3].mxu0  ;;  %v283_v10 = vsel %vm282_vm2, %v280_v5, -inf }
 0x163   : > { %284 = vmax.xlane.f32.xlu0 %v283_v10  ;;  %v539_v10 = vsel %vm490_vm6, %v221_v6, 0 }
 0x164   : > { %v287_v11 = vsel %vm286_vm3, %v281_v8, -inf }
 0x165   : > { %288 = vmax.xlane.f32.xlu1 %v287_v11 }
 0x176   : > { %307 = vrot.lane.b32.xlu1 %v1286_v1, %s1230_s22 }
 0x1f0   : > { %v285_v12 = vpop.xlane.xlu0 %284 }
 0x1f1   : > { %v290_v13 = vsub.f32 %v280_v5, %v285_v12 }
 0x1f2   : > { %v289_v16 = vpop.xlane.xlu1 %288 }
 0x1f3   : > { %v292_v17 = vmul.f32 1.442695, %v290_v13  ;;  %v291_v18 = vsub.f32 %v281_v8, %v289_v16 }
 0x1f5   : > { %1187 = vpow2.f32 %v292_v17  ;;  %v294_v20 = vmul.f32 1.442695, %v291_v18 }
 0x1f6   : > { %v308_v21 = vpop.permute.xlu1 %307 }
 0x1f7   : > { %1189 = vpow2.f32 %v294_v20  ;;  %v317_v22 = vand.u32 %v1298_v19, %v308_v21 }
 0x1f9   : > { %1099 = vmatpush3.bf16.msra.mxu1 %v317_v22 }
 0x1fa   : > { %1104 = vmatprep.subr.bf16.mxu1 %v1227_v0 }
 0x1ff   : > { %v1188_v23 = vpop.eup %1187 }
 0x200   : > { %v296_v24 = vsel %vm282_vm2, %v1188_v23, 0.0 }
 0x201   : > { %v1190_v25 = vpop.eup %1189  ;;  %297 = vadd.xlane.f32.xlu1 %v296_v24 }
 0x202   : > { %v299_v26 = vsel %vm286_vm3, %v1190_v25, 0.0 }
 0x205   : > { %300 = vadd.xlane.f32.xlu1 %v299_v26 }
 0x216   : > { %363 = vrot.lane.b32.xlu1 %v1286_v1, %s1232_s23  ;;  %s217_s23 = scalar_lea.vmem %s1408_s4, %s1280_s17 }
 0x21a   : > { %361 = vrot.lane.b32.xlu1 %v1286_v1, %s1233_s24 }
 0x28e   : > { %v298_v27 = vpop.xlane.xlu1 %297 }
 0x28f   : > { %1191 = vrcp.f32 %v298_v27 }
 0x292   : > { %v301_v28 = vpop.xlane.xlu1 %300 }
 0x293   : > { %1193 = vrcp.f32 %v301_v28 }
 0x296   : > { %v364_v31 = vpop.permute.xlu1 %363 }
 0x297   : > { %v369_v34 = vsel %vm232_vm1, %v364_v31, 0 }
 0x299   : > { %v1192_v29 = vpop.eup %1191 }
 0x29a   : > { %v304_v32 = vmul.f32 %v1192_v29, %v1188_v23  ;;  %v362_v36 = vpop.permute.xlu1 %361 }
 0x29d   : > { %v1194_v30 = vpop.eup %1193 }
 0x29e   : > { %v305_v33 = vmul.f32 %v1194_v30, %v1190_v25 }
 0x2a0   : > { %v306_v35 = vpack.c.bf16 %v305_v33, %v304_v32 }
 0x2a2   : > { %1101 = vmatmul.mubr.msk.bf16.vlgmr.msra.gmra.mrb[0].mxu1 %vm282_vm2, %v306_v35 }
 0x2a3   : > { %1105 = vmatpush3.bf16.xpose.msra.mxu1 %v369_v34  ;;  %1106 = vmatprep.mubr.msk.bf16.mxu1 %vm1228_vm0, %v1227_v0 }
 0x2a4   : > { %1116 = vmatprep.subr.bf16.mxu1 %v1227_v0 }
 0x2aa   : > { %1107 = vmatmul.mubr.msk.bf16.vlgmr.msra.gmra.mrb[4].mxu1 %vm232_vm1, %v362_v36 }
 0x2ab   : > { %1118 = vmatprep.mubr.msk.bf16.mxu1 %vm1228_vm0, %v1227_v0  ;;  %1117 = vmatpush3.bf16.msra.mxu1 %v492_v61  ;;  %v712_v61 = vsel %vm490_vm6, %v223_v60, 0 }
 0x2ac   : > { %1128 = vmatprep.subr.bf16.mxu1 %v1227_v0 }
 0x375   : > { %v353_v37 = vpop.f32.mrb[0].mxu1 }
 0x376   : > { %v1102_v38 = vpop.f32.mrb[1].mxu1 }
 0x377   : > { %v356_v39 = vpop.f32.mrb[2].mxu1 }
 0x378   : > { %v360_v40 = vpack.c.bf16 %v356_v39, %v353_v37  ;;  %v1103_v41 = vpop.f32.mrb[3].mxu1 }
 0x37d   : > { %v405_v42 = vpop.f32.mrb[4].mxu1 }
 0x37e   : > { %v412_v43 = vmul.f32 0.35355338, %v405_v42  ;;  %v1108_v44 = vpop.f32.mrb[5].mxu1 }
 0x37f   : > { %v408_v45 = vpop.f32.mrb[6].mxu1 }
 0x380   : > { %v413_v46 = vmul.f32 0.35355338, %v408_v45  ;;  %v1109_v47 = vpop.f32.mrb[7].mxu1  ;;  %v414_v48 = vsel %vm282_vm2, %v412_v43, -inf }
 0x381   : > { %415 = vmax.xlane.f32.xlu0 %v414_v48 }
 0x382   : > { %v417_v49 = vsel %vm286_vm3, %v413_v46, -inf }
 0x383   : > { %418 = vmax.xlane.f32.xlu1 %v417_v49 }
 0x40e   : > { %v416_v50 = vpop.xlane.xlu0 %415 }
 0x40f   : > { %v420_v51 = vsub.f32 %v412_v43, %v416_v50 }
 0x410   : > { %v419_v52 = vpop.xlane.xlu1 %418 }
 0x411   : > { %v422_v53 = vmul.f32 1.442695, %v420_v51  ;;  %v421_v54 = vsub.f32 %v413_v46, %v419_v52 }
 0x413   : > { %1195 = vpow2.f32 %v422_v53  ;;  %v424_v55 = vmul.f32 1.442695, %v421_v54 }
 0x415   : > { %1197 = vpow2.f32 %v424_v55 }
 0x41d   : > { %v1196_v56 = vpop.eup %1195 }
 0x41e   : > { %v426_v57 = vsel %vm282_vm2, %v1196_v56, 0.0 }
 0x41f   : > { %v1198_v58 = vpop.eup %1197  ;;  %427 = vadd.xlane.f32.xlu0 %v426_v57 }
 0x420   : > { %v429_v59 = vsel %vm286_vm3, %v1198_v58, 0.0 }
 0x423   : > { %430 = vadd.xlane.f32.xlu0 %v429_v59 }
 0x439   : > { %437 = vrot.lane.b32.xlu0 %v1286_v1, %s1234_s25 }
 0x43d   : > { %584 = vrot.lane.b32.xlu0 %v1286_v1, %s1235_s28 }
 0x441   : > { %582 = vrot.lane.b32.xlu0 %v1286_v1, %s1236_s29 }
 0x4ac   : > { %v428_v62 = vpop.xlane.xlu0 %427 }
 0x4ad   : > { %1199 = vrcp.f32 %v428_v62 }
 0x4b0   : > { %v431_v63 = vpop.xlane.xlu0 %430 }
 0x4b1   : > { %1201 = vrcp.f32 %v431_v63 }
 0x4b4   : > { %v438_v2 = vpop.permute.xlu0 %437 }
 0x4b5   : > { %v443_v3 = vand.u32 %v438_v2, %v1298_v19 }
 0x4b7   : > { %1111 = vmatpush3.bf16.msra.mxu0 %v443_v3  ;;  %v1200_v4 = vpop.eup %1199 }
 0x4b8   : > { %1122 = vmatprep.subr.bf16.mxu0 %v1227_v0  ;;  %v434_v7 = vmul.f32 %v1200_v4, %v1196_v56  ;;  %v585_v12 = vpop.permute.xlu0 %584 }
 0x4b9   : > { %v590_v16 = vsel %vm232_vm1, %v585_v12, 0 }
 0x4bb   : > { %v1202_v5 = vpop.eup %1201 }
 0x4bc   : > { %v435_v8 = vmul.f32 %v1202_v5, %v1198_v58  ;;  %v583_v22 = vpop.permute.xlu0 %582 }
 0x4be   : > { %v436_v9 = vpack.c.bf16 %v435_v8, %v434_v7 }
 0x4c0   : > { %1113 = vmatmul.mubr.msk.bf16.vlgmr.msra.gmra.mrb[4].mxu0 %vm282_vm2, %v436_v9 }
 0x4c1   : > { %1123 = vmatpush3.bf16.msra.mxu0 %v539_v10  ;;  %1124 = vmatprep.mubr.msk.bf16.mxu0 %vm1228_vm0, %v1227_v0 }
 0x4c2   : > { %1134 = vmatprep.subr.bf16.mxu0 %v1227_v0 }
 0x4c8   : > { %1125 = vmatmul.mubr.msk.bf16.vlgmr.msra.gmra.mrb[8].mxu0 %vm232_vm1, %v360_v40 }
 0x4c9   : > { %1136 = vmatprep.mubr.msk.bf16.mxu0 %vm1228_vm0, %v1227_v0 }
 0x593   : > { %v479_v11 = vpop.f32.mrb[4].mxu0 }
 0x594   : > { %v1114_v13 = vpop.f32.mrb[5].mxu0 }
 0x595   : > { %v482_v14 = vpop.f32.mrb[6].mxu0 }
 0x596   : > { %v486_v15 = vpack.c.bf16 %v482_v14, %v479_v11  ;;  %v1115_v17 = vpop.f32.mrb[7].mxu0 }
 0x598   : > { %1119 = vmatmul.mubr.msk.bf16.vlgmr.msra.gmra.mrb[8].mxu1 %vm232_vm1, %v486_v15 }
 0x599   : > { %1129 = vmatpush3.bf16.xpose.msra.mxu1 %v590_v16  ;;  %1130 = vmatprep.mubr.msk.bf16.mxu1 %vm1228_vm0, %v1227_v0 }
 0x59a   : > { %1140 = vmatprep.subr.bf16.mxu1 %v1227_v0 }
 0x59b   : > { %v575_v18 = vpop.f32.mrb[8].mxu0 }
 0x59c   : > { %v1126_v20 = vpop.f32.mrb[9].mxu0 }
 0x59d   : > { %v578_v21 = vpop.f32.mrb[10].mxu0 }
 0x59e   : > { %v1127_v23 = vpop.f32.mrb[11].mxu0 }
 0x59f   : > { %v224_v23 = vld [vmem:[%s1405_s1 + $0xc] sm:$0xf] }
 0x5a0   : > { %1131 = vmatmul.mubr.msk.bf16.vlgmr.msra.gmra.mrb[12].mxu1 %vm232_vm1, %v583_v22 }
 0x5a1   : > { %1142 = vmatprep.mubr.msk.bf16.mxu1 %vm1228_vm0, %v1227_v0  ;;  %1141 = vmatpush3.bf16.msra.mxu1 %v712_v61 }
 0x5a2   : > { %1152 = vmatprep.subr.bf16.mxu1 %v1227_v0 }
 0x66b   : > { %v528_v24 = vpop.f32.mrb[8].mxu1 }
 0x66c   : > { %v1347_v25 = vadd.f32 %v575_v18, %v528_v24  ;;  %v1120_v26 = vpop.f32.mrb[9].mxu1  ;;  %v887_v24 = vsel %vm490_vm6, %v224_v23, 0 }
 0x66d   : > { %v531_v27 = vpop.f32.mrb[10].mxu1 }
 0x66e   : > { %v1349_v28 = vadd.f32 %v578_v21, %v531_v27  ;;  %v1121_v29 = vpop.f32.mrb[11].mxu1 }
 0x673   : > { %v626_v30 = vpop.f32.mrb[12].mxu1 }
 0x674   : > { %v633_v31 = vmul.f32 0.35355338, %v626_v30  ;;  %v1132_v32 = vpop.f32.mrb[13].mxu1 }
 0x675   : > { %v629_v33 = vpop.f32.mrb[14].mxu1 }
 0x676   : > { %v634_v34 = vmul.f32 0.35355338, %v629_v33  ;;  %v1133_v35 = vpop.f32.mrb[15].mxu1  ;;  %v635_v36 = vsel %vm282_vm2, %v633_v31, -inf }
 0x677   : > { %636 = vmax.xlane.f32.xlu1 %v635_v36 }
 0x678   : > { %v638_v37 = vsel %vm286_vm3, %v634_v34, -inf }
 0x679   : > { %639 = vmax.xlane.f32.xlu0 %v638_v37 }
 0x688   : > { %658 = vrot.lane.b32.xlu1 %v1286_v1, %s1237_s6 }
 0x704   : > { %v637_v38 = vpop.xlane.xlu1 %636 }
 0x705   : > { %v641_v39 = vsub.f32 %v633_v31, %v637_v38 }
 0x706   : > { %v640_v40 = vpop.xlane.xlu0 %639 }
 0x707   : > { %v643_v41 = vmul.f32 1.442695, %v641_v39  ;;  %v642_v42 = vsub.f32 %v634_v34, %v640_v40 }
 0x708   : > { %v659_v43 = vpop.permute.xlu1 %658 }
 0x709   : > { %1203 = vpow2.f32 %v643_v41  ;;  %v645_v44 = vmul.f32 1.442695, %v642_v42  ;;  %v664_v45 = vand.u32 %v659_v43, %v1298_v19 }
 0x70b   : > { %1205 = vpow2.f32 %v645_v44  ;;  %1135 = vmatpush3.bf16.msra.mxu0 %v664_v45  ;;  %v1054_v45 = vld [vmem:[%s1406_s2] ss:$0 sm:$0xff] }
 0x70c   : > { %1146 = vmatprep.subr.bf16.mxu0 %v1227_v0 }
 0x713   : > { %v1204_v46 = vpop.eup %1203 }
 0x714   : > { %v647_v47 = vsel %vm282_vm2, %v1204_v46, 0.0 }
 0x715   : > { %v1206_v48 = vpop.eup %1205  ;;  %648 = vadd.xlane.f32.xlu1 %v647_v47 }
 0x716   : > { %v650_v49 = vsel %vm286_vm3, %v1206_v48, 0.0 }
 0x719   : > { %651 = vadd.xlane.f32.xlu1 %v650_v49 }
 0x72a   : > { %759 = vrot.lane.b32.xlu1 %v1286_v1, %s1238_s7 }
 0x72e   : > { %757 = vrot.lane.b32.xlu1 %v1286_v1, %s1239_s8 }
 0x7a2   : > { %v649_v50 = vpop.xlane.xlu1 %648 }
 0x7a3   : > { %1207 = vrcp.f32 %v649_v50 }
 0x7a6   : > { %v652_v51 = vpop.xlane.xlu1 %651 }
 0x7a7   : > { %1209 = vrcp.f32 %v652_v51 }
 0x7aa   : > { %v760_v54 = vpop.permute.xlu1 %759 }
 0x7ab   : > { %v765_v57 = vsel %vm232_vm1, %v760_v54, 0 }
 0x7ad   : > { %v1208_v52 = vpop.eup %1207 }
 0x7ae   : > { %v655_v55 = vmul.f32 %v1208_v52, %v1204_v46  ;;  %v758_v59 = vpop.permute.xlu1 %757 }
 0x7b1   : > { %v1210_v53 = vpop.eup %1209 }
 0x7b2   : > { %v656_v56 = vmul.f32 %v1210_v53, %v1206_v48 }
 0x7b4   : > { %v657_v58 = vpack.c.bf16 %v656_v56, %v655_v55 }
 0x7b6   : > { %1137 = vmatmul.mubr.msk.bf16.vlgmr.msra.gmra.mrb[12].mxu0 %vm282_vm2, %v657_v58  ;;  %v960_v58 = vld [vmem:[%s217_s23 + $0x4] sm:$0xf] }
 0x7b7   : > { %1147 = vmatpush3.bf16.xpose.msra.mxu0 %v765_v57  ;;  %1148 = vmatprep.mubr.msk.bf16.mxu0 %vm1228_vm0, %v1227_v0 }
 0x7b8   : > { %1158 = vmatprep.subr.bf16.mxu0 %v1227_v0 }
 0x7be   : > { %1149 = vmatmul.mubr.msk.bf16.vlgmr.msra.gmra.mrb[16].mxu0 %vm232_vm1, %v758_v59 }
 0x7bf   : > { %1160 = vmatprep.mubr.msk.bf16.mxu0 %vm1228_vm0, %v1227_v0  ;;  %1159 = vmatpush3.bf16.msra.mxu0 %v887_v24 }
 0x889   : > { %v700_v62 = vpop.f32.mrb[12].mxu0 }
 0x88a   : > { %v1138_v63 = vpop.f32.mrb[13].mxu0 }
 0x88b   : > { %v703_v2 = vpop.f32.mrb[14].mxu0 }
 0x88c   : > { %v707_v3 = vpack.c.bf16 %v703_v2, %v700_v62  ;;  %v1139_v4 = vpop.f32.mrb[15].mxu0 }
 0x88e   : > { %1143 = vmatmul.mubr.msk.bf16.vlgmr.msra.gmra.mrb[16].mxu1 %vm232_vm1, %v707_v3 }
 0x88f   : > { %1154 = vmatprep.mubr.msk.bf16.mxu1 %vm1228_vm0, %v1227_v0 }
 0x891   : > { %v801_v5 = vpop.f32.mrb[16].mxu0 }
 0x892   : > { %v808_v6 = vmul.f32 0.35355338, %v801_v5  ;;  %v1150_v7 = vpop.f32.mrb[17].mxu0 }
 0x893   : > { %v804_v8 = vpop.f32.mrb[18].mxu0 }
 0x894   : > { %v809_v9 = vmul.f32 0.35355338, %v804_v8  ;;  %v1151_v10 = vpop.f32.mrb[19].mxu0  ;;  %v810_v11 = vsel %vm282_vm2, %v808_v6, -inf }
 0x895   : > { %811 = vmax.xlane.f32.xlu0 %v810_v11 }
 0x896   : > { %v813_v12 = vsel %vm286_vm3, %v809_v9, -inf }
 0x897   : > { %814 = vmax.xlane.f32.xlu1 %v813_v12 }
 0x922   : > { %v812_v13 = vpop.xlane.xlu0 %811 }
 0x923   : > { %v816_v14 = vsub.f32 %v808_v6, %v812_v13 }
 0x924   : > { %v815_v15 = vpop.xlane.xlu1 %814 }
 0x925   : > { %v818_v16 = vmul.f32 1.442695, %v816_v14  ;;  %v817_v17 = vsub.f32 %v809_v9, %v815_v15 }
 0x927   : > { %1211 = vpow2.f32 %v818_v16  ;;  %v820_v18 = vmul.f32 1.442695, %v817_v17 }
 0x929   : > { %1213 = vpow2.f32 %v820_v18 }
 0x931   : > { %v1212_v0 = vpop.eup %1211 }
 0x932   : > { %v822_v20 = vsel %vm282_vm2, %v1212_v0, 0.0 }
 0x933   : > { %v1214_v21 = vpop.eup %1213  ;;  %823 = vadd.xlane.f32.xlu0 %v822_v20 }
 0x934   : > { %v825_v22 = vsel %vm286_vm3, %v1214_v21, 0.0 }
 0x937   : > { %826 = vadd.xlane.f32.xlu0 %v825_v22 }
 0x94d   : > { %833 = vrot.lane.b32.xlu0 %v1286_v1, %s1240_s11 }
 0x961   : > { %v748_v26 = vpop.f32.mrb[16].mxu1 }
 0x962   : > { %v755_v27 = vadd.f32 %v748_v26, %v1347_v25  ;;  %v1144_v29 = vpop.f32.mrb[17].mxu1 }
 0x963   : > { %v751_v30 = vpop.f32.mrb[18].mxu1 }
 0x964   : > { %v756_v31 = vadd.f32 %v751_v30, %v1349_v28  ;;  %v1145_v32 = vpop.f32.mrb[19].mxu1 }
 0x9c0   : > { %v824_v33 = vpop.xlane.xlu0 %823 }
 0x9c1   : > { %1215 = vrcp.f32 %v824_v33 }
 0x9c4   : > { %v827_v34 = vpop.xlane.xlu0 %826 }
 0x9c5   : > { %1217 = vrcp.f32 %v827_v34 }
 0x9c8   : > { %v834_v1 = vpop.permute.xlu0 %833 }
 0x9c9   : > { %v839_v35 = vand.u32 %v834_v1, %v1298_v19  ;;  %v1065_v19 = vld [vmem:[%s212_s18] sm:$0xff]  }
 0x9ca   : > { %v1066_v47 = vunpack.c.l.bf16 %v1065_v19  ;;  %v1067_v52 = vunpack.c.h.bf16 %v1065_v19 }
 0x9cb   : > { %1153 = vmatpush3.bf16.msra.mxu1 %v839_v35  ;;  %v1216_v36 = vpop.eup %1215 }
 0x9cc   : > { %v830_v38 = vmul.f32 %v1216_v36, %v1212_v0 }
 0x9cf   : > { %v1218_v37 = vpop.eup %1217 }
 0x9d0   : > { %v831_v39 = vmul.f32 %v1218_v37, %v1214_v21 }
 0x9d2   : > { %v832_v40 = vpack.c.bf16 %v831_v39, %v830_v38 }
 0x9d4   : > { %1155 = vmatmul.mubr.msk.bf16.vlgmr.msra.gmra.mrb[20].mxu1 %vm282_vm2, %v832_v40 }
 0xaa7   : > { %v875_v25 = vpop.f32.mrb[20].mxu1 }
 0xaa8   : > { %v1156_v41 = vpop.f32.mrb[21].mxu1 }
 0xaa9   : > { %v878_v28 = vpop.f32.mrb[22].mxu1 }
 0xaaa   : > { %v882_v42 = vpack.c.bf16 %v878_v28, %v875_v25  ;;  %v1157_v43 = vpop.f32.mrb[23].mxu1 }
 0xaac   : > { %1161 = vmatmul.mubr.msk.bf16.vlgmr.msra.gmra.mrb[20].mxu0 %vm232_vm1, %v882_v42 }
 0xb7f   : > { %v923_v44 = vpop.f32.mrb[20].mxu0 }
 0xb80   : > { %v930_v46 = vadd.f32 %v923_v44, %v755_v27  ;;  %v1162_v48 = vpop.f32.mrb[21].mxu0 }
 0xb81   : > { %v926_v49 = vpop.f32.mrb[22].mxu0 }
 0xb82   : > { %v939_v50 = vadd.f32 %v1054_v45, %v930_v46  ;;  %v931_v51 = vadd.f32 %v926_v49, %v756_v31  ;;  %v1163_v53 = vpop.f32.mrb[23].mxu0 }
 0xb84   : > { %v945_v54 = vadd.f32 %v1066_v47, %v939_v50  ;;  %v940_v55 = vadd.f32 %v1054_v45, %v931_v51 }
 0xb86   : > { %v1062_v56 = vpack.c.bf16 %v945_v54, %v945_v54  ;;  %v946_v57 = vadd.f32 %v1067_v52, %v940_v55 }
 0xb88   : > { %956 = vst.msk [vmem:[%s217_s23] sm:$0xf] %vm955_vm7, %v1062_v56  ;;  %v1063_v59 = vpack.c.bf16 %v946_v57, %v946_v57 }
 0xb8a   : > { %v961_v60 = vsel %vm959_vm9, %v1063_v59, %v960_v58 }
 0xb8b   : > { %962 = vst [vmem:[%s217_s23 + $0x4] sm:$0xf] %v961_v60 }
 0xb8c PF: > { %s14_s15 = sadd.s32 1, %s1225_s15  }
 0xb8d   : > { %p11_p4 = scmp.ge.s32.totalorder %s14_s15, 4  }
 0xb8f   :  { %13 = sbr.rel (!%p11_p4) target bundleno = 1 (0x1), region = 69 }

// kernel: _forward_core.29
= control target key start
LH: loop header
LB: loop body
LE: loop exit
PB: predicated region body
PF: predicated region fallthrough
CT: control target
= control target key end

     0   :  { %vm35_vm0 = vcmask 261120   ;;  %vm45_vm1 = vcmask 259072   ;;  %vm269_vm2 = vcmask 523264   ;;  %vm345_vm3 = vcmask 257024   ;;  %s554_s0 = inlined_call_operand.vmem [shape: bf16[30,32], index: 0, kind: input, shape index: {}]   ;;  %s555_s3 = inlined_call_operand.vmem [shape: bf16[32,64], index: 3, kind: input, shape index: {}]   ;;  %s556_s1 = inlined_call_operand.vmem [shape: f32[1,32], index: 1, kind: input, shape index: {}]   ;;  %s557_s2 = inlined_call_operand.vmem [shape: f32[1,32], index: 2, kind: input, shape index: {}]   ;;  %s558_s5 = inlined_call_operand.vmem [shape: bf16[64,32], index: 5, kind: input, shape index: {}]   ;;  %s559_s4 = inlined_call_operand.vmem [shape: f32[1,64], index: 4, kind: input, shape index: {}]   ;;  %s560_s6 = inlined_call_operand.vmem [shape: f32[1,32], index: 6, kind: input, shape index: {}]   ;;  %s561_s7 = inlined_call_operand.vmem [shape: bf16[30,32], index: 7, kind: output, shape index: {}]  }
   0x1   :  { %v378_v0 = vld [vmem:[%s554_s0] sm:$0xff]   ;;  %v29_v1 = vld [vmem:[%s554_s0 + $0x8] sm:$0xf]  ;;  %v30_v2 = vld [vmem:[%s554_s0 + $0xc] sm:$0x7]  ;;  %vm349_vm4 = vcmask 256000  }
   0x2   :  { %v482_v3 = vunpack.c.l.bf16 %v378_v0  ;;  %v484_v4 = vunpack.c.l.bf16 %v29_v1  ;;  %v486_v5 = vunpack.c.h.bf16 %v378_v0  ;;  %v488_v6 = vunpack.c.l.bf16 %v30_v2  ;;  %v411_v31 = vld [vmem:[%s555_s3] sm:$0xff]   ;;  %v412_v32 = vld [vmem:[%s555_s3 + $0x8] sm:$0xff]  }
   0x3   :  { %391 = vmatprep.subr.bf16.mxu0 %v411_v31  ;;  %v355_v47 = vld [vmem:[%s556_s1] ss:$0 sm:$0xff]  ;;  %v414_v2 = vld [vmem:[%s558_s5 + $0x8] sm:$0xff]  }
   0x4   :  { %v36_v7 = vsel %vm35_vm0, %v482_v3, 0.0  ;;  %v42_v8 = vsel %vm35_vm0, %v484_v4, 0.0  ;;  %v39_v9 = vsel %vm35_vm0, %v486_v5, 0.0  ;;  %v46_v10 = vsel %vm45_vm1, %v488_v6, 0.0  ;;  %392 = vmatpush3.bf16.msra.mxu0 %v411_v31  ;;  %v356_v53 = vld [vmem:[%s557_s2] ss:$0 sm:$0xff] }
   0x5   :  { %37 = vadd.xlane.f32.xlu0 %v36_v7  ;;  %43 = vadd.xlane.f32.xlu1 %v42_v8  ;;  %v413_v1 = vld [vmem:[%s558_s5] sm:$0xff]   ;;  %v415_v7 = vld [vmem:[%s558_s5 + $0x10] sm:$0xff]   ;;  %v416_v8 = vld [vmem:[%s558_s5 + $0x18] sm:$0xff]  }
   0x6   :  { %393 = vmatprep.subr.bf16.mxu0 %v412_v32  ;;  %399 = vmatprep.subr.bf16.mxu1 %v413_v1 }
   0x7   :  { %400 = vmatpush3.bf16.msra.mxu1 %v413_v1 }
   0x8   :  { %394 = vmatpush3.bf16.msra.mxu0 %v412_v32  ;;  %401 = vmatprep.subr.bf16.mxu1 %v414_v2 }
   0x9   :  { %40 = vadd.xlane.f32.xlu0 %v39_v9  ;;  %47 = vadd.xlane.f32.xlu1 %v46_v10  ;;  %v357_v9 = vld [vmem:[%s559_s4] ss:$0 sm:$0xff] }
   0xb   :  { %402 = vmatpush3.bf16.msra.mxu1 %v414_v2 }
   0xc   :  { %403 = vmatprep.subr.bf16.mxu1 %v415_v7 }
   0xf   :  { %404 = vmatpush3.bf16.msra.mxu1 %v415_v7 }
  0x10   :  { %405 = vmatprep.subr.bf16.mxu1 %v416_v8 }
  0x13   :  { %406 = vmatpush3.bf16.msra.mxu1 %v416_v8 }
  0x92   :  { %v38_v11 = vpop.xlane.xlu0 %37  ;;  %v44_v12 = vpop.xlane.xlu1 %43 }
  0x93   :  { %v50_v13 = vmul.f32 0.03125, %v38_v11  ;;  %v52_v14 = vmul.f32 0.03125, %v44_v12 }
  0x95   :  { %v54_v15 = vsub.f32 %v482_v3, %v50_v13  ;;  %v56_v16 = vsub.f32 %v484_v4, %v52_v14 }
  0x96   :  { %v41_v17 = vpop.xlane.xlu0 %40  ;;  %v48_v18 = vpop.xlane.xlu1 %47 }
  0x97   :  { %v51_v19 = vmul.f32 0.03125, %v41_v17  ;;  %v53_v20 = vmul.f32 0.03125, %v48_v18  ;;  %v58_v21 = vmul.f32 %v54_v15, %v54_v15  ;;  %v60_v22 = vmul.f32 %v56_v16, %v56_v16 }
  0x99   :  { %v55_v23 = vsub.f32 %v486_v5, %v51_v19  ;;  %v57_v24 = vsub.f32 %v488_v6, %v53_v20  ;;  %v62_v25 = vsel %vm35_vm0, %v58_v21, 0.0  ;;  %v68_v26 = vsel %vm35_vm0, %v60_v22, 0.0 }
  0x9a   :  { %63 = vadd.xlane.f32.xlu0 %v62_v25 }
  0x9b   :  { %v59_v27 = vmul.f32 %v55_v23, %v55_v23  ;;  %v61_v28 = vmul.f32 %v57_v24, %v57_v24 }
  0x9d   :  { %v65_v29 = vsel %vm35_vm0, %v59_v27, 0.0  ;;  %v71_v30 = vsel %vm45_vm1, %v61_v28, 0.0 }
  0x9e   :  { %69 = vadd.xlane.f32.xlu0 %v68_v26  ;;  %66 = vadd.xlane.f32.xlu1 %v65_v29 }
  0xa2   :  { %72 = vadd.xlane.f32.xlu1 %v71_v30 }
 0x127   :  { %v64_v33 = vpop.xlane.xlu0 %63 }
 0x128   :  { %v74_v34 = vmul.f32 0.03125, %v64_v33 }
 0x12a   :  { %v78_v35 = vadd.f32 1e-05, %v74_v34 }
 0x12b   :  { %v67_v36 = vpop.xlane.xlu1 %66  ;;  %v70_v37 = vpop.xlane.xlu0 %69 }
 0x12c   :  { %417 = vrsqrt.f32 %v78_v35  ;;  %v75_v38 = vmul.f32 0.03125, %v67_v36  ;;  %v76_v39 = vmul.f32 0.03125, %v70_v37 }
 0x12e   :  { %v79_v40 = vadd.f32 1e-05, %v75_v38  ;;  %v80_v41 = vadd.f32 1e-05, %v76_v39 }
 0x12f   :  { %v73_v42 = vpop.xlane.xlu1 %72 }
 0x130   :  { %419 = vrsqrt.f32 %v79_v40  ;;  %v77_v43 = vmul.f32 0.03125, %v73_v42 }
 0x131   :  { %421 = vrsqrt.f32 %v80_v41 }
 0x132   :  { %v81_v44 = vadd.f32 1e-05, %v77_v43 }
 0x134   :  { %423 = vrsqrt.f32 %v81_v44 }
 0x136   :  { %v418_v45 = vpop.eup %417 }
 0x137   :  { %v86_v46 = vmul.f32 %v418_v45, %v54_v15 }
 0x139   :  { %v97_v51 = vmul.f32 %v355_v47, %v86_v46 }
 0x13a   :  { %v420_v48 = vpop.eup %419 }
 0x13b   :  { %v422_v49 = vpop.eup %421  ;;  %v87_v50 = vmul.f32 %v420_v48, %v55_v23  ;;  %v108_v57 = vadd.f32 %v356_v53, %v97_v51 }
 0x13c   :  { %v88_v52 = vmul.f32 %v422_v49, %v56_v16 }
 0x13d   :  { %v98_v54 = vmul.f32 %v355_v47, %v87_v50 }
 0x13e   :  { %v424_v55 = vpop.eup %423  ;;  %v99_v59 = vmul.f32 %v355_v47, %v88_v52 }
 0x13f   :  { %v89_v56 = vmul.f32 %v424_v55, %v57_v24  ;;  %v109_v58 = vadd.f32 %v356_v53, %v98_v54 }
 0x140   :  { %v110_v62 = vadd.f32 %v356_v53, %v99_v59 }
 0x141   :  { %v112_v60 = vpack.c.bf16 %v109_v58, %v108_v57  ;;  %v100_v61 = vmul.f32 %v355_v47, %v89_v56  ;;  %v362_v56 = vld [vmem:[%s560_s6] ss:$0 sm:$0xff] }
 0x143   :  { %395 = vmatprep.mubr.msk.bf16.mxu0 %vm35_vm0, %v112_v60  ;;  %v111_v63 = vadd.f32 %v356_v53, %v100_v61 }
 0x145   :  { %v113_v0 = vpack.c.bf16 %v111_v63, %v110_v62 }
 0x147   :  { %396 = vmatmul.mubr.msk.bf16.vlgmr.msra.gmra.mrb[0].mxu0 %vm35_vm0, %v113_v0 }
 0x21a   :  { %v397_v10 = vpop.f32.mrb[0].mxu0 }
 0x21b   :  { %v186_v11 = vadd.f32 %v397_v10, %v357_v9  ;;  %v177_v12 = vpop.f32.mrb[1].mxu0 }
 0x21c   :  { %v178_v13 = vadd.f32 %v357_v9, %v177_v12  ;;  %v398_v14 = vpop.f32.mrb[2].mxu0 }
 0x21d   :  { %v194_v15 = vmul.f32 %v186_v11, %v186_v11  ;;  %v189_v16 = vadd.f32 %v398_v14, %v357_v9  ;;  %v180_v17 = vpop.f32.mrb[3].mxu0 }
 0x21e   :  { %v192_v18 = vmul.f32 %v178_v13, %v178_v13  ;;  %v181_v19 = vadd.f32 %v357_v9, %v180_v17 }
 0x21f   :  { %v198_v20 = vmul.f32 %v194_v15, %v186_v11  ;;  %v195_v21 = vmul.f32 %v189_v16, %v189_v16 }
 0x220   :  { %v196_v22 = vmul.f32 %v192_v18, %v178_v13  ;;  %v193_v23 = vmul.f32 %v181_v19, %v181_v19 }
 0x221   :  { %v202_v24 = vmul.f32 0.044715, %v198_v20  ;;  %v199_v25 = vmul.f32 %v195_v21, %v189_v16 }
 0x222   :  { %v200_v26 = vmul.f32 0.044715, %v196_v22  ;;  %v197_v27 = vmul.f32 %v193_v23, %v181_v19 }
 0x223   :  { %v206_v28 = vadd.f32 %v202_v24, %v186_v11  ;;  %v203_v29 = vmul.f32 0.044715, %v199_v25 }
 0x224   :  { %v204_v30 = vadd.f32 %v200_v26, %v178_v13  ;;  %v201_v31 = vmul.f32 0.044715, %v197_v27 }
 0x225   :  { %v210_v32 = vmul.f32 0.7978846, %v206_v28  ;;  %v207_v33 = vadd.f32 %v203_v29, %v189_v16 }
 0x226   :  { %v208_v34 = vmul.f32 0.7978846, %v204_v30  ;;  %v205_v35 = vadd.f32 %v201_v31, %v181_v19 }
 0x227   :  { %425 = vtanh.f32 %v210_v32  ;;  %v211_v36 = vmul.f32 0.7978846, %v207_v33 }
 0x228   :  { %v209_v37 = vmul.f32 0.7978846, %v205_v35  ;;  %427 = vtanh.f32 %v208_v34 }
 0x229   :  { %429 = vtanh.f32 %v211_v36 }
 0x22a   :  { %431 = vtanh.f32 %v209_v37 }
 0x231   :  { %v426_v38 = vpop.eup %425 }
 0x232   :  { %v428_v39 = vpop.eup %427  ;;  %v218_v40 = vadd.f32 1.0, %v426_v38 }
 0x233   :  { %v430_v41 = vpop.eup %429  ;;  %v216_v42 = vadd.f32 1.0, %v428_v39 }
 0x234   :  { %v432_v43 = vpop.eup %431  ;;  %v222_v44 = vmul.f32 0.5, %v218_v40  ;;  %v219_v45 = vadd.f32 1.0, %v430_v41 }
 0x235   :  { %v217_v46 = vadd.f32 1.0, %v432_v43  ;;  %v220_v47 = vmul.f32 0.5, %v216_v42 }
 0x236   :  { %v223_v48 = vmul.f32 0.5, %v219_v45  ;;  %v226_v50 = vmul.f32 %v222_v44, %v186_v11 }
 0x237   :  { %v221_v49 = vmul.f32 0.5, %v217_v46  ;;  %v224_v52 = vmul.f32 %v220_v47, %v178_v13 }
 0x238   :  { %v227_v51 = vmul.f32 %v223_v48, %v189_v16 }
 0x239   :  { %v225_v53 = vmul.f32 %v221_v49, %v181_v19 }
 0x23a   :  { %v229_v54 = vpack.c.bf16 %v227_v51, %v226_v50 }
 0x23b   :  { %v228_v55 = vpack.c.bf16 %v225_v53, %v224_v52 }
 0x23d   :  { %407 = vmatprep.mubr.msk.bf16.mxu1 %vm269_vm2, %v228_v55 }
 0x23e   :  { %408 = vmatmul.mubr.msk.bf16.vlgmr.msra.gmra.mrb[0].mxu1 %vm269_vm2, %v229_v54 }
 0x311   :  { %v409_v57 = vpop.f32.mrb[0].mxu1 }
 0x312   :  { %v319_v58 = vadd.f32 %v409_v57, %v362_v56  ;;  %v310_v59 = vpop.f32.mrb[1].mxu1 }
 0x313   :  { %v311_v60 = vadd.f32 %v362_v56, %v310_v59  ;;  %v410_v61 = vpop.f32.mrb[2].mxu1 }
 0x314   :  { %v327_v62 = vadd.f32 %v319_v58, %v484_v4  ;;  %v322_v63 = vadd.f32 %v410_v61, %v362_v56  ;;  %v313_v0 = vpop.f32.mrb[3].mxu1 }
 0x315   :  { %v325_v1 = vadd.f32 %v482_v3, %v311_v60  ;;  %v314_v2 = vadd.f32 %v362_v56, %v313_v0 }
 0x316   :  { %v375_v7 = vpack.c.bf16 %v327_v62, %v327_v62  ;;  %v328_v8 = vadd.f32 %v322_v63, %v488_v6 }
 0x317   :  { %v373_v9 = vpack.c.bf16 %v325_v1, %v325_v1  ;;  %v326_v10 = vadd.f32 %v486_v5, %v314_v2 }
 0x318   :  { %348 = vst.msk [vmem:[%s561_s7 + $0x8] sm:$0xf] %vm345_vm3, %v375_v7  ;;  %v376_v11 = vpack.c.bf16 %v328_v8, %v328_v8 }
 0x319   :  { %346 = vst.msk [vmem:[%s561_s7] sm:$0xf] %vm345_vm3, %v373_v9  ;;  %v374_v4 = vpack.c.bf16 %v326_v10, %v326_v10 }
 0x31a   :  { %350 = vst.msk [vmem:[%s561_s7 + $0xc] sm:$0x7] %vm349_vm4, %v376_v11 }
 0x31b   :  { %347 = vst.msk [vmem:[%s561_s7 + $0x4] sm:$0xf] %vm345_vm3, %v374_v4 }

// kernel: _forward_core.43
= control target key start
LH: loop header
LB: loop body
LE: loop exit
PB: predicated region body
PF: predicated region fallthrough
CT: control target
= control target key end

     0   :  { %s386_s9 = smov 0   ;;  %s420_s0 = inlined_call_operand.vmem [shape: f32[2,30,32], index: 0, kind: input, shape index: {}]   ;;  %s421_s1 = inlined_call_operand.vmem [shape: f32[2,16,32], index: 1, kind: input, shape index: {}]   ;;  %s422_s2 = inlined_call_operand.vmem [shape: s32[2,1,30], index: 2, kind: output, shape index: {}]  }
   0x1 LB: > { %s326_s10 = sadd.s32 4294967295, %s367_s9   ;;  %p330_p0 = scmp.ge.s32.totalorder %s367_s9, 1  ;;  %s367_s9 = sphi %s386_s9, %s12_s9  }
   0x2   : > { %p122_p1 = scmp.lt.s32.totalorder %s367_s9, 3 }
   0x4   : > { %p123_p2 = pnand %p330_p0, %p122_p1 }
   0x5   : > { %p147_p3 = scmp.lt.s32.totalorder (!%p123_p2), %s326_s10, 1  ;;  %v369_v0 = vmov (!%p123_p2), 0.0   ;;  %vm370_vm0 = vmmov (!%p123_p2), 0   ;;  %vm169_vm1 = vcmask (!%p123_p2), 261120   ;;  %vm233_vm2 = vcmask (!%p123_p2), 244736  }
   0x6   : > { %126 = sbr.rel (%p123_p2) target bundleno = 288 (0x120), region = 28  ;;  %343 = vmatprep.subr.bf16.mxu0 (!%p123_p2), %v369_v0  ;;  %347 = vmatprep.mubr.msk.bf16.mxu0 (!%p123_p2), %vm370_vm0, %v369_v0  ;;  %v243_v30 = vlaneseq (!%p123_p2)  ;;  %vm265_vm9 = vcmask (!%p123_p2), 237568  }
   0x8   : > { %v244_v33 = vshrl.u32 (!%p123_p2), %v243_v30, 7 }
   0xa   : > { %v245_v36 = vadd.s32 (!%p123_p2), 8, %v244_v33 }
   0xd   : > { %s424_s10 = smov (!%p147_p3, %s326_s10), 1 }
   0xe   : > { %s338_s11 = sshll.u32 %s424_s10, 5  ;;  %s339_s15 = sshll.u32 %s424_s10, 4 }
   0xf   : > { %s151_s14 = scalar_lea.vmem %s420_s0, %s338_s11  ;;  %s156_s18 = scalar_lea.vmem %s421_s1, %s339_s15 }
  0x10   : > { %v161_v1 = vld [vmem:[%s151_s14] sm:$0xff]  ;;  %v162_v2 = vld [vmem:[%s151_s14 + $0x8] sm:$0xff]  ;;  %v163_v6 = vld [vmem:[%s151_s14 + $0x10] sm:$0xff]  ;;  %s159_s21 = scalar_lea.vmem %s422_s2, %s424_s10 }
  0x11   : > { %v177_v3 = vpack.c.bf16 %v162_v2, %v161_v1  ;;  %v165_v4 = vld [vmem:[%s156_s18] sm:$0xff]  ;;  %v166_v5 = vld [vmem:[%s156_s18 + $0x8] sm:$0xff]  ;;  %v164_v7 = vld [vmem:[%s151_s14 + $0x18] sm:$0x3f] }
  0x12   : > { %v167_v8 = vmul.f32 %v165_v4, %v165_v4  ;;  %v168_v9 = vmul.f32 %v166_v5, %v166_v5  ;;  %v178_v12 = vpack.c.bf16 %v164_v7, %v163_v6  ;;  %v176_v15 = vpack.c.bf16 %v166_v5, %v165_v4 }
  0x13   : > { %v183_v10 = vsel %vm169_vm1, %v177_v3, 0 }
  0x14   : > { %344 = vmatpush3.bf16.xpose.msra.mxu0 %v183_v10  ;;  %v170_v11 = vsel %vm169_vm1, %v167_v8, 0.0  ;;  %v173_v13 = vsel %vm169_vm1, %v168_v9, 0.0  ;;  %v186_v14 = vsel %vm169_vm1, %v178_v12, 0 }
  0x15   : > { %345 = vmatprep.subr.bf16.mxu0 %v369_v0  ;;  %171 = vadd.xlane.f32.xlu0 %v170_v11 }
  0x19   : > { %174 = vadd.xlane.f32.xlu0 %v173_v13 }
  0x1c   : > { %346 = vmatpush3.bf16.xpose.msra.mxu0 %v186_v14 }
  0x23   : > { %348 = vmatmul.mubr.msk.bf16.vlgmr.msra.gmra.mrb[0].mxu0 %vm169_vm1, %v176_v15 }
  0xa2   : > { %v172_v16 = vpop.xlane.xlu0 %171 }
  0xa6   : > { %v175_v21 = vpop.xlane.xlu0 %174 }
  0xf6   : > { %v222_v17 = vpop.f32.mrb[0].mxu0 }
  0xf7   : > { %v229_v18 = vmul.f32 2.0, %v222_v17  ;;  %v349_v19 = vpop.f32.mrb[1].mxu0 }
  0xf8   : > { %v225_v20 = vpop.f32.mrb[2].mxu0 }
  0xf9   : > { %v231_v22 = vsub.f32 %v172_v16, %v229_v18  ;;  %v230_v23 = vmul.f32 2.0, %v225_v20  ;;  %v350_v24 = vpop.f32.mrb[3].mxu0 }
  0xfb   : > { %v232_v25 = vsub.f32 %v175_v21, %v230_v23  ;;  %v234_v26 = vsel %vm233_vm2, %v231_v22, inf }
  0xfd   : > { %v235_v27 = vsel %vm233_vm2, %v232_v25, inf }
  0xfe   : > { %v236_v28 = vmin.f32 %v234_v26, %v235_v27 }
 0x100   : > { %v237_v29 = vrot.slane %v236_v28, 4 }
 0x102   : > { %v238_v31 = vmin.f32 %v236_v28, %v237_v29 }
 0x104   : > { %v239_v32 = vrot.slane %v238_v31, 2 }
 0x106   : > { %v240_v34 = vmin.f32 %v238_v31, %v239_v32 }
 0x108   : > { %v241_v35 = vrot.slane %v240_v34, 1 }
 0x10a   : > { %v242_v37 = vmin.f32 %v240_v34, %v241_v35 }
 0x10c   : > { %vm246_vm3 = vcmp.le.f32.partialorder %v231_v22, %v242_v37  ;;  %vm247_vm4 = vcmp.le.f32.partialorder %v232_v25, %v242_v37 }
 0x10d   : > { %v248_v38 = vsel %vm246_vm3, %v244_v33, 16  ;;  %v249_v39 = vsel %vm247_vm4, %v245_v36, 16 }
 0x10e   : > { %v250_v40 = vsel %vm233_vm2, %v248_v38, 2147483647  ;;  %v251_v41 = vsel %vm233_vm2, %v249_v39, 2147483647 }
 0x10f   : > { %vm252_vm5 = vcmp.lt.s32.totalorder %v250_v40, %v251_v41 }
 0x110   : > { %v253_v42 = vsel %vm252_vm5, %v250_v40, %v251_v41 }
 0x111   : > { %v254_v43 = vrot.slane %v253_v42, 4 }
 0x113   : > { %vm255_vm6 = vcmp.lt.s32.totalorder %v253_v42, %v254_v43 }
 0x114   : > { %v256_v44 = vsel %vm255_vm6, %v253_v42, %v254_v43 }
 0x115   : > { %v257_v45 = vrot.slane %v256_v44, 2 }
 0x117   : > { %vm258_vm7 = vcmp.lt.s32.totalorder %v256_v44, %v257_v45 }
 0x118   : > { %v259_v46 = vsel %vm258_vm7, %v256_v44, %v257_v45 }
 0x119   : > { %v260_v47 = vrot.slane %v259_v46, 1 }
 0x11b   : > { %vm261_vm8 = vcmp.lt.s32.totalorder %v259_v46, %v260_v47 }
 0x11c   : > { %v262_v48 = vsel %vm261_vm8, %v259_v46, %v260_v47 }
 0x11d   : > { %vm263_vm10 = vcmp.lt.s32.totalorder %v262_v48, 15 }
 0x11e   : > { %v264_v49 = vsel %vm263_vm10, %v262_v48, 15 }
 0x11f   : > { %266 = vst.msk [vmem:[%s159_s21] sm:$0x1] %vm265_vm9, %v264_v49 }
 0x120 PF: > { %s12_s9 = sadd.s32 1, %s367_s9  }
 0x121   : > { %p9_p4 = scmp.ge.s32.totalorder %s12_s9, 4  }
 0x123   :  { %11 = sbr.rel (!%p9_p4) target bundleno = 1 (0x1), region = 61 }

// kernel: _forward_core.44
= control target key start
LH: loop header
LB: loop body
LE: loop exit
PB: predicated region body
PF: predicated region fallthrough
CT: control target
= control target key end

     0   :  { %s866_s18 = smov 0   ;;  %s1045_s0 = inlined_call_operand.vmem [shape: bf16[2,30,32], index: 0, kind: input, shape index: {}]   ;;  %s1046_s1 = inlined_call_operand.vmem [shape: bf16[2,32,16], index: 1, kind: input, shape index: {}]   ;;  %s1047_s2 = inlined_call_operand.vmem [shape: f32[2,1,16], index: 2, kind: input, shape index: {}]   ;;  %s1048_s3 = inlined_call_operand.vmem [shape: s32[2,30,1], index: 3, kind: input, shape index: {}]   ;;  %s1049_s4 = inlined_call_operand.vmem [shape: f32[30,1], index: 4, kind: input, shape index: {}]   ;;  %s1050_s5 = inlined_call_operand.vmem [shape: f32[2,4,16], index: 5, kind: output, shape index: {}]  }
   0x1 LB: > { %s742_s19 = sadd.s32 4294967295, %s832_s18   ;;  %p746_p0 = scmp.ge.s32.totalorder %s832_s18, 1  ;;  %s832_s18 = sphi %s866_s18, %s15_s18  }
   0x2   : > { %p215_p1 = scmp.lt.s32.totalorder %s832_s18, 3 }
   0x4   : > { %p216_p2 = pnand %p746_p0, %p215_p1 }
   0x5   : > { %p255_p3 = scmp.lt.s32.totalorder (!%p216_p2), %s742_s19, 1  ;;  %vm315_vm0 = vcmask (!%p216_p2), 261120   ;;  %vm405_vm1 = vcmask (!%p216_p2), 130048   ;;  %vm415_vm2 = vcmask (!%p216_p2), 128000   ;;  %v834_v17 = vmov (!%p216_p2), 0   ;;  %v375_v59 = vld [vmem:[%s1049_s4] sm:$0xff] (!%p216_p2) }
   0x6   : > { %219 = sbr.rel (%p216_p2) target bundleno = 718 (0x2ce), region = 40  ;;  %797 = vset.pattern.permute.xlu1 (!%p216_p2), %v834_v17  ;;  %796 = vset.pattern.permute.xlu0 (!%p216_p2), %v834_v17  ;;  %v379_v18 = vlaneseq (!%p216_p2)  ;;  %v376_v60 = vld [vmem:[%s1049_s4 + $0x8] sm:$0xff] (!%p216_p2)  ;;  %v377_v61 = vld [vmem:[%s1049_s4 + $0x10] sm:$0xff] (!%p216_p2) }
   0x8   : > { %v891_v19 = vand.u32 (!%p216_p2), 127, %v379_v18 }
   0xd   : > { %s1052_s19 = smov (!%p255_p3, %s742_s19), 1 }
   0xe   : > { %s771_s20 = sshll.u32 %s1052_s19, 4  ;;  %s267_s29 = scalar_lea.vmem %s1047_s2, %s1052_s19 }
   0xf   : > { %s264_s23 = scalar_lea.vmem %s1046_s1, %s771_s20  ;;  %s259_s26 = scalar_lea.vmem %s1045_s0, %s771_s20  ;;  %v754_v4 = vld [vmem:[%s267_s29] ss:$0 sm:$0xff] }
  0x10   : > { %v798_v0 = vld [vmem:[%s264_s23] sm:$0xff]   ;;  %v799_v1 = vld [vmem:[%s264_s23 + $0x8] sm:$0xff]   ;;  %s773_s30 = sshll.u32 %s1052_s19, 5  ;;  %s753_s17 = sshll.u32 %s1052_s19, 2 }
  0x11   : > { %778 = vmatprep.subr.bf16.mxu0 %v798_v0  ;;  %v800_v2 = vld [vmem:[%s259_s26] sm:$0xff]   ;;  %v801_v3 = vld [vmem:[%s259_s26 + $0x8] sm:$0x7f]   ;;  %s942_s8 = scalar_lea.vmem %s1048_s3, %s773_s30  ;;  %s1028_s19 = scalar_lea.vmem %s1050_s5, %s753_s17 }
  0x12   : > { %779 = vmatpush3.bf16.msra.mxu0 %v798_v0  ;;  %782 = vmatprep.mubr.msk.bf16.mxu0 %vm315_vm0, %v800_v2  ;;  %v372_v56 = vld [vmem:[%s942_s8 + $0x8] sm:$0xff]  ;;  %v373_v57 = vld [vmem:[%s942_s8 + $0x10] sm:$0xff]  ;;  %v374_v58 = vld [vmem:[%s942_s8 + $0x18] sm:$0x3f] }
  0x13   : > { %780 = vmatprep.subr.bf16.mxu0 %v799_v1 }
  0x16   : > { %781 = vmatpush3.bf16.msra.mxu0 %v799_v1 }
  0x19   : > { %783 = vmatmul.mubr.msk.bf16.vlgmr.msra.gmra.mrb[0].mxu0 %vm315_vm0, %v801_v3 }
  0xec   : > { %v784_v5 = vpop.f32.mrb[0].mxu0 }
  0xed   : > { %v365_v6 = vadd.f32 %v784_v5, %v754_v4  ;;  %v356_v7 = vpop.f32.mrb[1].mxu0 }
  0xee   : > { %v357_v8 = vadd.f32 %v754_v4, %v356_v7  ;;  %v785_v9 = vpop.f32.mrb[2].mxu0 }
  0xef   : > { %v368_v10 = vadd.f32 %v785_v9, %v754_v4  ;;  %v359_v11 = vpop.f32.mrb[3].mxu0  ;;  %v412_v12 = vsel %vm405_vm1, %v365_v6, -inf }
  0xf0   : > { %v360_v13 = vadd.f32 %v754_v4, %v359_v11  ;;  %413 = vmax.xlane.f32.xlu1 %v412_v12  ;;  %v406_v14 = vsel %vm405_vm1, %v357_v8, -inf }
  0xf1   : > { %407 = vmax.xlane.f32.xlu0 %v406_v14  ;;  %v416_v15 = vsel %vm415_vm2, %v368_v10, -inf  ;;  %v378_v14 = vld [vmem:[%s1049_s4 + $0x18] sm:$0x3f] }
  0xf2   : > { %v409_v16 = vsel %vm405_vm1, %v360_v13, -inf }
  0xf4   : > { %417 = vmax.xlane.f32.xlu1 %v416_v15  ;;  %v371_v15 = vld [vmem:[%s942_s8] sm:$0xff] }
  0xf5   : > { %410 = vmax.xlane.f32.xlu0 %v409_v16 }
 0x17d   : > { %v414_v20 = vpop.xlane.xlu1 %413 }
 0x17e   : > { %v893_v21 = vsub.f32 %v365_v6, %v414_v20  ;;  %vm465_vm3 = vcmp.ge.f32.partialorder %v365_v6, %v414_v20  ;;  %v408_v22 = vpop.xlane.xlu0 %407 }
 0x17f   : > { %v469_v23 = vsel %vm465_vm3, %v891_v19, 16  ;;  %v896_v24 = vsub.f32 %v357_v8, %v408_v22  ;;  %vm463_vm4 = vcmp.ge.f32.partialorder %v357_v8, %v408_v22 }
 0x180   : > { %v427_v25 = vmul.f32 1.442695, %v893_v21  ;;  %v467_v26 = vsel %vm463_vm4, %v891_v19, 16  ;;  %v901_v27 = vsel %vm405_vm1, %v469_v23, 2147483647 }
 0x181   : > { %v423_v28 = vmul.f32 1.442695, %v896_v24  ;;  %v418_v29 = vpop.xlane.xlu1 %417  ;;  %v905_v30 = vsel %vm405_vm1, %v467_v26, 2147483647  ;;  %v503_v31 = vshra.s32 %v901_v27, 16  ;;  %v502_v0 = vand.u32 65535, %v901_v27 }
 0x182   : > { %802 = vpow2.f32 %v427_v25  ;;  %v908_v32 = vsub.f32 %v368_v10, %v418_v29  ;;  %vm466_vm5 = vcmp.ge.f32.partialorder %v368_v10, %v418_v29  ;;  %v411_v33 = vpop.xlane.xlu0 %410  ;;  %v473_v34 = vshra.s32 %v905_v30, 16 }
 0x183   : > { %804 = vpow2.f32 %v423_v28  ;;  %v470_v35 = vsel %vm466_vm5, %v891_v19, 16  ;;  %v912_v36 = vsub.f32 %v360_v13, %v411_v33  ;;  %vm464_vm6 = vcmp.ge.f32.partialorder %v360_v13, %v411_v33 }
 0x184   : > { %v429_v37 = vmul.f32 1.442695, %v908_v32  ;;  %v468_v38 = vsel %vm464_vm6, %v891_v19, 16  ;;  %v916_v39 = vcvt.s32.f32 %v473_v34  ;;  %v516_v40 = vsel %vm415_vm2, %v470_v35, 2147483647 }
 0x185   : > { %v425_v41 = vmul.f32 1.442695, %v912_v36  ;;  %v518_v42 = vshra.s32 %v516_v40, 16  ;;  %v486_v43 = vsel %vm405_vm1, %v468_v38, 2147483647  ;;  %v505_v46 = vcvt.s32.f32 %v503_v31 }
 0x186   : > { %806 = vpow2.f32 %v429_v37  ;;  %476 = vmin.xlane.f32.xlu0 %v916_v39  ;;  %v488_v45 = vshra.s32 %v486_v43, 16  ;;  %v517_v62 = vand.u32 65535, %v516_v40  ;;  %v487_v3 = vand.u32 65535, %v486_v43 }
 0x187   : > { %v520_v44 = vcvt.s32.f32 %v518_v42  ;;  %808 = vpow2.f32 %v425_v41  ;;  %v504_v5 = vcvt.s32.f32 %v502_v0  ;;  %v472_v6 = vand.u32 65535, %v905_v30 }
 0x188   : > { %v490_v47 = vcvt.s32.f32 %v488_v45  ;;  %v519_v2 = vcvt.s32.f32 %v517_v62  ;;  %v489_v10 = vcvt.s32.f32 %v487_v3  ;;  %v835_v62 = vmov 0.0  }
 0x189   : > { %521 = vmin.xlane.f32.xlu1 %v520_v44  ;;  %v474_v11 = vcvt.s32.f32 %v472_v6 }
 0x18a   : > { %506 = vmin.xlane.f32.xlu0 %v505_v46 }
 0x18c   : > { %v922_v48 = vpop.eup %802 }
 0x18d   : > { %v924_v49 = vpop.eup %804  ;;  %491 = vmin.xlane.f32.xlu1 %v490_v47  ;;  %v437_v50 = vsel %vm405_vm1, %v922_v48, 0.0 }
 0x18e   : > { %438 = vadd.xlane.f32.xlu0 %v437_v50  ;;  %v431_v52 = vsel %vm405_vm1, %v924_v49, 0.0 }
 0x190   : > { %v928_v51 = vpop.eup %806 }
 0x191   : > { %v440_v53 = vsel %vm415_vm2, %v928_v51, 0.0  ;;  %v934_v54 = vpop.eup %808 }
 0x192   : > { %432 = vadd.xlane.f32.xlu0 %v431_v52  ;;  %441 = vadd.xlane.f32.xlu1 %v440_v53  ;;  %v434_v55 = vsel %vm405_vm1, %v934_v54, 0.0 }
 0x196   : > { %435 = vadd.xlane.f32.xlu1 %v434_v55 }
 0x1a7   : > { %385 = vperm.xlu1 %797, %v372_v56  }
 0x1ab   : > { %388 = vperm.xlu1 %797, %v373_v57  }
 0x1af   : > { %391 = vperm.xlu1 %797, %v374_v58  }
 0x1b3   : > { %553 = vperm.xlu1 %797, %v375_v59  }
 0x1b7   : > { %558 = vperm.xlu1 %797, %v376_v60  }
 0x1bb   : > { %563 = vperm.xlu1 %797, %v377_v61  }
 0x213   : > { %v477_v63 = vpop.xlane.xlu0 %476 }
 0x214   : > { %vm478_vm9 = vcmp.eq.f32.partialorder %v916_v39, %v477_v63  ;;  %v483_v31 = vcvt.f32.s32 %v477_v63 }
 0x215   : > { %v479_v13 = vsel %vm478_vm9, %v474_v11, inf  ;;  %vm651_vm9 = vcmask 122880  }
 0x216   : > { %v522_v1 = vpop.xlane.xlu1 %521 }
 0x217   : > { %v507_v4 = vpop.xlane.xlu0 %506  ;;  %vm523_vm7 = vcmp.eq.f32.partialorder %v520_v44, %v522_v1  ;;  %v528_v35 = vcvt.f32.s32 %v522_v1  ;;  %v484_v44 = vshll.u32 %v483_v31, 16 }
 0x218   : > { %v524_v7 = vsel %vm523_vm7, %v519_v2, inf  ;;  %vm508_vm8 = vcmp.eq.f32.partialorder %v505_v46, %v507_v4  ;;  %v513_v37 = vcvt.f32.s32 %v507_v4 }
 0x219   : > { %525 = vmin.xlane.f32.xlu1 %v524_v7  ;;  %v509_v8 = vsel %vm508_vm8, %v504_v5, inf  ;;  %v529_v50 = vshll.u32 %v528_v35, 16 }
 0x21a   : > { %v492_v9 = vpop.xlane.xlu1 %491  ;;  %510 = vmin.xlane.f32.xlu0 %v509_v8  ;;  %v514_v52 = vshll.u32 %v513_v37, 16 }
 0x21b   : > { %vm493_vm10 = vcmp.eq.f32.partialorder %v490_v47, %v492_v9  ;;  %v439_v23 = vpop.xlane.xlu0 %438  ;;  %v498_v42 = vcvt.f32.s32 %v492_v9 }
 0x21c   : > { %v494_v12 = vsel %vm493_vm10, %v489_v10, inf  ;;  %810 = vlog2.f32 %v439_v23 }
 0x21d   : > { %495 = vmin.xlane.f32.xlu1 %v494_v12 }
 0x21e   : > { %480 = vmin.xlane.f32.xlu0 %v479_v13 }
 0x21f   : > { %v442_v16 = vpop.xlane.xlu1 %441  ;;  %v433_v26 = vpop.xlane.xlu0 %432 }
 0x220   : > { %812 = vlog2.f32 %v442_v16 }
 0x223   : > { %v436_v17 = vpop.xlane.xlu1 %435 }
 0x224   : > { %814 = vlog2.f32 %v436_v17 }
 0x225   : > { %816 = vrcp.f32 %v436_v17 }
 0x226   : > { %818 = vrcp.f32 %v439_v23  ;;  %v811_v28 = vpop.eup %810 }
 0x227   : > { %v386_v18 = vpop.permute.xlu1 %385  ;;  %820 = vrcp.f32 %v433_v26  ;;  %v448_v33 = vmul.f32 0.6931472, %v811_v28 }
 0x228   : > { %822 = vrcp.f32 %v442_v16  ;;  %vm394_vm11 = vcmp.eq.s32.totalorder %v891_v19, %v386_v18 }
 0x229   : > { %824 = vlog2.f32 %v433_v26  ;;  %v453_v45 = vsub.f32 %v893_v21, %v448_v33  ;;  %v499_v21 = vshll.u32 %v498_v42, 16  ;;  %v762_v63 = vsel %vm394_vm11, 1.0, %v835_v62 }
 0x22a   : > { %v813_v29 = vpop.eup %812 }
 0x22b   : > { %v389_v20 = vpop.permute.xlu1 %388  ;;  %v450_v40 = vmul.f32 0.6931472, %v813_v29 }
 0x22c   : > { %vm395_vm12 = vcmp.eq.s32.totalorder %v891_v19, %v389_v20 }
 0x22d   : > { %v454_v57 = vsub.f32 %v908_v32, %v450_v40  ;;  %v763_v3 = vsel %vm395_vm12, 1.0, %v835_v62 }
 0x22e   : > { %568 = vperm.xlu1 %797, %v378_v14   ;;  %v815_v30 = vpop.eup %814 }
 0x22f   : > { %v963_v22 = vpop.permute.xlu1 %391  ;;  %v817_v34 = vpop.eup %816  ;;  %v446_v43 = vmul.f32 0.6931472, %v815_v30  ;;  %v608_v6 = vsub.f32 0.0, %v454_v57 }
 0x230   : > { %v819_v39 = vpop.eup %818  ;;  %v458_v46 = vmul.f32 %v817_v34, %v934_v54  ;;  %vm396_vm14 = vcmp.eq.s32.totalorder %v891_v19, %v963_v22 }
 0x231   : > { %v821_v41 = vpop.eup %820  ;;  %v460_v53 = vmul.f32 %v819_v39, %v922_v48  ;;  %v452_v54 = vsub.f32 %v912_v36, %v446_v43  ;;  %v607_v48 = vsub.f32 0.0, %v453_v45  ;;  %v764_v23 = vsel %vm396_vm14, 1.0, %v835_v62 }
 0x232   : > { %v823_v47 = vpop.eup %822  ;;  %v456_v58 = vmul.f32 %v821_v41, %v924_v49  ;;  %v612_v42 = vmul.f32 %v764_v23, %v608_v6 }
 0x233   : > { %v965_v25 = vpop.permute.xlu1 %553  ;;  %v825_v56 = vpop.eup %824  ;;  %v462_v36 = vmul.f32 %v823_v47, %v928_v51  ;;  %v606_v10 = vsub.f32 0.0, %v452_v54  ;;  %v611_v35 = vmul.f32 %v763_v3, %v607_v48 }
 0x234   : > { %382 = vperm.xlu0 %796, %v371_v15   ;;  %v571_v1 = vmul.f32 %v965_v25, %v456_v58  ;;  %v444_v49 = vmul.f32 0.6931472, %v825_v56 }
 0x235   : > { %v610_v26 = vmul.f32 %v762_v63, %v606_v10 }
 0x236   : > { %v575_v12 = vsel %vm405_vm1, %v571_v1, 0.0  ;;  %v451_v20 = vsub.f32 %v896_v24, %v444_v49 }
 0x237   : > { %v967_v27 = vpop.permute.xlu1 %558 }
 0x238   : > { %v572_v59 = vmul.f32 %v967_v27, %v458_v46  ;;  %v605_v40 = vsub.f32 0.0, %v451_v20  ;;  %v614_v45 = vmul.f32 %v610_v26, %v967_v27 }
 0x23a   : > { %v576_v7 = vsel %vm405_vm1, %v572_v59, 0.0 }
 0x23b   : > { %v969_v38 = vpop.permute.xlu1 %563  ;;  %v577_v16 = vadd.f32 %v576_v7, %v575_v12 }
 0x23c   : > { %v573_v32 = vmul.f32 %v969_v38, %v460_v53 }
 0x23e   : > { %v578_v13 = vsel %vm405_vm1, %v573_v32, 0.0 }
 0x23f   : > { %v579_v29 = vadd.f32 %v578_v13, %v577_v16 }
 0x2a6   : > { %v526_v55 = vpop.xlane.xlu1 %525 }
 0x2a7   : > { %v527_v60 = vcvt.f32.s32 %v526_v55  ;;  %v511_v61 = vpop.xlane.xlu0 %510 }
 0x2a8   : > { %v512_v0 = vcvt.f32.s32 %v511_v61 }
 0x2a9   : > { %v530_v2 = vadd.s32 %v529_v50, %v527_v60 }
 0x2aa   : > { %v515_v4 = vadd.s32 %v514_v52, %v512_v0  ;;  %v496_v5 = vpop.xlane.xlu1 %495  ;;  %v615_v0 = vmul.f32 %v611_v35, %v969_v38 }
 0x2ab   : > { %vm537_vm13 = vcmp.lt.s32.totalorder %v530_v2, 15  ;;  %v497_v8 = vcvt.f32.s32 %v496_v5  ;;  %v481_v9 = vpop.xlane.xlu0 %480 }
 0x2ac   : > { %vm535_vm15 = vcmp.lt.s32.totalorder %v515_v4, 15  ;;  %v482_v11 = vcvt.f32.s32 %v481_v9  ;;  %v538_v51 = vsel %vm537_vm13, %v530_v2, 15  ;;  %v620_v9 = vsel %vm405_vm1, %v615_v0, 0.0 }
 0x2ad   : > { %v536_v14 = vsel %vm535_vm15, %v515_v4, 15  ;;  %v500_v15 = vadd.s32 %v499_v21, %v497_v8  ;;  %vm542_vm6 = vcmp.eq.s32.totalorder %v891_v19, %v538_v51 }
 0x2ae   : > { %v485_v17 = vadd.s32 %v484_v44, %v482_v11  ;;  %v569_v18 = vpop.permute.xlu1 %568  ;;  %vm541_vm0 = vcmp.eq.s32.totalorder %v891_v19, %v536_v14  ;;  %v768_v43 = vsel %vm542_vm6, 1.0, %v835_v62 }
 0x2af   : > { %vm533_vm3 = vcmp.lt.s32.totalorder %v500_v15, 15  ;;  %v574_v22 = vmul.f32 %v569_v18, %v462_v36  ;;  %v767_v33 = vsel %vm541_vm0, 1.0, %v835_v62  ;;  %v633_v57 = vmul.f32 %v768_v43, %v764_v23 }
 0x2b0   : > { %v534_v28 = vsel %vm533_vm3, %v500_v15, 15  ;;  %vm531_vm4 = vcmp.lt.s32.totalorder %v485_v17, 15  ;;  %v590_v46 = vmul.f32 %v767_v33, %v969_v38  ;;  %v632_v47 = vmul.f32 %v767_v33, %v763_v3 }
 0x2b1   : > { %vm540_vm5 = vcmp.eq.s32.totalorder %v891_v19, %v534_v28  ;;  %v532_v30 = vsel %vm531_vm4, %v485_v17, 15  ;;  %v580_v31 = vsel %vm415_vm2, %v574_v22, 0.0  ;;  %v591_v58 = vmul.f32 %v768_v43, %v569_v18 }
 0x2b2   : > { %v766_v24 = vsel %vm540_vm5, 1.0, %v835_v62  ;;  %v581_v34 = vadd.f32 %v580_v31, %v579_v29  ;;  %vm539_vm7 = vcmp.eq.s32.totalorder %v891_v19, %v532_v30  ;;  %v595_v48 = vsel %vm405_vm1, %v590_v46, 0.0 }
 0x2b3   : > { %v589_v37 = vmul.f32 %v766_v24, %v967_v27  ;;  %v631_v39 = vmul.f32 %v766_v24, %v762_v63  ;;  %v383_v41 = vpop.permute.xlu0 %382  ;;  %v765_v50 = vsel %vm539_vm7, 1.0, %v835_v62  ;;  %v618_v63 = vsel %vm405_vm1, %v614_v45, 0.0 }
 0x2b4   : > { %v582_v44 = vrot.slane %v581_v34, 4  ;;  %v588_v53 = vmul.f32 %v765_v50, %v965_v25  ;;  %vm393_vm8 = vcmp.eq.s32.totalorder %v891_v19, %v383_v41  ;;  %v636_v19 = vmul.f32 %v632_v47, %v969_v38 }
 0x2b5   : > { %v593_v55 = vsel %vm405_vm1, %v589_v37, 0.0  ;;  %v635_v56 = vmul.f32 %v631_v39, %v967_v27  ;;  %v761_v59 = vsel %vm393_vm8, 1.0, %v835_v62  ;;  %v597_v2 = vsel %vm415_vm2, %v591_v58, 0.0 }
 0x2b6   : > { %v583_v52 = vadd.f32 %v582_v44, %v581_v34  ;;  %v592_v61 = vsel %vm405_vm1, %v588_v53, 0.0  ;;  %v609_v21 = vmul.f32 %v761_v59, %v605_v40  ;;  %v630_v54 = vmul.f32 %v765_v50, %v761_v59 }
 0x2b7   : > { %v594_v1 = vadd.f32 %v593_v55, %v592_v61  ;;  %v616_v49 = vmul.f32 %v612_v42, %v569_v18  ;;  %v637_v3 = vmul.f32 %v633_v57, %v569_v18  ;;  %v639_v36 = vsel %vm405_vm1, %v635_v56, 0.0 }
 0x2b8   : > { %v584_v60 = vrot.slane %v583_v52, 2  ;;  %v613_v32 = vmul.f32 %v609_v21, %v965_v25  ;;  %v634_v62 = vmul.f32 %v630_v54, %v965_v25  ;;  %v641_v11 = vsel %vm405_vm1, %v636_v19, 0.0 }
 0x2b9   : > { %v596_v4 = vadd.f32 %v595_v48, %v594_v1  ;;  %v622_v15 = vsel %vm415_vm2, %v616_v49, 0.0  ;;  %v643_v16 = vsel %vm415_vm2, %v637_v3, 0.0 }
 0x2ba   : > { %v585_v27 = vadd.f32 %v584_v60, %v583_v52  ;;  %v617_v6 = vsel %vm405_vm1, %v613_v32, 0.0  ;;  %v638_v7 = vsel %vm405_vm1, %v634_v62, 0.0 }
 0x2bb   : > { %v598_v25 = vadd.f32 %v597_v2, %v596_v4  ;;  %v619_v38 = vadd.f32 %v618_v63, %v617_v6  ;;  %v640_v8 = vadd.f32 %v639_v36, %v638_v7 }
 0x2bc   : > { %v586_v5 = vrot.slane %v585_v27, 1 }
 0x2bd   : > { %v599_v12 = vrot.slane %v598_v25, 4  ;;  %v621_v13 = vadd.f32 %v620_v9, %v619_v38  ;;  %v642_v14 = vadd.f32 %v641_v11, %v640_v8 }
 0x2be   : > { %v587_v10 = vadd.f32 %v586_v5, %v585_v27 }
 0x2bf   : > { %v600_v51 = vadd.f32 %v599_v12, %v598_v25  ;;  %v623_v17 = vadd.f32 %v622_v15, %v621_v13  ;;  %v644_v18 = vadd.f32 %v643_v16, %v642_v14 }
 0x2c0   : > { %652 = vst.msk [vmem:[%s1028_s19] sm:$0x1] %vm651_vm9, %v587_v10 }
 0x2c1   : > { %v601_v20 = vrot.slane %v600_v51, 2  ;;  %v624_v23 = vrot.slane %v623_v17, 4  ;;  %v645_v22 = vrot.slane %v644_v18, 4 }
 0x2c3   : > { %v602_v26 = vadd.f32 %v601_v20, %v600_v51  ;;  %v625_v28 = vadd.f32 %v624_v23, %v623_v17  ;;  %v646_v29 = vadd.f32 %v645_v22, %v644_v18 }
 0x2c5   : > { %v603_v30 = vrot.slane %v602_v26, 1  ;;  %v626_v31 = vrot.slane %v625_v28, 2  ;;  %v647_v33 = vrot.slane %v646_v29, 2 }
 0x2c7   : > { %v604_v24 = vadd.f32 %v603_v30, %v602_v26  ;;  %v627_v34 = vadd.f32 %v626_v31, %v625_v28  ;;  %v648_v35 = vadd.f32 %v647_v33, %v646_v29 }
 0x2c9   : > { %653 = vst.msk [vmem:[%s1028_s19 + $0x1] sm:$0x1] %vm651_vm9, %v604_v24  ;;  %v628_v37 = vrot.slane %v627_v34, 1  ;;  %v649_v39 = vrot.slane %v648_v35, 1 }
 0x2cb   : > { %v629_v40 = vadd.f32 %v628_v37, %v627_v34  ;;  %v650_v41 = vadd.f32 %v649_v39, %v648_v35 }
 0x2cd   : > { %654 = vst.msk [vmem:[%s1028_s19 + $0x2] sm:$0x1] %vm651_vm9, %v629_v40  ;;  %655 = vst.msk [vmem:[%s1028_s19 + $0x3] sm:$0x1] %vm651_vm9, %v650_v41 }
 0x2ce PF: > { %s15_s18 = sadd.s32 1, %s832_s18  }
 0x2cf   : > { %p12_p4 = scmp.ge.s32.totalorder %s15_s18, 4  }
 0x2d1   :  { %14 = sbr.rel (!%p12_p4) target bundleno = 1 (0x1), region = 79 }

</bundles_post_ra>
